<compile_context>
chip_gen: v7x
topology: tpu7x:2x2x1
jax: 0.10.0
libtpu: 0.0.40
codegen_flags: <defaults>
</compile_context>

<pallas_src>
import jax
import jax.numpy as jnp
from jax.experimental import pallas as pl
from jax.experimental.pallas import tpu as pltpu


def _round_up(x, m):
    return (x + m - 1) // m * m


def _cdiv(a, b):
    return -(-a // b)


def _vfe_kernel(feat_ref, nv_ref, out_ref):
    # feat_ref : [P, C, TN]   voxel features (channels on sublanes, voxels on lanes)
    # nv_ref   : [1, TN]      number of real points per voxel (int32)
    # out_ref  : [C + 8, TN]  descriptor output, one row per descriptor component
    P, C, TN = feat_ref.shape
    f32 = jnp.float32
    BIG = 100000.0

    # Lane sub-chunk size: small enough that all accumulators stay in vregs,
    # large enough to keep full 128-lane vector ops.  TN is a multiple of 128.
    sub = 128
    for cand in (512, 256, 128):
        if TN % cand == 0:
            sub = cand
            break

    for j in range(TN // sub):
        j0, j1 = j * sub, (j + 1) * sub

        nv = nv_ref[:, j0:j1].astype(f32)                      # [1, sub]
        inv_nv = pl.reciprocal(nv)                             # exact; reused twice

        s_acc = jnp.zeros((C, sub), f32)
        mx_acc = jnp.full((C, sub), -BIG, f32)
        mn_acc = jnp.full((C, sub), BIG, f32)
        cnt = jnp.zeros((1, sub), f32)

        # ---- pass 1: streamed sum / count / masked max / masked min ----
        for p in range(P):
            pt = feat_ref[p, :, j0:j1].astype(f32)             # [C, sub]
            csum = jnp.sum(pt, axis=0, keepdims=True)          # [1, sub]
            valid = csum != 0.0
            off = jnp.where(valid, 0.0, BIG)                   # [1, sub]
            s_acc = s_acc + pt
            cnt = cnt + jnp.where(valid, 1.0, 0.0)
            mx_acc = jnp.maximum(mx_acc, pt - off)
            mn_acc = jnp.minimum(mn_acc, pt + off)

        mean = s_acc * inv_nv                                  # [C, sub]
        density = cnt * (1.0 / float(P))                       # [1, sub]
        mean_xyz = mean[0:3, :]                                # [3, sub]

        # ---- pass 2: streamed mean distance to centroid ("std") ----
        std_sum = jnp.zeros((1, sub), f32)
        for p in range(P):
            pt = feat_ref[p, :, j0:j1].astype(f32)             # [C, sub]
            csum = jnp.sum(pt, axis=0, keepdims=True)          # [1, sub]
            d = pt[0:3, :] - mean_xyz                          # [3, sub]
            nrm = jnp.sqrt(jnp.sum(d * d, axis=0, keepdims=True))
            std_sum = std_sum + jnp.where(csum != 0.0, nrm, 0.0)
        std = std_sum * inv_nv                                 # [1, sub]

        # ---- direct lane-dense row stores (no concatenate) ----
        # rows: [mean_xyz(3), max_xyz(3), min_xyz(3), mean_feats(C-3), density, std]
        out_ref[0:3, j0:j1] = mean_xyz
        out_ref[3:6, j0:j1] = mx_acc[0:3, :]
        out_ref[6:9, j0:j1] = mn_acc[0:3, :]
        if C > 3:
            out_ref[9:C + 6, j0:j1] = mean[3:, :]
        out_ref[C + 6:C + 7, j0:j1] = density
        out_ref[C + 7:C + 8, j0:j1] = std


def improved_mean_vfe(features, num_voxels, *, tile_n=2048):
    """features: [N, P, C] float, num_voxels: [N] int -> [N, C+8] float."""
    N, P, C = features.shape
    assert C >= 3, "expects at least xyz channels"
    out_dim = C + 8

    # ---- tile / grid selection (lane tile multiple of 128, even grid) ----
    chunks = _round_up(N, 128) // 128
    tile_chunks = max(1, min(tile_n // 128, chunks))
    grid = _cdiv(chunks, tile_chunks)
    if grid > 1 and grid % 2 == 1:
        grid += 1  # even step count keeps both v7x TensorCores busy
    tile_chunks = _cdiv(chunks, grid)
    tile_n = tile_chunks * 128
    n_pad = grid * tile_n

    # keep native dtype (no wrapper upcast); cast happens per-slab in-kernel
    feats = features
    nv = num_voxels.astype(jnp.int32).reshape(N)
    if n_pad != N:
        feats = jnp.pad(feats, ((0, n_pad - N), (0, 0), (0, 0)))
        nv = jnp.pad(nv, (0, n_pad - N), constant_values=1)  # avoid 0-div in pad lanes

    # lane-dense layout: voxel axis last; allow_input_fusion lets XLA fuse this
    # pad+transpose into the pallas_call operand instead of round-tripping HBM.
    feats_t = jnp.transpose(feats, (1, 2, 0))                  # [P, C, n_pad]
    nv_t = nv.reshape(1, n_pad)                                # [1, n_pad]

    itemsize = jnp.dtype(features.dtype).itemsize
    cost = pl.CostEstimate(
        flops=int(n_pad * (P * (7 * C + 10) + 3 * C + 4)),
        transcendentals=int(n_pad * (P + 1)),                  # sqrt per point + reciprocal
        bytes_accessed=int(n_pad * (P * C * itemsize + 4 + out_dim * 4)),
    )

    out_t = pl.pallas_call(
        _vfe_kernel,
        out_shape=jax.ShapeDtypeStruct((out_dim, n_pad), jnp.float32),
        grid_spec=pl.GridSpec(
            grid=(grid,),
            in_specs=[
                pl.BlockSpec((P, C, tile_n), lambda i: (0, 0, i)),
                pl.BlockSpec((1, tile_n), lambda i: (0, i)),
            ],
            out_specs=pl.BlockSpec((out_dim, tile_n), lambda i: (0, i)),
        ),
        compiler_params=pltpu.CompilerParams(
            dimension_semantics=("parallel",),
            allow_input_fusion=[True, True],
        ),
        cost_estimate=cost,
    )(feats_t, nv_t)

    out = jnp.transpose(out_t)[:N]                             # [N, C + 8]
    return out.astype(features.dtype)


def _reference(features, num_voxels):
    """Pure-JAX replica of the PyTorch forward (for verification)."""
    f = features.astype(jnp.float32)
    nv = num_voxels.astype(jnp.float32)[:, None]
    P = f.shape[1]
    points_mean = jnp.sum(f, axis=1) / nv
    point_mask = (jnp.sum(f, axis=-1) != 0).astype(jnp.float32)
    xyz = f[:, :, :3]
    off = ((1.0 - point_mask) * 100000.0)[:, :, None]
    pmax = jnp.max(xyz - off, axis=1)
    pmin = jnp.min(xyz + off, axis=1)
    density = jnp.sum(point_mask, axis=-1, keepdims=True) / P
    diff = (xyz - points_mean[:, None, :3]) * point_mask[:, :, None]
    norm = jnp.sqrt(jnp.sum(diff * diff, axis=-1))
    std = jnp.sum(norm, axis=1, keepdims=True) / nv
    return jnp.concatenate(
        [points_mean[:, :3], pmax, pmin, points_mean[:, 3:], density, std], axis=-1
    )


if __name__ == "__main__":
    key = jax.random.PRNGKey(0)
    k1, k2 = jax.random.split(key)

    # n_voxels=2000 (pads to 2048 -> 2 even grid steps at tile_n=1024),
    # 10 points/voxel, 4 input features
    N, P, C = 2000, 10, 4
    feats = jax.random.uniform(k1, (N, P, C), dtype=jnp.float32, minval=0.1, maxval=2.0)
    num_voxels = jax.random.randint(k2, (N,), 1, P + 1, dtype=jnp.int32)

    # zero out padded (invalid) points, as the voxelizer would
    point_ids = jnp.arange(P)[None, :]
    valid = (point_ids < num_voxels[:, None]).astype(jnp.float32)
    feats = feats * valid[:, :, None]

    out = improved_mean_vfe(feats, num_voxels, tile_n=1024)
    out = jax.block_until_ready(out)

    ref = _reference(feats, num_voxels)
    assert out.shape == (N, C + 8)
    assert jnp.allclose(out, ref, atol=1e-5, rtol=1e-5), "mismatch vs reference"

    print("KERNEL_OK")
</pallas_src>

<mosaic_0001>
module attributes {stable_mosaic.version = 11 : i64} {
  func.func @_vfe_kernel(%arg0: i32, %arg1: memref<10x4x1024xf32, #tpu.memory_space<vmem>>, %arg2: memref<1x1024xi32, #tpu.memory_space<vmem>>, %arg3: memref<12x1024xf32, #tpu.memory_space<vmem>>) attributes {dimension_semantics = [#tpu.dimension_semantics<parallel>], iteration_bounds = array<i64: 2>, scalar_prefetch = 0 : i64, scratch_operands = 0 : i64, tpu.core_type = #tpu.core_type<tc>, window_params = [{transform_indices = @transform_0, window_bounds = array<i64: 10, 4, 1024>}, {transform_indices = @transform_1, window_bounds = array<i64: 1, 1024>}, {transform_indices = @transform_2, window_bounds = array<i64: 12, 1024>}]} {
    %c0 = arith.constant 0 : index
    %c0_0 = arith.constant 0 : index
    %0 = vector.load %arg2[%c0, %c0_0] : memref<1x1024xi32, #tpu.memory_space<vmem>>, vector<1x512xi32>
    %1 = arith.sitofp %0 : vector<1x512xi32> to vector<1x512xf32>
    %2 = tpu.reciprocal %1 : vector<1x512xf32> -> vector<1x512xf32>
    %cst = arith.constant 0.000000e+00 : f32
    %3 = vector.broadcast %cst : f32 to vector<4x512xf32>
    %cst_1 = arith.constant -1.000000e+05 : f32
    %4 = vector.broadcast %cst_1 : f32 to vector<4x512xf32>
    %cst_2 = arith.constant 1.000000e+05 : f32
    %5 = vector.broadcast %cst_2 : f32 to vector<4x512xf32>
    %cst_3 = arith.constant 0.000000e+00 : f32
    %6 = vector.broadcast %cst_3 : f32 to vector<1x512xf32>
    %c0_4 = arith.constant 0 : index
    %c0_5 = arith.constant 0 : index
    %c0_6 = arith.constant 0 : index
    %7 = vector.load %arg1[%c0_4, %c0_5, %c0_6] : memref<10x4x1024xf32, #tpu.memory_space<vmem>>, vector<1x4x512xf32>
    %8 = vector.shape_cast %7 : vector<1x4x512xf32> to vector<4x512xf32>
    %cst_7 = arith.constant dense<0.000000e+00> : vector<512xf32>
    %9 = vector.multi_reduction <add>, %8, %cst_7 [0] : vector<4x512xf32> to vector<512xf32>
    %10 = vector.shape_cast %9 : vector<512xf32> to vector<1x512xf32>
    %cst_8 = arith.constant 0.000000e+00 : f32
    %11 = vector.broadcast %cst_8 : f32 to vector<1x512xf32>
    %12 = arith.cmpf one, %10, %11 : vector<1x512xf32>
    %cst_9 = arith.constant 0.000000e+00 : f32
    %cst_10 = arith.constant 1.000000e+05 : f32
    %13 = vector.broadcast %cst_9 : f32 to vector<1x512xf32>
    %14 = vector.broadcast %cst_10 : f32 to vector<1x512xf32>
    %15 = arith.select %12, %13, %14 : vector<1x512xi1>, vector<1x512xf32>
    %16 = arith.addf %3, %8 : vector<4x512xf32>
    %cst_11 = arith.constant 1.000000e+00 : f32
    %cst_12 = arith.constant 0.000000e+00 : f32
    %17 = vector.broadcast %cst_11 : f32 to vector<1x512xf32>
    %18 = vector.broadcast %cst_12 : f32 to vector<1x512xf32>
    %19 = arith.select %12, %17, %18 : vector<1x512xi1>, vector<1x512xf32>
    %20 = arith.addf %6, %19 : vector<1x512xf32>
    %21 = vector.broadcast %15 : vector<1x512xf32> to vector<4x512xf32>
    %22 = arith.subf %8, %21 : vector<4x512xf32>
    %23 = arith.maximumf %4, %22 : vector<4x512xf32>
    %24 = vector.broadcast %15 : vector<1x512xf32> to vector<4x512xf32>
    %25 = arith.addf %8, %24 : vector<4x512xf32>
    %26 = arith.minimumf %5, %25 : vector<4x512xf32>
    %c1 = arith.constant 1 : index
    %c0_13 = arith.constant 0 : index
    %c0_14 = arith.constant 0 : index
    %27 = vector.load %arg1[%c1, %c0_13, %c0_14] : memref<10x4x1024xf32, #tpu.memory_space<vmem>>, vector<1x4x512xf32>
    %28 = vector.shape_cast %27 : vector<1x4x512xf32> to vector<4x512xf32>
    %cst_15 = arith.constant dense<0.000000e+00> : vector<512xf32>
    %29 = vector.multi_reduction <add>, %28, %cst_15 [0] : vector<4x512xf32> to vector<512xf32>
    %30 = vector.shape_cast %29 : vector<512xf32> to vector<1x512xf32>
    %cst_16 = arith.constant 0.000000e+00 : f32
    %31 = vector.broadcast %cst_16 : f32 to vector<1x512xf32>
    %32 = arith.cmpf one, %30, %31 : vector<1x512xf32>
    %cst_17 = arith.constant 0.000000e+00 : f32
    %cst_18 = arith.constant 1.000000e+05 : f32
    %33 = vector.broadcast %cst_17 : f32 to vector<1x512xf32>
    %34 = vector.broadcast %cst_18 : f32 to vector<1x512xf32>
    %35 = arith.select %32, %33, %34 : vector<1x512xi1>, vector<1x512xf32>
    %36 = arith.addf %16, %28 : vector<4x512xf32>
    %cst_19 = arith.constant 1.000000e+00 : f32
    %cst_20 = arith.constant 0.000000e+00 : f32
    %37 = vector.broadcast %cst_19 : f32 to vector<1x512xf32>
    %38 = vector.broadcast %cst_20 : f32 to vector<1x512xf32>
    %39 = arith.select %32, %37, %38 : vector<1x512xi1>, vector<1x512xf32>
    %40 = arith.addf %20, %39 : vector<1x512xf32>
    %41 = vector.broadcast %35 : vector<1x512xf32> to vector<4x512xf32>
    %42 = arith.subf %28, %41 : vector<4x512xf32>
    %43 = arith.maximumf %23, %42 : vector<4x512xf32>
    %44 = vector.broadcast %35 : vector<1x512xf32> to vector<4x512xf32>
    %45 = arith.addf %28, %44 : vector<4x512xf32>
    %46 = arith.minimumf %26, %45 : vector<4x512xf32>
    %c2 = arith.constant 2 : index
    %c0_21 = arith.constant 0 : index
    %c0_22 = arith.constant 0 : index
    %47 = vector.load %arg1[%c2, %c0_21, %c0_22] : memref<10x4x1024xf32, #tpu.memory_space<vmem>>, vector<1x4x512xf32>
    %48 = vector.shape_cast %47 : vector<1x4x512xf32> to vector<4x512xf32>
    %cst_23 = arith.constant dense<0.000000e+00> : vector<512xf32>
    %49 = vector.multi_reduction <add>, %48, %cst_23 [0] : vector<4x512xf32> to vector<512xf32>
    %50 = vector.shape_cast %49 : vector<512xf32> to vector<1x512xf32>
    %cst_24 = arith.constant 0.000000e+00 : f32
    %51 = vector.broadcast %cst_24 : f32 to vector<1x512xf32>
    %52 = arith.cmpf one, %50, %51 : vector<1x512xf32>
    %cst_25 = arith.constant 0.000000e+00 : f32
    %cst_26 = arith.constant 1.000000e+05 : f32
    %53 = vector.broadcast %cst_25 : f32 to vector<1x512xf32>
    %54 = vector.broadcast %cst_26 : f32 to vector<1x512xf32>
    %55 = arith.select %52, %53, %54 : vector<1x512xi1>, vector<1x512xf32>
    %56 = arith.addf %36, %48 : vector<4x512xf32>
    %cst_27 = arith.constant 1.000000e+00 : f32
    %cst_28 = arith.constant 0.000000e+00 : f32
    %57 = vector.broadcast %cst_27 : f32 to vector<1x512xf32>
    %58 = vector.broadcast %cst_28 : f32 to vector<1x512xf32>
    %59 = arith.select %52, %57, %58 : vector<1x512xi1>, vector<1x512xf32>
    %60 = arith.addf %40, %59 : vector<1x512xf32>
    %61 = vector.broadcast %55 : vector<1x512xf32> to vector<4x512xf32>
    %62 = arith.subf %48, %61 : vector<4x512xf32>
    %63 = arith.maximumf %43, %62 : vector<4x512xf32>
    %64 = vector.broadcast %55 : vector<1x512xf32> to vector<4x512xf32>
    %65 = arith.addf %48, %64 : vector<4x512xf32>
    %66 = arith.minimumf %46, %65 : vector<4x512xf32>
    %c3 = arith.constant 3 : index
    %c0_29 = arith.constant 0 : index
    %c0_30 = arith.constant 0 : index
    %67 = vector.load %arg1[%c3, %c0_29, %c0_30] : memref<10x4x1024xf32, #tpu.memory_space<vmem>>, vector<1x4x512xf32>
    %68 = vector.shape_cast %67 : vector<1x4x512xf32> to vector<4x512xf32>
    %cst_31 = arith.constant dense<0.000000e+00> : vector<512xf32>
    %69 = vector.multi_reduction <add>, %68, %cst_31 [0] : vector<4x512xf32> to vector<512xf32>
    %70 = vector.shape_cast %69 : vector<512xf32> to vector<1x512xf32>
    %cst_32 = arith.constant 0.000000e+00 : f32
    %71 = vector.broadcast %cst_32 : f32 to vector<1x512xf32>
    %72 = arith.cmpf one, %70, %71 : vector<1x512xf32>
    %cst_33 = arith.constant 0.000000e+00 : f32
    %cst_34 = arith.constant 1.000000e+05 : f32
    %73 = vector.broadcast %cst_33 : f32 to vector<1x512xf32>
    %74 = vector.broadcast %cst_34 : f32 to vector<1x512xf32>
    %75 = arith.select %72, %73, %74 : vector<1x512xi1>, vector<1x512xf32>
    %76 = arith.addf %56, %68 : vector<4x512xf32>
    %cst_35 = arith.constant 1.000000e+00 : f32
    %cst_36 = arith.constant 0.000000e+00 : f32
    %77 = vector.broadcast %cst_35 : f32 to vector<1x512xf32>
    %78 = vector.broadcast %cst_36 : f32 to vector<1x512xf32>
    %79 = arith.select %72, %77, %78 : vector<1x512xi1>, vector<1x512xf32>
    %80 = arith.addf %60, %79 : vector<1x512xf32>
    %81 = vector.broadcast %75 : vector<1x512xf32> to vector<4x512xf32>
    %82 = arith.subf %68, %81 : vector<4x512xf32>
    %83 = arith.maximumf %63, %82 : vector<4x512xf32>
    %84 = vector.broadcast %75 : vector<1x512xf32> to vector<4x512xf32>
    %85 = arith.addf %68, %84 : vector<4x512xf32>
    %86 = arith.minimumf %66, %85 : vector<4x512xf32>
    %c4 = arith.constant 4 : index
    %c0_37 = arith.constant 0 : index
    %c0_38 = arith.constant 0 : index
    %87 = vector.load %arg1[%c4, %c0_37, %c0_38] : memref<10x4x1024xf32, #tpu.memory_space<vmem>>, vector<1x4x512xf32>
    %88 = vector.shape_cast %87 : vector<1x4x512xf32> to vector<4x512xf32>
    %cst_39 = arith.constant dense<0.000000e+00> : vector<512xf32>
    %89 = vector.multi_reduction <add>, %88, %cst_39 [0] : vector<4x512xf32> to vector<512xf32>
    %90 = vector.shape_cast %89 : vector<512xf32> to vector<1x512xf32>
    %cst_40 = arith.constant 0.000000e+00 : f32
    %91 = vector.broadcast %cst_40 : f32 to vector<1x512xf32>
    %92 = arith.cmpf one, %90, %91 : vector<1x512xf32>
    %cst_41 = arith.constant 0.000000e+00 : f32
    %cst_42 = arith.constant 1.000000e+05 : f32
    %93 = vector.broadcast %cst_41 : f32 to vector<1x512xf32>
    %94 = vector.broadcast %cst_42 : f32 to vector<1x512xf32>
    %95 = arith.select %92, %93, %94 : vector<1x512xi1>, vector<1x512xf32>
    %96 = arith.addf %76, %88 : vector<4x512xf32>
    %cst_43 = arith.constant 1.000000e+00 : f32
    %cst_44 = arith.constant 0.000000e+00 : f32
    %97 = vector.broadcast %cst_43 : f32 to vector<1x512xf32>
    %98 = vector.broadcast %cst_44 : f32 to vector<1x512xf32>
    %99 = arith.select %92, %97, %98 : vector<1x512xi1>, vector<1x512xf32>
    %100 = arith.addf %80, %99 : vector<1x512xf32>
    %101 = vector.broadcast %95 : vector<1x512xf32> to vector<4x512xf32>
    %102 = arith.subf %88, %101 : vector<4x512xf32>
    %103 = arith.maximumf %83, %102 : vector<4x512xf32>
    %104 = vector.broadcast %95 : vector<1x512xf32> to vector<4x512xf32>
    %105 = arith.addf %88, %104 : vector<4x512xf32>
    %106 = arith.minimumf %86, %105 : vector<4x512xf32>
    %c5 = arith.constant 5 : index
    %c0_45 = arith.constant 0 : index
    %c0_46 = arith.constant 0 : index
    %107 = vector.load %arg1[%c5, %c0_45, %c0_46] : memref<10x4x1024xf32, #tpu.memory_space<vmem>>, vector<1x4x512xf32>
    %108 = vector.shape_cast %107 : vector<1x4x512xf32> to vector<4x512xf32>
    %cst_47 = arith.constant dense<0.000000e+00> : vector<512xf32>
    %109 = vector.multi_reduction <add>, %108, %cst_47 [0] : vector<4x512xf32> to vector<512xf32>
    %110 = vector.shape_cast %109 : vector<512xf32> to vector<1x512xf32>
    %cst_48 = arith.constant 0.000000e+00 : f32
    %111 = vector.broadcast %cst_48 : f32 to vector<1x512xf32>
    %112 = arith.cmpf one, %110, %111 : vector<1x512xf32>
    %cst_49 = arith.constant 0.000000e+00 : f32
    %cst_50 = arith.constant 1.000000e+05 : f32
    %113 = vector.broadcast %cst_49 : f32 to vector<1x512xf32>
    %114 = vector.broadcast %cst_50 : f32 to vector<1x512xf32>
    %115 = arith.select %112, %113, %114 : vector<1x512xi1>, vector<1x512xf32>
    %116 = arith.addf %96, %108 : vector<4x512xf32>
    %cst_51 = arith.constant 1.000000e+00 : f32
    %cst_52 = arith.constant 0.000000e+00 : f32
    %117 = vector.broadcast %cst_51 : f32 to vector<1x512xf32>
    %118 = vector.broadcast %cst_52 : f32 to vector<1x512xf32>
    %119 = arith.select %112, %117, %118 : vector<1x512xi1>, vector<1x512xf32>
    %120 = arith.addf %100, %119 : vector<1x512xf32>
    %121 = vector.broadcast %115 : vector<1x512xf32> to vector<4x512xf32>
    %122 = arith.subf %108, %121 : vector<4x512xf32>
    %123 = arith.maximumf %103, %122 : vector<4x512xf32>
    %124 = vector.broadcast %115 : vector<1x512xf32> to vector<4x512xf32>
    %125 = arith.addf %108, %124 : vector<4x512xf32>
    %126 = arith.minimumf %106, %125 : vector<4x512xf32>
    %c6 = arith.constant 6 : index
    %c0_53 = arith.constant 0 : index
    %c0_54 = arith.constant 0 : index
    %127 = vector.load %arg1[%c6, %c0_53, %c0_54] : memref<10x4x1024xf32, #tpu.memory_space<vmem>>, vector<1x4x512xf32>
    %128 = vector.shape_cast %127 : vector<1x4x512xf32> to vector<4x512xf32>
    %cst_55 = arith.constant dense<0.000000e+00> : vector<512xf32>
    %129 = vector.multi_reduction <add>, %128, %cst_55 [0] : vector<4x512xf32> to vector<512xf32>
    %130 = vector.shape_cast %129 : vector<512xf32> to vector<1x512xf32>
    %cst_56 = arith.constant 0.000000e+00 : f32
    %131 = vector.broadcast %cst_56 : f32 to vector<1x512xf32>
    %132 = arith.cmpf one, %130, %131 : vector<1x512xf32>
    %cst_57 = arith.constant 0.000000e+00 : f32
    %cst_58 = arith.constant 1.000000e+05 : f32
    %133 = vector.broadcast %cst_57 : f32 to vector<1x512xf32>
    %134 = vector.broadcast %cst_58 : f32 to vector<1x512xf32>
    %135 = arith.select %132, %133, %134 : vector<1x512xi1>, vector<1x512xf32>
    %136 = arith.addf %116, %128 : vector<4x512xf32>
    %cst_59 = arith.constant 1.000000e+00 : f32
    %cst_60 = arith.constant 0.000000e+00 : f32
    %137 = vector.broadcast %cst_59 : f32 to vector<1x512xf32>
    %138 = vector.broadcast %cst_60 : f32 to vector<1x512xf32>
    %139 = arith.select %132, %137, %138 : vector<1x512xi1>, vector<1x512xf32>
    %140 = arith.addf %120, %139 : vector<1x512xf32>
    %141 = vector.broadcast %135 : vector<1x512xf32> to vector<4x512xf32>
    %142 = arith.subf %128, %141 : vector<4x512xf32>
    %143 = arith.maximumf %123, %142 : vector<4x512xf32>
    %144 = vector.broadcast %135 : vector<1x512xf32> to vector<4x512xf32>
    %145 = arith.addf %128, %144 : vector<4x512xf32>
    %146 = arith.minimumf %126, %145 : vector<4x512xf32>
    %c7 = arith.constant 7 : index
    %c0_61 = arith.constant 0 : index
    %c0_62 = arith.constant 0 : index
    %147 = vector.load %arg1[%c7, %c0_61, %c0_62] : memref<10x4x1024xf32, #tpu.memory_space<vmem>>, vector<1x4x512xf32>
    %148 = vector.shape_cast %147 : vector<1x4x512xf32> to vector<4x512xf32>
    %cst_63 = arith.constant dense<0.000000e+00> : vector<512xf32>
    %149 = vector.multi_reduction <add>, %148, %cst_63 [0] : vector<4x512xf32> to vector<512xf32>
    %150 = vector.shape_cast %149 : vector<512xf32> to vector<1x512xf32>
    %cst_64 = arith.constant 0.000000e+00 : f32
    %151 = vector.broadcast %cst_64 : f32 to vector<1x512xf32>
    %152 = arith.cmpf one, %150, %151 : vector<1x512xf32>
    %cst_65 = arith.constant 0.000000e+00 : f32
    %cst_66 = arith.constant 1.000000e+05 : f32
    %153 = vector.broadcast %cst_65 : f32 to vector<1x512xf32>
    %154 = vector.broadcast %cst_66 : f32 to vector<1x512xf32>
    %155 = arith.select %152, %153, %154 : vector<1x512xi1>, vector<1x512xf32>
    %156 = arith.addf %136, %148 : vector<4x512xf32>
    %cst_67 = arith.constant 1.000000e+00 : f32
    %cst_68 = arith.constant 0.000000e+00 : f32
    %157 = vector.broadcast %cst_67 : f32 to vector<1x512xf32>
    %158 = vector.broadcast %cst_68 : f32 to vector<1x512xf32>
    %159 = arith.select %152, %157, %158 : vector<1x512xi1>, vector<1x512xf32>
    %160 = arith.addf %140, %159 : vector<1x512xf32>
    %161 = vector.broadcast %155 : vector<1x512xf32> to vector<4x512xf32>
    %162 = arith.subf %148, %161 : vector<4x512xf32>
    %163 = arith.maximumf %143, %162 : vector<4x512xf32>
    %164 = vector.broadcast %155 : vector<1x512xf32> to vector<4x512xf32>
    %165 = arith.addf %148, %164 : vector<4x512xf32>
    %166 = arith.minimumf %146, %165 : vector<4x512xf32>
    %c8 = arith.constant 8 : index
    %c0_69 = arith.constant 0 : index
    %c0_70 = arith.constant 0 : index
    %167 = vector.load %arg1[%c8, %c0_69, %c0_70] : memref<10x4x1024xf32, #tpu.memory_space<vmem>>, vector<1x4x512xf32>
    %168 = vector.shape_cast %167 : vector<1x4x512xf32> to vector<4x512xf32>
    %cst_71 = arith.constant dense<0.000000e+00> : vector<512xf32>
    %169 = vector.multi_reduction <add>, %168, %cst_71 [0] : vector<4x512xf32> to vector<512xf32>
    %170 = vector.shape_cast %169 : vector<512xf32> to vector<1x512xf32>
    %cst_72 = arith.constant 0.000000e+00 : f32
    %171 = vector.broadcast %cst_72 : f32 to vector<1x512xf32>
    %172 = arith.cmpf one, %170, %171 : vector<1x512xf32>
    %cst_73 = arith.constant 0.000000e+00 : f32
    %cst_74 = arith.constant 1.000000e+05 : f32
    %173 = vector.broadcast %cst_73 : f32 to vector<1x512xf32>
    %174 = vector.broadcast %cst_74 : f32 to vector<1x512xf32>
    %175 = arith.select %172, %173, %174 : vector<1x512xi1>, vector<1x512xf32>
    %176 = arith.addf %156, %168 : vector<4x512xf32>
    %cst_75 = arith.constant 1.000000e+00 : f32
    %cst_76 = arith.constant 0.000000e+00 : f32
    %177 = vector.broadcast %cst_75 : f32 to vector<1x512xf32>
    %178 = vector.broadcast %cst_76 : f32 to vector<1x512xf32>
    %179 = arith.select %172, %177, %178 : vector<1x512xi1>, vector<1x512xf32>
    %180 = arith.addf %160, %179 : vector<1x512xf32>
    %181 = vector.broadcast %175 : vector<1x512xf32> to vector<4x512xf32>
    %182 = arith.subf %168, %181 : vector<4x512xf32>
    %183 = arith.maximumf %163, %182 : vector<4x512xf32>
    %184 = vector.broadcast %175 : vector<1x512xf32> to vector<4x512xf32>
    %185 = arith.addf %168, %184 : vector<4x512xf32>
    %186 = arith.minimumf %166, %185 : vector<4x512xf32>
    %c9 = arith.constant 9 : index
    %c0_77 = arith.constant 0 : index
    %c0_78 = arith.constant 0 : index
    %187 = vector.load %arg1[%c9, %c0_77, %c0_78] : memref<10x4x1024xf32, #tpu.memory_space<vmem>>, vector<1x4x512xf32>
    %188 = vector.shape_cast %187 : vector<1x4x512xf32> to vector<4x512xf32>
    %cst_79 = arith.constant dense<0.000000e+00> : vector<512xf32>
    %189 = vector.multi_reduction <add>, %188, %cst_79 [0] : vector<4x512xf32> to vector<512xf32>
    %190 = vector.shape_cast %189 : vector<512xf32> to vector<1x512xf32>
    %cst_80 = arith.constant 0.000000e+00 : f32
    %191 = vector.broadcast %cst_80 : f32 to vector<1x512xf32>
    %192 = arith.cmpf one, %190, %191 : vector<1x512xf32>
    %cst_81 = arith.constant 0.000000e+00 : f32
    %cst_82 = arith.constant 1.000000e+05 : f32
    %193 = vector.broadcast %cst_81 : f32 to vector<1x512xf32>
    %194 = vector.broadcast %cst_82 : f32 to vector<1x512xf32>
    %195 = arith.select %192, %193, %194 : vector<1x512xi1>, vector<1x512xf32>
    %196 = arith.addf %176, %188 : vector<4x512xf32>
    %cst_83 = arith.constant 1.000000e+00 : f32
    %cst_84 = arith.constant 0.000000e+00 : f32
    %197 = vector.broadcast %cst_83 : f32 to vector<1x512xf32>
    %198 = vector.broadcast %cst_84 : f32 to vector<1x512xf32>
    %199 = arith.select %192, %197, %198 : vector<1x512xi1>, vector<1x512xf32>
    %200 = arith.addf %180, %199 : vector<1x512xf32>
    %201 = vector.broadcast %195 : vector<1x512xf32> to vector<4x512xf32>
    %202 = arith.subf %188, %201 : vector<4x512xf32>
    %203 = arith.maximumf %183, %202 : vector<4x512xf32>
    %204 = vector.broadcast %195 : vector<1x512xf32> to vector<4x512xf32>
    %205 = arith.addf %188, %204 : vector<4x512xf32>
    %206 = arith.minimumf %186, %205 : vector<4x512xf32>
    %207 = vector.broadcast %2 : vector<1x512xf32> to vector<4x512xf32>
    %208 = arith.mulf %196, %207 : vector<4x512xf32>
    %cst_85 = arith.constant 1.000000e-01 : f32
    %209 = vector.broadcast %cst_85 : f32 to vector<1x512xf32>
    %210 = arith.mulf %200, %209 : vector<1x512xf32>
    %211 = vector.extract_strided_slice %208 {offsets = [0, 0], sizes = [3, 512], strides = [1, 1]} : vector<4x512xf32> to vector<3x512xf32>
    %cst_86 = arith.constant 0.000000e+00 : f32
    %212 = vector.broadcast %cst_86 : f32 to vector<1x512xf32>
    %c0_87 = arith.constant 0 : index
    %c0_88 = arith.constant 0 : index
    %c0_89 = arith.constant 0 : index
    %213 = vector.load %arg1[%c0_87, %c0_88, %c0_89] : memref<10x4x1024xf32, #tpu.memory_space<vmem>>, vector<1x4x512xf32>
    %214 = vector.shape_cast %213 : vector<1x4x512xf32> to vector<4x512xf32>
    %cst_90 = arith.constant dense<0.000000e+00> : vector<512xf32>
    %215 = vector.multi_reduction <add>, %214, %cst_90 [0] : vector<4x512xf32> to vector<512xf32>
    %216 = vector.shape_cast %215 : vector<512xf32> to vector<1x512xf32>
    %217 = vector.extract_strided_slice %214 {offsets = [0, 0], sizes = [3, 512], strides = [1, 1]} : vector<4x512xf32> to vector<3x512xf32>
    %218 = arith.subf %217, %211 : vector<3x512xf32>
    %219 = arith.mulf %218, %218 : vector<3x512xf32>
    %cst_91 = arith.constant dense<0.000000e+00> : vector<512xf32>
    %220 = vector.multi_reduction <add>, %219, %cst_91 [0] : vector<3x512xf32> to vector<512xf32>
    %221 = vector.shape_cast %220 : vector<512xf32> to vector<1x512xf32>
    %222 = math.sqrt %221 : vector<1x512xf32>
    %cst_92 = arith.constant 0.000000e+00 : f32
    %223 = vector.broadcast %cst_92 : f32 to vector<1x512xf32>
    %224 = arith.cmpf one, %216, %223 : vector<1x512xf32>
    %cst_93 = arith.constant 0.000000e+00 : f32
    %225 = vector.broadcast %cst_93 : f32 to vector<1x512xf32>
    %226 = arith.select %224, %222, %225 : vector<1x512xi1>, vector<1x512xf32>
    %227 = arith.addf %212, %226 : vector<1x512xf32>
    %c1_94 = arith.constant 1 : index
    %c0_95 = arith.constant 0 : index
    %c0_96 = arith.constant 0 : index
    %228 = vector.load %arg1[%c1_94, %c0_95, %c0_96] : memref<10x4x1024xf32, #tpu.memory_space<vmem>>, vector<1x4x512xf32>
    %229 = vector.shape_cast %228 : vector<1x4x512xf32> to vector<4x512xf32>
    %cst_97 = arith.constant dense<0.000000e+00> : vector<512xf32>
    %230 = vector.multi_reduction <add>, %229, %cst_97 [0] : vector<4x512xf32> to vector<512xf32>
    %231 = vector.shape_cast %230 : vector<512xf32> to vector<1x512xf32>
    %232 = vector.extract_strided_slice %229 {offsets = [0, 0], sizes = [3, 512], strides = [1, 1]} : vector<4x512xf32> to vector<3x512xf32>
    %233 = arith.subf %232, %211 : vector<3x512xf32>
    %234 = arith.mulf %233, %233 : vector<3x512xf32>
    %cst_98 = arith.constant dense<0.000000e+00> : vector<512xf32>
    %235 = vector.multi_reduction <add>, %234, %cst_98 [0] : vector<3x512xf32> to vector<512xf32>
    %236 = vector.shape_cast %235 : vector<512xf32> to vector<1x512xf32>
    %237 = math.sqrt %236 : vector<1x512xf32>
    %cst_99 = arith.constant 0.000000e+00 : f32
    %238 = vector.broadcast %cst_99 : f32 to vector<1x512xf32>
    %239 = arith.cmpf one, %231, %238 : vector<1x512xf32>
    %cst_100 = arith.constant 0.000000e+00 : f32
    %240 = vector.broadcast %cst_100 : f32 to vector<1x512xf32>
    %241 = arith.select %239, %237, %240 : vector<1x512xi1>, vector<1x512xf32>
    %242 = arith.addf %227, %241 : vector<1x512xf32>
    %c2_101 = arith.constant 2 : index
    %c0_102 = arith.constant 0 : index
    %c0_103 = arith.constant 0 : index
    %243 = vector.load %arg1[%c2_101, %c0_102, %c0_103] : memref<10x4x1024xf32, #tpu.memory_space<vmem>>, vector<1x4x512xf32>
    %244 = vector.shape_cast %243 : vector<1x4x512xf32> to vector<4x512xf32>
    %cst_104 = arith.constant dense<0.000000e+00> : vector<512xf32>
    %245 = vector.multi_reduction <add>, %244, %cst_104 [0] : vector<4x512xf32> to vector<512xf32>
    %246 = vector.shape_cast %245 : vector<512xf32> to vector<1x512xf32>
    %247 = vector.extract_strided_slice %244 {offsets = [0, 0], sizes = [3, 512], strides = [1, 1]} : vector<4x512xf32> to vector<3x512xf32>
    %248 = arith.subf %247, %211 : vector<3x512xf32>
    %249 = arith.mulf %248, %248 : vector<3x512xf32>
    %cst_105 = arith.constant dense<0.000000e+00> : vector<512xf32>
    %250 = vector.multi_reduction <add>, %249, %cst_105 [0] : vector<3x512xf32> to vector<512xf32>
    %251 = vector.shape_cast %250 : vector<512xf32> to vector<1x512xf32>
    %252 = math.sqrt %251 : vector<1x512xf32>
    %cst_106 = arith.constant 0.000000e+00 : f32
    %253 = vector.broadcast %cst_106 : f32 to vector<1x512xf32>
    %254 = arith.cmpf one, %246, %253 : vector<1x512xf32>
    %cst_107 = arith.constant 0.000000e+00 : f32
    %255 = vector.broadcast %cst_107 : f32 to vector<1x512xf32>
    %256 = arith.select %254, %252, %255 : vector<1x512xi1>, vector<1x512xf32>
    %257 = arith.addf %242, %256 : vector<1x512xf32>
    %c3_108 = arith.constant 3 : index
    %c0_109 = arith.constant 0 : index
    %c0_110 = arith.constant 0 : index
    %258 = vector.load %arg1[%c3_108, %c0_109, %c0_110] : memref<10x4x1024xf32, #tpu.memory_space<vmem>>, vector<1x4x512xf32>
    %259 = vector.shape_cast %258 : vector<1x4x512xf32> to vector<4x512xf32>
    %cst_111 = arith.constant dense<0.000000e+00> : vector<512xf32>
    %260 = vector.multi_reduction <add>, %259, %cst_111 [0] : vector<4x512xf32> to vector<512xf32>
    %261 = vector.shape_cast %260 : vector<512xf32> to vector<1x512xf32>
    %262 = vector.extract_strided_slice %259 {offsets = [0, 0], sizes = [3, 512], strides = [1, 1]} : vector<4x512xf32> to vector<3x512xf32>
    %263 = arith.subf %262, %211 : vector<3x512xf32>
    %264 = arith.mulf %263, %263 : vector<3x512xf32>
    %cst_112 = arith.constant dense<0.000000e+00> : vector<512xf32>
    %265 = vector.multi_reduction <add>, %264, %cst_112 [0] : vector<3x512xf32> to vector<512xf32>
    %266 = vector.shape_cast %265 : vector<512xf32> to vector<1x512xf32>
    %267 = math.sqrt %266 : vector<1x512xf32>
    %cst_113 = arith.constant 0.000000e+00 : f32
    %268 = vector.broadcast %cst_113 : f32 to vector<1x512xf32>
    %269 = arith.cmpf one, %261, %268 : vector<1x512xf32>
    %cst_114 = arith.constant 0.000000e+00 : f32
    %270 = vector.broadcast %cst_114 : f32 to vector<1x512xf32>
    %271 = arith.select %269, %267, %270 : vector<1x512xi1>, vector<1x512xf32>
    %272 = arith.addf %257, %271 : vector<1x512xf32>
    %c4_115 = arith.constant 4 : index
    %c0_116 = arith.constant 0 : index
    %c0_117 = arith.constant 0 : index
    %273 = vector.load %arg1[%c4_115, %c0_116, %c0_117] : memref<10x4x1024xf32, #tpu.memory_space<vmem>>, vector<1x4x512xf32>
    %274 = vector.shape_cast %273 : vector<1x4x512xf32> to vector<4x512xf32>
    %cst_118 = arith.constant dense<0.000000e+00> : vector<512xf32>
    %275 = vector.multi_reduction <add>, %274, %cst_118 [0] : vector<4x512xf32> to vector<512xf32>
    %276 = vector.shape_cast %275 : vector<512xf32> to vector<1x512xf32>
    %277 = vector.extract_strided_slice %274 {offsets = [0, 0], sizes = [3, 512], strides = [1, 1]} : vector<4x512xf32> to vector<3x512xf32>
    %278 = arith.subf %277, %211 : vector<3x512xf32>
    %279 = arith.mulf %278, %278 : vector<3x512xf32>
    %cst_119 = arith.constant dense<0.000000e+00> : vector<512xf32>
    %280 = vector.multi_reduction <add>, %279, %cst_119 [0] : vector<3x512xf32> to vector<512xf32>
    %281 = vector.shape_cast %280 : vector<512xf32> to vector<1x512xf32>
    %282 = math.sqrt %281 : vector<1x512xf32>
    %cst_120 = arith.constant 0.000000e+00 : f32
    %283 = vector.broadcast %cst_120 : f32 to vector<1x512xf32>
    %284 = arith.cmpf one, %276, %283 : vector<1x512xf32>
    %cst_121 = arith.constant 0.000000e+00 : f32
    %285 = vector.broadcast %cst_121 : f32 to vector<1x512xf32>
    %286 = arith.select %284, %282, %285 : vector<1x512xi1>, vector<1x512xf32>
    %287 = arith.addf %272, %286 : vector<1x512xf32>
    %c5_122 = arith.constant 5 : index
    %c0_123 = arith.constant 0 : index
    %c0_124 = arith.constant 0 : index
    %288 = vector.load %arg1[%c5_122, %c0_123, %c0_124] : memref<10x4x1024xf32, #tpu.memory_space<vmem>>, vector<1x4x512xf32>
    %289 = vector.shape_cast %288 : vector<1x4x512xf32> to vector<4x512xf32>
    %cst_125 = arith.constant dense<0.000000e+00> : vector<512xf32>
    %290 = vector.multi_reduction <add>, %289, %cst_125 [0] : vector<4x512xf32> to vector<512xf32>
    %291 = vector.shape_cast %290 : vector<512xf32> to vector<1x512xf32>
    %292 = vector.extract_strided_slice %289 {offsets = [0, 0], sizes = [3, 512], strides = [1, 1]} : vector<4x512xf32> to vector<3x512xf32>
    %293 = arith.subf %292, %211 : vector<3x512xf32>
    %294 = arith.mulf %293, %293 : vector<3x512xf32>
    %cst_126 = arith.constant dense<0.000000e+00> : vector<512xf32>
    %295 = vector.multi_reduction <add>, %294, %cst_126 [0] : vector<3x512xf32> to vector<512xf32>
    %296 = vector.shape_cast %295 : vector<512xf32> to vector<1x512xf32>
    %297 = math.sqrt %296 : vector<1x512xf32>
    %cst_127 = arith.constant 0.000000e+00 : f32
    %298 = vector.broadcast %cst_127 : f32 to vector<1x512xf32>
    %299 = arith.cmpf one, %291, %298 : vector<1x512xf32>
    %cst_128 = arith.constant 0.000000e+00 : f32
    %300 = vector.broadcast %cst_128 : f32 to vector<1x512xf32>
    %301 = arith.select %299, %297, %300 : vector<1x512xi1>, vector<1x512xf32>
    %302 = arith.addf %287, %301 : vector<1x512xf32>
    %c6_129 = arith.constant 6 : index
    %c0_130 = arith.constant 0 : index
    %c0_131 = arith.constant 0 : index
    %303 = vector.load %arg1[%c6_129, %c0_130, %c0_131] : memref<10x4x1024xf32, #tpu.memory_space<vmem>>, vector<1x4x512xf32>
    %304 = vector.shape_cast %303 : vector<1x4x512xf32> to vector<4x512xf32>
    %cst_132 = arith.constant dense<0.000000e+00> : vector<512xf32>
    %305 = vector.multi_reduction <add>, %304, %cst_132 [0] : vector<4x512xf32> to vector<512xf32>
    %306 = vector.shape_cast %305 : vector<512xf32> to vector<1x512xf32>
    %307 = vector.extract_strided_slice %304 {offsets = [0, 0], sizes = [3, 512], strides = [1, 1]} : vector<4x512xf32> to vector<3x512xf32>
    %308 = arith.subf %307, %211 : vector<3x512xf32>
    %309 = arith.mulf %308, %308 : vector<3x512xf32>
    %cst_133 = arith.constant dense<0.000000e+00> : vector<512xf32>
    %310 = vector.multi_reduction <add>, %309, %cst_133 [0] : vector<3x512xf32> to vector<512xf32>
    %311 = vector.shape_cast %310 : vector<512xf32> to vector<1x512xf32>
    %312 = math.sqrt %311 : vector<1x512xf32>
    %cst_134 = arith.constant 0.000000e+00 : f32
    %313 = vector.broadcast %cst_134 : f32 to vector<1x512xf32>
    %314 = arith.cmpf one, %306, %313 : vector<1x512xf32>
    %cst_135 = arith.constant 0.000000e+00 : f32
    %315 = vector.broadcast %cst_135 : f32 to vector<1x512xf32>
    %316 = arith.select %314, %312, %315 : vector<1x512xi1>, vector<1x512xf32>
    %317 = arith.addf %302, %316 : vector<1x512xf32>
    %c7_136 = arith.constant 7 : index
    %c0_137 = arith.constant 0 : index
    %c0_138 = arith.constant 0 : index
    %318 = vector.load %arg1[%c7_136, %c0_137, %c0_138] : memref<10x4x1024xf32, #tpu.memory_space<vmem>>, vector<1x4x512xf32>
    %319 = vector.shape_cast %318 : vector<1x4x512xf32> to vector<4x512xf32>
    %cst_139 = arith.constant dense<0.000000e+00> : vector<512xf32>
    %320 = vector.multi_reduction <add>, %319, %cst_139 [0] : vector<4x512xf32> to vector<512xf32>
    %321 = vector.shape_cast %320 : vector<512xf32> to vector<1x512xf32>
    %322 = vector.extract_strided_slice %319 {offsets = [0, 0], sizes = [3, 512], strides = [1, 1]} : vector<4x512xf32> to vector<3x512xf32>
    %323 = arith.subf %322, %211 : vector<3x512xf32>
    %324 = arith.mulf %323, %323 : vector<3x512xf32>
    %cst_140 = arith.constant dense<0.000000e+00> : vector<512xf32>
    %325 = vector.multi_reduction <add>, %324, %cst_140 [0] : vector<3x512xf32> to vector<512xf32>
    %326 = vector.shape_cast %325 : vector<512xf32> to vector<1x512xf32>
    %327 = math.sqrt %326 : vector<1x512xf32>
    %cst_141 = arith.constant 0.000000e+00 : f32
    %328 = vector.broadcast %cst_141 : f32 to vector<1x512xf32>
    %329 = arith.cmpf one, %321, %328 : vector<1x512xf32>
    %cst_142 = arith.constant 0.000000e+00 : f32
    %330 = vector.broadcast %cst_142 : f32 to vector<1x512xf32>
    %331 = arith.select %329, %327, %330 : vector<1x512xi1>, vector<1x512xf32>
    %332 = arith.addf %317, %331 : vector<1x512xf32>
    %c8_143 = arith.constant 8 : index
    %c0_144 = arith.constant 0 : index
    %c0_145 = arith.constant 0 : index
    %333 = vector.load %arg1[%c8_143, %c0_144, %c0_145] : memref<10x4x1024xf32, #tpu.memory_space<vmem>>, vector<1x4x512xf32>
    %334 = vector.shape_cast %333 : vector<1x4x512xf32> to vector<4x512xf32>
    %cst_146 = arith.constant dense<0.000000e+00> : vector<512xf32>
    %335 = vector.multi_reduction <add>, %334, %cst_146 [0] : vector<4x512xf32> to vector<512xf32>
    %336 = vector.shape_cast %335 : vector<512xf32> to vector<1x512xf32>
    %337 = vector.extract_strided_slice %334 {offsets = [0, 0], sizes = [3, 512], strides = [1, 1]} : vector<4x512xf32> to vector<3x512xf32>
    %338 = arith.subf %337, %211 : vector<3x512xf32>
    %339 = arith.mulf %338, %338 : vector<3x512xf32>
    %cst_147 = arith.constant dense<0.000000e+00> : vector<512xf32>
    %340 = vector.multi_reduction <add>, %339, %cst_147 [0] : vector<3x512xf32> to vector<512xf32>
    %341 = vector.shape_cast %340 : vector<512xf32> to vector<1x512xf32>
    %342 = math.sqrt %341 : vector<1x512xf32>
    %cst_148 = arith.constant 0.000000e+00 : f32
    %343 = vector.broadcast %cst_148 : f32 to vector<1x512xf32>
    %344 = arith.cmpf one, %336, %343 : vector<1x512xf32>
    %cst_149 = arith.constant 0.000000e+00 : f32
    %345 = vector.broadcast %cst_149 : f32 to vector<1x512xf32>
    %346 = arith.select %344, %342, %345 : vector<1x512xi1>, vector<1x512xf32>
    %347 = arith.addf %332, %346 : vector<1x512xf32>
    %c9_150 = arith.constant 9 : index
    %c0_151 = arith.constant 0 : index
    %c0_152 = arith.constant 0 : index
    %348 = vector.load %arg1[%c9_150, %c0_151, %c0_152] : memref<10x4x1024xf32, #tpu.memory_space<vmem>>, vector<1x4x512xf32>
    %349 = vector.shape_cast %348 : vector<1x4x512xf32> to vector<4x512xf32>
    %cst_153 = arith.constant dense<0.000000e+00> : vector<512xf32>
    %350 = vector.multi_reduction <add>, %349, %cst_153 [0] : vector<4x512xf32> to vector<512xf32>
    %351 = vector.shape_cast %350 : vector<512xf32> to vector<1x512xf32>
    %352 = vector.extract_strided_slice %349 {offsets = [0, 0], sizes = [3, 512], strides = [1, 1]} : vector<4x512xf32> to vector<3x512xf32>
    %353 = arith.subf %352, %211 : vector<3x512xf32>
    %354 = arith.mulf %353, %353 : vector<3x512xf32>
    %cst_154 = arith.constant dense<0.000000e+00> : vector<512xf32>
    %355 = vector.multi_reduction <add>, %354, %cst_154 [0] : vector<3x512xf32> to vector<512xf32>
    %356 = vector.shape_cast %355 : vector<512xf32> to vector<1x512xf32>
    %357 = math.sqrt %356 : vector<1x512xf32>
    %cst_155 = arith.constant 0.000000e+00 : f32
    %358 = vector.broadcast %cst_155 : f32 to vector<1x512xf32>
    %359 = arith.cmpf one, %351, %358 : vector<1x512xf32>
    %cst_156 = arith.constant 0.000000e+00 : f32
    %360 = vector.broadcast %cst_156 : f32 to vector<1x512xf32>
    %361 = arith.select %359, %357, %360 : vector<1x512xi1>, vector<1x512xf32>
    %362 = arith.addf %347, %361 : vector<1x512xf32>
    %363 = arith.mulf %362, %2 : vector<1x512xf32>
    %c0_157 = arith.constant 0 : index
    %c0_158 = arith.constant 0 : index
    %364 = vector.load %arg3[%c0_157, %c0_158] : memref<12x1024xf32, #tpu.memory_space<vmem>>, vector<3x512xf32>
    tpu.vector_store %arg3[%c0_157, %c0_158], %211 {strides = array<i32>} : memref<12x1024xf32, #tpu.memory_space<vmem>>, vector<3x512xf32>,
    %365 = vector.extract_strided_slice %203 {offsets = [0, 0], sizes = [3, 512], strides = [1, 1]} : vector<4x512xf32> to vector<3x512xf32>
    %c3_159 = arith.constant 3 : index
    %c0_160 = arith.constant 0 : index
    %366 = vector.load %arg3[%c3_159, %c0_160] : memref<12x1024xf32, #tpu.memory_space<vmem>>, vector<3x512xf32>
    tpu.vector_store %arg3[%c3_159, %c0_160], %365 {strides = array<i32>} : memref<12x1024xf32, #tpu.memory_space<vmem>>, vector<3x512xf32>,
    %367 = vector.extract_strided_slice %206 {offsets = [0, 0], sizes = [3, 512], strides = [1, 1]} : vector<4x512xf32> to vector<3x512xf32>
    %c6_161 = arith.constant 6 : index
    %c0_162 = arith.constant 0 : index
    %368 = vector.load %arg3[%c6_161, %c0_162] : memref<12x1024xf32, #tpu.memory_space<vmem>>, vector<3x512xf32>
    tpu.vector_store %arg3[%c6_161, %c0_162], %367 {strides = array<i32>} : memref<12x1024xf32, #tpu.memory_space<vmem>>, vector<3x512xf32>,
    %369 = vector.extract_strided_slice %208 {offsets = [3, 0], sizes = [1, 512], strides = [1, 1]} : vector<4x512xf32> to vector<1x512xf32>
    %c9_163 = arith.constant 9 : index
    %c0_164 = arith.constant 0 : index
    %370 = vector.load %arg3[%c9_163, %c0_164] : memref<12x1024xf32, #tpu.memory_space<vmem>>, vector<1x512xf32>
    tpu.vector_store %arg3[%c9_163, %c0_164], %369 {strides = array<i32>} : memref<12x1024xf32, #tpu.memory_space<vmem>>, vector<1x512xf32>,
    %c10 = arith.constant 10 : index
    %c0_165 = arith.constant 0 : index
    %371 = vector.load %arg3[%c10, %c0_165] : memref<12x1024xf32, #tpu.memory_space<vmem>>, vector<1x512xf32>
    tpu.vector_store %arg3[%c10, %c0_165], %210 {strides = array<i32>} : memref<12x1024xf32, #tpu.memory_space<vmem>>, vector<1x512xf32>,
    %c11 = arith.constant 11 : index
    %c0_166 = arith.constant 0 : index
    %372 = vector.load %arg3[%c11, %c0_166] : memref<12x1024xf32, #tpu.memory_space<vmem>>, vector<1x512xf32>
    tpu.vector_store %arg3[%c11, %c0_166], %363 {strides = array<i32>} : memref<12x1024xf32, #tpu.memory_space<vmem>>, vector<1x512xf32>,
    %c0_167 = arith.constant 0 : index
    %c512 = arith.constant 512 : index
    %373 = vector.load %arg2[%c0_167, %c512] : memref<1x1024xi32, #tpu.memory_space<vmem>>, vector<1x512xi32>
    %374 = arith.sitofp %373 : vector<1x512xi32> to vector<1x512xf32>
    %375 = tpu.reciprocal %374 : vector<1x512xf32> -> vector<1x512xf32>
    %cst_168 = arith.constant 0.000000e+00 : f32
    %376 = vector.broadcast %cst_168 : f32 to vector<4x512xf32>
    %cst_169 = arith.constant -1.000000e+05 : f32
    %377 = vector.broadcast %cst_169 : f32 to vector<4x512xf32>
    %cst_170 = arith.constant 1.000000e+05 : f32
    %378 = vector.broadcast %cst_170 : f32 to vector<4x512xf32>
    %cst_171 = arith.constant 0.000000e+00 : f32
    %379 = vector.broadcast %cst_171 : f32 to vector<1x512xf32>
    %c0_172 = arith.constant 0 : index
    %c0_173 = arith.constant 0 : index
    %c512_174 = arith.constant 512 : index
    %380 = vector.load %arg1[%c0_172, %c0_173, %c512_174] : memref<10x4x1024xf32, #tpu.memory_space<vmem>>, vector<1x4x512xf32>
    %381 = vector.shape_cast %380 : vector<1x4x512xf32> to vector<4x512xf32>
    %cst_175 = arith.constant dense<0.000000e+00> : vector<512xf32>
    %382 = vector.multi_reduction <add>, %381, %cst_175 [0] : vector<4x512xf32> to vector<512xf32>
    %383 = vector.shape_cast %382 : vector<512xf32> to vector<1x512xf32>
    %cst_176 = arith.constant 0.000000e+00 : f32
    %384 = vector.broadcast %cst_176 : f32 to vector<1x512xf32>
    %385 = arith.cmpf one, %383, %384 : vector<1x512xf32>
    %cst_177 = arith.constant 0.000000e+00 : f32
    %cst_178 = arith.constant 1.000000e+05 : f32
    %386 = vector.broadcast %cst_177 : f32 to vector<1x512xf32>
    %387 = vector.broadcast %cst_178 : f32 to vector<1x512xf32>
    %388 = arith.select %385, %386, %387 : vector<1x512xi1>, vector<1x512xf32>
    %389 = arith.addf %376, %381 : vector<4x512xf32>
    %cst_179 = arith.constant 1.000000e+00 : f32
    %cst_180 = arith.constant 0.000000e+00 : f32
    %390 = vector.broadcast %cst_179 : f32 to vector<1x512xf32>
    %391 = vector.broadcast %cst_180 : f32 to vector<1x512xf32>
    %392 = arith.select %385, %390, %391 : vector<1x512xi1>, vector<1x512xf32>
    %393 = arith.addf %379, %392 : vector<1x512xf32>
    %394 = vector.broadcast %388 : vector<1x512xf32> to vector<4x512xf32>
    %395 = arith.subf %381, %394 : vector<4x512xf32>
    %396 = arith.maximumf %377, %395 : vector<4x512xf32>
    %397 = vector.broadcast %388 : vector<1x512xf32> to vector<4x512xf32>
    %398 = arith.addf %381, %397 : vector<4x512xf32>
    %399 = arith.minimumf %378, %398 : vector<4x512xf32>
    %c1_181 = arith.constant 1 : index
    %c0_182 = arith.constant 0 : index
    %c512_183 = arith.constant 512 : index
    %400 = vector.load %arg1[%c1_181, %c0_182, %c512_183] : memref<10x4x1024xf32, #tpu.memory_space<vmem>>, vector<1x4x512xf32>
    %401 = vector.shape_cast %400 : vector<1x4x512xf32> to vector<4x512xf32>
    %cst_184 = arith.constant dense<0.000000e+00> : vector<512xf32>
    %402 = vector.multi_reduction <add>, %401, %cst_184 [0] : vector<4x512xf32> to vector<512xf32>
    %403 = vector.shape_cast %402 : vector<512xf32> to vector<1x512xf32>
    %cst_185 = arith.constant 0.000000e+00 : f32
    %404 = vector.broadcast %cst_185 : f32 to vector<1x512xf32>
    %405 = arith.cmpf one, %403, %404 : vector<1x512xf32>
    %cst_186 = arith.constant 0.000000e+00 : f32
    %cst_187 = arith.constant 1.000000e+05 : f32
    %406 = vector.broadcast %cst_186 : f32 to vector<1x512xf32>
    %407 = vector.broadcast %cst_187 : f32 to vector<1x512xf32>
    %408 = arith.select %405, %406, %407 : vector<1x512xi1>, vector<1x512xf32>
    %409 = arith.addf %389, %401 : vector<4x512xf32>
    %cst_188 = arith.constant 1.000000e+00 : f32
    %cst_189 = arith.constant 0.000000e+00 : f32
    %410 = vector.broadcast %cst_188 : f32 to vector<1x512xf32>
    %411 = vector.broadcast %cst_189 : f32 to vector<1x512xf32>
    %412 = arith.select %405, %410, %411 : vector<1x512xi1>, vector<1x512xf32>
    %413 = arith.addf %393, %412 : vector<1x512xf32>
    %414 = vector.broadcast %408 : vector<1x512xf32> to vector<4x512xf32>
    %415 = arith.subf %401, %414 : vector<4x512xf32>
    %416 = arith.maximumf %396, %415 : vector<4x512xf32>
    %417 = vector.broadcast %408 : vector<1x512xf32> to vector<4x512xf32>
    %418 = arith.addf %401, %417 : vector<4x512xf32>
    %419 = arith.minimumf %399, %418 : vector<4x512xf32>
    %c2_190 = arith.constant 2 : index
    %c0_191 = arith.constant 0 : index
    %c512_192 = arith.constant 512 : index
    %420 = vector.load %arg1[%c2_190, %c0_191, %c512_192] : memref<10x4x1024xf32, #tpu.memory_space<vmem>>, vector<1x4x512xf32>
    %421 = vector.shape_cast %420 : vector<1x4x512xf32> to vector<4x512xf32>
    %cst_193 = arith.constant dense<0.000000e+00> : vector<512xf32>
    %422 = vector.multi_reduction <add>, %421, %cst_193 [0] : vector<4x512xf32> to vector<512xf32>
    %423 = vector.shape_cast %422 : vector<512xf32> to vector<1x512xf32>
    %cst_194 = arith.constant 0.000000e+00 : f32
    %424 = vector.broadcast %cst_194 : f32 to vector<1x512xf32>
    %425 = arith.cmpf one, %423, %424 : vector<1x512xf32>
    %cst_195 = arith.constant 0.000000e+00 : f32
    %cst_196 = arith.constant 1.000000e+05 : f32
    %426 = vector.broadcast %cst_195 : f32 to vector<1x512xf32>
    %427 = vector.broadcast %cst_196 : f32 to vector<1x512xf32>
    %428 = arith.select %425, %426, %427 : vector<1x512xi1>, vector<1x512xf32>
    %429 = arith.addf %409, %421 : vector<4x512xf32>
    %cst_197 = arith.constant 1.000000e+00 : f32
    %cst_198 = arith.constant 0.000000e+00 : f32
    %430 = vector.broadcast %cst_197 : f32 to vector<1x512xf32>
    %431 = vector.broadcast %cst_198 : f32 to vector<1x512xf32>
    %432 = arith.select %425, %430, %431 : vector<1x512xi1>, vector<1x512xf32>
    %433 = arith.addf %413, %432 : vector<1x512xf32>
    %434 = vector.broadcast %428 : vector<1x512xf32> to vector<4x512xf32>
    %435 = arith.subf %421, %434 : vector<4x512xf32>
    %436 = arith.maximumf %416, %435 : vector<4x512xf32>
    %437 = vector.broadcast %428 : vector<1x512xf32> to vector<4x512xf32>
    %438 = arith.addf %421, %437 : vector<4x512xf32>
    %439 = arith.minimumf %419, %438 : vector<4x512xf32>
    %c3_199 = arith.constant 3 : index
    %c0_200 = arith.constant 0 : index
    %c512_201 = arith.constant 512 : index
    %440 = vector.load %arg1[%c3_199, %c0_200, %c512_201] : memref<10x4x1024xf32, #tpu.memory_space<vmem>>, vector<1x4x512xf32>
    %441 = vector.shape_cast %440 : vector<1x4x512xf32> to vector<4x512xf32>
    %cst_202 = arith.constant dense<0.000000e+00> : vector<512xf32>
    %442 = vector.multi_reduction <add>, %441, %cst_202 [0] : vector<4x512xf32> to vector<512xf32>
    %443 = vector.shape_cast %442 : vector<512xf32> to vector<1x512xf32>
    %cst_203 = arith.constant 0.000000e+00 : f32
    %444 = vector.broadcast %cst_203 : f32 to vector<1x512xf32>
    %445 = arith.cmpf one, %443, %444 : vector<1x512xf32>
    %cst_204 = arith.constant 0.000000e+00 : f32
    %cst_205 = arith.constant 1.000000e+05 : f32
    %446 = vector.broadcast %cst_204 : f32 to vector<1x512xf32>
    %447 = vector.broadcast %cst_205 : f32 to vector<1x512xf32>
    %448 = arith.select %445, %446, %447 : vector<1x512xi1>, vector<1x512xf32>
    %449 = arith.addf %429, %441 : vector<4x512xf32>
    %cst_206 = arith.constant 1.000000e+00 : f32
    %cst_207 = arith.constant 0.000000e+00 : f32
    %450 = vector.broadcast %cst_206 : f32 to vector<1x512xf32>
    %451 = vector.broadcast %cst_207 : f32 to vector<1x512xf32>
    %452 = arith.select %445, %450, %451 : vector<1x512xi1>, vector<1x512xf32>
    %453 = arith.addf %433, %452 : vector<1x512xf32>
    %454 = vector.broadcast %448 : vector<1x512xf32> to vector<4x512xf32>
    %455 = arith.subf %441, %454 : vector<4x512xf32>
    %456 = arith.maximumf %436, %455 : vector<4x512xf32>
    %457 = vector.broadcast %448 : vector<1x512xf32> to vector<4x512xf32>
    %458 = arith.addf %441, %457 : vector<4x512xf32>
    %459 = arith.minimumf %439, %458 : vector<4x512xf32>
    %c4_208 = arith.constant 4 : index
    %c0_209 = arith.constant 0 : index
    %c512_210 = arith.constant 512 : index
    %460 = vector.load %arg1[%c4_208, %c0_209, %c512_210] : memref<10x4x1024xf32, #tpu.memory_space<vmem>>, vector<1x4x512xf32>
    %461 = vector.shape_cast %460 : vector<1x4x512xf32> to vector<4x512xf32>
    %cst_211 = arith.constant dense<0.000000e+00> : vector<512xf32>
    %462 = vector.multi_reduction <add>, %461, %cst_211 [0] : vector<4x512xf32> to vector<512xf32>
    %463 = vector.shape_cast %462 : vector<512xf32> to vector<1x512xf32>
    %cst_212 = arith.constant 0.000000e+00 : f32
    %464 = vector.broadcast %cst_212 : f32 to vector<1x512xf32>
    %465 = arith.cmpf one, %463, %464 : vector<1x512xf32>
    %cst_213 = arith.constant 0.000000e+00 : f32
    %cst_214 = arith.constant 1.000000e+05 : f32
    %466 = vector.broadcast %cst_213 : f32 to vector<1x512xf32>
    %467 = vector.broadcast %cst_214 : f32 to vector<1x512xf32>
    %468 = arith.select %465, %466, %467 : vector<1x512xi1>, vector<1x512xf32>
    %469 = arith.addf %449, %461 : vector<4x512xf32>
    %cst_215 = arith.constant 1.000000e+00 : f32
    %cst_216 = arith.constant 0.000000e+00 : f32
    %470 = vector.broadcast %cst_215 : f32 to vector<1x512xf32>
    %471 = vector.broadcast %cst_216 : f32 to vector<1x512xf32>
    %472 = arith.select %465, %470, %471 : vector<1x512xi1>, vector<1x512xf32>
    %473 = arith.addf %453, %472 : vector<1x512xf32>
    %474 = vector.broadcast %468 : vector<1x512xf32> to vector<4x512xf32>
    %475 = arith.subf %461, %474 : vector<4x512xf32>
    %476 = arith.maximumf %456, %475 : vector<4x512xf32>
    %477 = vector.broadcast %468 : vector<1x512xf32> to vector<4x512xf32>
    %478 = arith.addf %461, %477 : vector<4x512xf32>
    %479 = arith.minimumf %459, %478 : vector<4x512xf32>
    %c5_217 = arith.constant 5 : index
    %c0_218 = arith.constant 0 : index
    %c512_219 = arith.constant 512 : index
    %480 = vector.load %arg1[%c5_217, %c0_218, %c512_219] : memref<10x4x1024xf32, #tpu.memory_space<vmem>>, vector<1x4x512xf32>
    %481 = vector.shape_cast %480 : vector<1x4x512xf32> to vector<4x512xf32>
    %cst_220 = arith.constant dense<0.000000e+00> : vector<512xf32>
    %482 = vector.multi_reduction <add>, %481, %cst_220 [0] : vector<4x512xf32> to vector<512xf32>
    %483 = vector.shape_cast %482 : vector<512xf32> to vector<1x512xf32>
    %cst_221 = arith.constant 0.000000e+00 : f32
    %484 = vector.broadcast %cst_221 : f32 to vector<1x512xf32>
    %485 = arith.cmpf one, %483, %484 : vector<1x512xf32>
    %cst_222 = arith.constant 0.000000e+00 : f32
    %cst_223 = arith.constant 1.000000e+05 : f32
    %486 = vector.broadcast %cst_222 : f32 to vector<1x512xf32>
    %487 = vector.broadcast %cst_223 : f32 to vector<1x512xf32>
    %488 = arith.select %485, %486, %487 : vector<1x512xi1>, vector<1x512xf32>
    %489 = arith.addf %469, %481 : vector<4x512xf32>
    %cst_224 = arith.constant 1.000000e+00 : f32
    %cst_225 = arith.constant 0.000000e+00 : f32
    %490 = vector.broadcast %cst_224 : f32 to vector<1x512xf32>
    %491 = vector.broadcast %cst_225 : f32 to vector<1x512xf32>
    %492 = arith.select %485, %490, %491 : vector<1x512xi1>, vector<1x512xf32>
    %493 = arith.addf %473, %492 : vector<1x512xf32>
    %494 = vector.broadcast %488 : vector<1x512xf32> to vector<4x512xf32>
    %495 = arith.subf %481, %494 : vector<4x512xf32>
    %496 = arith.maximumf %476, %495 : vector<4x512xf32>
    %497 = vector.broadcast %488 : vector<1x512xf32> to vector<4x512xf32>
    %498 = arith.addf %481, %497 : vector<4x512xf32>
    %499 = arith.minimumf %479, %498 : vector<4x512xf32>
    %c6_226 = arith.constant 6 : index
    %c0_227 = arith.constant 0 : index
    %c512_228 = arith.constant 512 : index
    %500 = vector.load %arg1[%c6_226, %c0_227, %c512_228] : memref<10x4x1024xf32, #tpu.memory_space<vmem>>, vector<1x4x512xf32>
    %501 = vector.shape_cast %500 : vector<1x4x512xf32> to vector<4x512xf32>
    %cst_229 = arith.constant dense<0.000000e+00> : vector<512xf32>
    %502 = vector.multi_reduction <add>, %501, %cst_229 [0] : vector<4x512xf32> to vector<512xf32>
    %503 = vector.shape_cast %502 : vector<512xf32> to vector<1x512xf32>
    %cst_230 = arith.constant 0.000000e+00 : f32
    %504 = vector.broadcast %cst_230 : f32 to vector<1x512xf32>
    %505 = arith.cmpf one, %503, %504 : vector<1x512xf32>
    %cst_231 = arith.constant 0.000000e+00 : f32
    %cst_232 = arith.constant 1.000000e+05 : f32
    %506 = vector.broadcast %cst_231 : f32 to vector<1x512xf32>
    %507 = vector.broadcast %cst_232 : f32 to vector<1x512xf32>
    %508 = arith.select %505, %506, %507 : vector<1x512xi1>, vector<1x512xf32>
    %509 = arith.addf %489, %501 : vector<4x512xf32>
    %cst_233 = arith.constant 1.000000e+00 : f32
    %cst_234 = arith.constant 0.000000e+00 : f32
    %510 = vector.broadcast %cst_233 : f32 to vector<1x512xf32>
    %511 = vector.broadcast %cst_234 : f32 to vector<1x512xf32>
    %512 = arith.select %505, %510, %511 : vector<1x512xi1>, vector<1x512xf32>
    %513 = arith.addf %493, %512 : vector<1x512xf32>
    %514 = vector.broadcast %508 : vector<1x512xf32> to vector<4x512xf32>
    %515 = arith.subf %501, %514 : vector<4x512xf32>
    %516 = arith.maximumf %496, %515 : vector<4x512xf32>
    %517 = vector.broadcast %508 : vector<1x512xf32> to vector<4x512xf32>
    %518 = arith.addf %501, %517 : vector<4x512xf32>
    %519 = arith.minimumf %499, %518 : vector<4x512xf32>
    %c7_235 = arith.constant 7 : index
    %c0_236 = arith.constant 0 : index
    %c512_237 = arith.constant 512 : index
    %520 = vector.load %arg1[%c7_235, %c0_236, %c512_237] : memref<10x4x1024xf32, #tpu.memory_space<vmem>>, vector<1x4x512xf32>
    %521 = vector.shape_cast %520 : vector<1x4x512xf32> to vector<4x512xf32>
    %cst_238 = arith.constant dense<0.000000e+00> : vector<512xf32>
    %522 = vector.multi_reduction <add>, %521, %cst_238 [0] : vector<4x512xf32> to vector<512xf32>
    %523 = vector.shape_cast %522 : vector<512xf32> to vector<1x512xf32>
    %cst_239 = arith.constant 0.000000e+00 : f32
    %524 = vector.broadcast %cst_239 : f32 to vector<1x512xf32>
    %525 = arith.cmpf one, %523, %524 : vector<1x512xf32>
    %cst_240 = arith.constant 0.000000e+00 : f32
    %cst_241 = arith.constant 1.000000e+05 : f32
    %526 = vector.broadcast %cst_240 : f32 to vector<1x512xf32>
    %527 = vector.broadcast %cst_241 : f32 to vector<1x512xf32>
    %528 = arith.select %525, %526, %527 : vector<1x512xi1>, vector<1x512xf32>
    %529 = arith.addf %509, %521 : vector<4x512xf32>
    %cst_242 = arith.constant 1.000000e+00 : f32
    %cst_243 = arith.constant 0.000000e+00 : f32
    %530 = vector.broadcast %cst_242 : f32 to vector<1x512xf32>
    %531 = vector.broadcast %cst_243 : f32 to vector<1x512xf32>
    %532 = arith.select %525, %530, %531 : vector<1x512xi1>, vector<1x512xf32>
    %533 = arith.addf %513, %532 : vector<1x512xf32>
    %534 = vector.broadcast %528 : vector<1x512xf32> to vector<4x512xf32>
    %535 = arith.subf %521, %534 : vector<4x512xf32>
    %536 = arith.maximumf %516, %535 : vector<4x512xf32>
    %537 = vector.broadcast %528 : vector<1x512xf32> to vector<4x512xf32>
    %538 = arith.addf %521, %537 : vector<4x512xf32>
    %539 = arith.minimumf %519, %538 : vector<4x512xf32>
    %c8_244 = arith.constant 8 : index
    %c0_245 = arith.constant 0 : index
    %c512_246 = arith.constant 512 : index
    %540 = vector.load %arg1[%c8_244, %c0_245, %c512_246] : memref<10x4x1024xf32, #tpu.memory_space<vmem>>, vector<1x4x512xf32>
    %541 = vector.shape_cast %540 : vector<1x4x512xf32> to vector<4x512xf32>
    %cst_247 = arith.constant dense<0.000000e+00> : vector<512xf32>
    %542 = vector.multi_reduction <add>, %541, %cst_247 [0] : vector<4x512xf32> to vector<512xf32>
    %543 = vector.shape_cast %542 : vector<512xf32> to vector<1x512xf32>
    %cst_248 = arith.constant 0.000000e+00 : f32
    %544 = vector.broadcast %cst_248 : f32 to vector<1x512xf32>
    %545 = arith.cmpf one, %543, %544 : vector<1x512xf32>
    %cst_249 = arith.constant 0.000000e+00 : f32
    %cst_250 = arith.constant 1.000000e+05 : f32
    %546 = vector.broadcast %cst_249 : f32 to vector<1x512xf32>
    %547 = vector.broadcast %cst_250 : f32 to vector<1x512xf32>
    %548 = arith.select %545, %546, %547 : vector<1x512xi1>, vector<1x512xf32>
    %549 = arith.addf %529, %541 : vector<4x512xf32>
    %cst_251 = arith.constant 1.000000e+00 : f32
    %cst_252 = arith.constant 0.000000e+00 : f32
    %550 = vector.broadcast %cst_251 : f32 to vector<1x512xf32>
    %551 = vector.broadcast %cst_252 : f32 to vector<1x512xf32>
    %552 = arith.select %545, %550, %551 : vector<1x512xi1>, vector<1x512xf32>
    %553 = arith.addf %533, %552 : vector<1x512xf32>
    %554 = vector.broadcast %548 : vector<1x512xf32> to vector<4x512xf32>
    %555 = arith.subf %541, %554 : vector<4x512xf32>
    %556 = arith.maximumf %536, %555 : vector<4x512xf32>
    %557 = vector.broadcast %548 : vector<1x512xf32> to vector<4x512xf32>
    %558 = arith.addf %541, %557 : vector<4x512xf32>
    %559 = arith.minimumf %539, %558 : vector<4x512xf32>
    %c9_253 = arith.constant 9 : index
    %c0_254 = arith.constant 0 : index
    %c512_255 = arith.constant 512 : index
    %560 = vector.load %arg1[%c9_253, %c0_254, %c512_255] : memref<10x4x1024xf32, #tpu.memory_space<vmem>>, vector<1x4x512xf32>
    %561 = vector.shape_cast %560 : vector<1x4x512xf32> to vector<4x512xf32>
    %cst_256 = arith.constant dense<0.000000e+00> : vector<512xf32>
    %562 = vector.multi_reduction <add>, %561, %cst_256 [0] : vector<4x512xf32> to vector<512xf32>
    %563 = vector.shape_cast %562 : vector<512xf32> to vector<1x512xf32>
    %cst_257 = arith.constant 0.000000e+00 : f32
    %564 = vector.broadcast %cst_257 : f32 to vector<1x512xf32>
    %565 = arith.cmpf one, %563, %564 : vector<1x512xf32>
    %cst_258 = arith.constant 0.000000e+00 : f32
    %cst_259 = arith.constant 1.000000e+05 : f32
    %566 = vector.broadcast %cst_258 : f32 to vector<1x512xf32>
    %567 = vector.broadcast %cst_259 : f32 to vector<1x512xf32>
    %568 = arith.select %565, %566, %567 : vector<1x512xi1>, vector<1x512xf32>
    %569 = arith.addf %549, %561 : vector<4x512xf32>
    %cst_260 = arith.constant 1.000000e+00 : f32
    %cst_261 = arith.constant 0.000000e+00 : f32
    %570 = vector.broadcast %cst_260 : f32 to vector<1x512xf32>
    %571 = vector.broadcast %cst_261 : f32 to vector<1x512xf32>
    %572 = arith.select %565, %570, %571 : vector<1x512xi1>, vector<1x512xf32>
    %573 = arith.addf %553, %572 : vector<1x512xf32>
    %574 = vector.broadcast %568 : vector<1x512xf32> to vector<4x512xf32>
    %575 = arith.subf %561, %574 : vector<4x512xf32>
    %576 = arith.maximumf %556, %575 : vector<4x512xf32>
    %577 = vector.broadcast %568 : vector<1x512xf32> to vector<4x512xf32>
    %578 = arith.addf %561, %577 : vector<4x512xf32>
    %579 = arith.minimumf %559, %578 : vector<4x512xf32>
    %580 = vector.broadcast %375 : vector<1x512xf32> to vector<4x512xf32>
    %581 = arith.mulf %569, %580 : vector<4x512xf32>
    %cst_262 = arith.constant 1.000000e-01 : f32
    %582 = vector.broadcast %cst_262 : f32 to vector<1x512xf32>
    %583 = arith.mulf %573, %582 : vector<1x512xf32>
    %584 = vector.extract_strided_slice %581 {offsets = [0, 0], sizes = [3, 512], strides = [1, 1]} : vector<4x512xf32> to vector<3x512xf32>
    %cst_263 = arith.constant 0.000000e+00 : f32
    %585 = vector.broadcast %cst_263 : f32 to vector<1x512xf32>
    %c0_264 = arith.constant 0 : index
    %c0_265 = arith.constant 0 : index
    %c512_266 = arith.constant 512 : index
    %586 = vector.load %arg1[%c0_264, %c0_265, %c512_266] : memref<10x4x1024xf32, #tpu.memory_space<vmem>>, vector<1x4x512xf32>
    %587 = vector.shape_cast %586 : vector<1x4x512xf32> to vector<4x512xf32>
    %cst_267 = arith.constant dense<0.000000e+00> : vector<512xf32>
    %588 = vector.multi_reduction <add>, %587, %cst_267 [0] : vector<4x512xf32> to vector<512xf32>
    %589 = vector.shape_cast %588 : vector<512xf32> to vector<1x512xf32>
    %590 = vector.extract_strided_slice %587 {offsets = [0, 0], sizes = [3, 512], strides = [1, 1]} : vector<4x512xf32> to vector<3x512xf32>
    %591 = arith.subf %590, %584 : vector<3x512xf32>
    %592 = arith.mulf %591, %591 : vector<3x512xf32>
    %cst_268 = arith.constant dense<0.000000e+00> : vector<512xf32>
    %593 = vector.multi_reduction <add>, %592, %cst_268 [0] : vector<3x512xf32> to vector<512xf32>
    %594 = vector.shape_cast %593 : vector<512xf32> to vector<1x512xf32>
    %595 = math.sqrt %594 : vector<1x512xf32>
    %cst_269 = arith.constant 0.000000e+00 : f32
    %596 = vector.broadcast %cst_269 : f32 to vector<1x512xf32>
    %597 = arith.cmpf one, %589, %596 : vector<1x512xf32>
    %cst_270 = arith.constant 0.000000e+00 : f32
    %598 = vector.broadcast %cst_270 : f32 to vector<1x512xf32>
    %599 = arith.select %597, %595, %598 : vector<1x512xi1>, vector<1x512xf32>
    %600 = arith.addf %585, %599 : vector<1x512xf32>
    %c1_271 = arith.constant 1 : index
    %c0_272 = arith.constant 0 : index
    %c512_273 = arith.constant 512 : index
    %601 = vector.load %arg1[%c1_271, %c0_272, %c512_273] : memref<10x4x1024xf32, #tpu.memory_space<vmem>>, vector<1x4x512xf32>
    %602 = vector.shape_cast %601 : vector<1x4x512xf32> to vector<4x512xf32>
    %cst_274 = arith.constant dense<0.000000e+00> : vector<512xf32>
    %603 = vector.multi_reduction <add>, %602, %cst_274 [0] : vector<4x512xf32> to vector<512xf32>
    %604 = vector.shape_cast %603 : vector<512xf32> to vector<1x512xf32>
    %605 = vector.extract_strided_slice %602 {offsets = [0, 0], sizes = [3, 512], strides = [1, 1]} : vector<4x512xf32> to vector<3x512xf32>
    %606 = arith.subf %605, %584 : vector<3x512xf32>
    %607 = arith.mulf %606, %606 : vector<3x512xf32>
    %cst_275 = arith.constant dense<0.000000e+00> : vector<512xf32>
    %608 = vector.multi_reduction <add>, %607, %cst_275 [0] : vector<3x512xf32> to vector<512xf32>
    %609 = vector.shape_cast %608 : vector<512xf32> to vector<1x512xf32>
    %610 = math.sqrt %609 : vector<1x512xf32>
    %cst_276 = arith.constant 0.000000e+00 : f32
    %611 = vector.broadcast %cst_276 : f32 to vector<1x512xf32>
    %612 = arith.cmpf one, %604, %611 : vector<1x512xf32>
    %cst_277 = arith.constant 0.000000e+00 : f32
    %613 = vector.broadcast %cst_277 : f32 to vector<1x512xf32>
    %614 = arith.select %612, %610, %613 : vector<1x512xi1>, vector<1x512xf32>
    %615 = arith.addf %600, %614 : vector<1x512xf32>
    %c2_278 = arith.constant 2 : index
    %c0_279 = arith.constant 0 : index
    %c512_280 = arith.constant 512 : index
    %616 = vector.load %arg1[%c2_278, %c0_279, %c512_280] : memref<10x4x1024xf32, #tpu.memory_space<vmem>>, vector<1x4x512xf32>
    %617 = vector.shape_cast %616 : vector<1x4x512xf32> to vector<4x512xf32>
    %cst_281 = arith.constant dense<0.000000e+00> : vector<512xf32>
    %618 = vector.multi_reduction <add>, %617, %cst_281 [0] : vector<4x512xf32> to vector<512xf32>
    %619 = vector.shape_cast %618 : vector<512xf32> to vector<1x512xf32>
    %620 = vector.extract_strided_slice %617 {offsets = [0, 0], sizes = [3, 512], strides = [1, 1]} : vector<4x512xf32> to vector<3x512xf32>
    %621 = arith.subf %620, %584 : vector<3x512xf32>
    %622 = arith.mulf %621, %621 : vector<3x512xf32>
    %cst_282 = arith.constant dense<0.000000e+00> : vector<512xf32>
    %623 = vector.multi_reduction <add>, %622, %cst_282 [0] : vector<3x512xf32> to vector<512xf32>
    %624 = vector.shape_cast %623 : vector<512xf32> to vector<1x512xf32>
    %625 = math.sqrt %624 : vector<1x512xf32>
    %cst_283 = arith.constant 0.000000e+00 : f32
    %626 = vector.broadcast %cst_283 : f32 to vector<1x512xf32>
    %627 = arith.cmpf one, %619, %626 : vector<1x512xf32>
    %cst_284 = arith.constant 0.000000e+00 : f32
    %628 = vector.broadcast %cst_284 : f32 to vector<1x512xf32>
    %629 = arith.select %627, %625, %628 : vector<1x512xi1>, vector<1x512xf32>
    %630 = arith.addf %615, %629 : vector<1x512xf32>
    %c3_285 = arith.constant 3 : index
    %c0_286 = arith.constant 0 : index
    %c512_287 = arith.constant 512 : index
    %631 = vector.load %arg1[%c3_285, %c0_286, %c512_287] : memref<10x4x1024xf32, #tpu.memory_space<vmem>>, vector<1x4x512xf32>
    %632 = vector.shape_cast %631 : vector<1x4x512xf32> to vector<4x512xf32>
    %cst_288 = arith.constant dense<0.000000e+00> : vector<512xf32>
    %633 = vector.multi_reduction <add>, %632, %cst_288 [0] : vector<4x512xf32> to vector<512xf32>
    %634 = vector.shape_cast %633 : vector<512xf32> to vector<1x512xf32>
    %635 = vector.extract_strided_slice %632 {offsets = [0, 0], sizes = [3, 512], strides = [1, 1]} : vector<4x512xf32> to vector<3x512xf32>
    %636 = arith.subf %635, %584 : vector<3x512xf32>
    %637 = arith.mulf %636, %636 : vector<3x512xf32>
    %cst_289 = arith.constant dense<0.000000e+00> : vector<512xf32>
    %638 = vector.multi_reduction <add>, %637, %cst_289 [0] : vector<3x512xf32> to vector<512xf32>
    %639 = vector.shape_cast %638 : vector<512xf32> to vector<1x512xf32>
    %640 = math.sqrt %639 : vector<1x512xf32>
    %cst_290 = arith.constant 0.000000e+00 : f32
    %641 = vector.broadcast %cst_290 : f32 to vector<1x512xf32>
    %642 = arith.cmpf one, %634, %641 : vector<1x512xf32>
    %cst_291 = arith.constant 0.000000e+00 : f32
    %643 = vector.broadcast %cst_291 : f32 to vector<1x512xf32>
    %644 = arith.select %642, %640, %643 : vector<1x512xi1>, vector<1x512xf32>
    %645 = arith.addf %630, %644 : vector<1x512xf32>
    %c4_292 = arith.constant 4 : index
    %c0_293 = arith.constant 0 : index
    %c512_294 = arith.constant 512 : index
    %646 = vector.load %arg1[%c4_292, %c0_293, %c512_294] : memref<10x4x1024xf32, #tpu.memory_space<vmem>>, vector<1x4x512xf32>
    %647 = vector.shape_cast %646 : vector<1x4x512xf32> to vector<4x512xf32>
    %cst_295 = arith.constant dense<0.000000e+00> : vector<512xf32>
    %648 = vector.multi_reduction <add>, %647, %cst_295 [0] : vector<4x512xf32> to vector<512xf32>
    %649 = vector.shape_cast %648 : vector<512xf32> to vector<1x512xf32>
    %650 = vector.extract_strided_slice %647 {offsets = [0, 0], sizes = [3, 512], strides = [1, 1]} : vector<4x512xf32> to vector<3x512xf32>
    %651 = arith.subf %650, %584 : vector<3x512xf32>
    %652 = arith.mulf %651, %651 : vector<3x512xf32>
    %cst_296 = arith.constant dense<0.000000e+00> : vector<512xf32>
    %653 = vector.multi_reduction <add>, %652, %cst_296 [0] : vector<3x512xf32> to vector<512xf32>
    %654 = vector.shape_cast %653 : vector<512xf32> to vector<1x512xf32>
    %655 = math.sqrt %654 : vector<1x512xf32>
    %cst_297 = arith.constant 0.000000e+00 : f32
    %656 = vector.broadcast %cst_297 : f32 to vector<1x512xf32>
    %657 = arith.cmpf one, %649, %656 : vector<1x512xf32>
    %cst_298 = arith.constant 0.000000e+00 : f32
    %658 = vector.broadcast %cst_298 : f32 to vector<1x512xf32>
    %659 = arith.select %657, %655, %658 : vector<1x512xi1>, vector<1x512xf32>
    %660 = arith.addf %645, %659 : vector<1x512xf32>
    %c5_299 = arith.constant 5 : index
    %c0_300 = arith.constant 0 : index
    %c512_301 = arith.constant 512 : index
    %661 = vector.load %arg1[%c5_299, %c0_300, %c512_301] : memref<10x4x1024xf32, #tpu.memory_space<vmem>>, vector<1x4x512xf32>
    %662 = vector.shape_cast %661 : vector<1x4x512xf32> to vector<4x512xf32>
    %cst_302 = arith.constant dense<0.000000e+00> : vector<512xf32>
    %663 = vector.multi_reduction <add>, %662, %cst_302 [0] : vector<4x512xf32> to vector<512xf32>
    %664 = vector.shape_cast %663 : vector<512xf32> to vector<1x512xf32>
    %665 = vector.extract_strided_slice %662 {offsets = [0, 0], sizes = [3, 512], strides = [1, 1]} : vector<4x512xf32> to vector<3x512xf32>
    %666 = arith.subf %665, %584 : vector<3x512xf32>
    %667 = arith.mulf %666, %666 : vector<3x512xf32>
    %cst_303 = arith.constant dense<0.000000e+00> : vector<512xf32>
    %668 = vector.multi_reduction <add>, %667, %cst_303 [0] : vector<3x512xf32> to vector<512xf32>
    %669 = vector.shape_cast %668 : vector<512xf32> to vector<1x512xf32>
    %670 = math.sqrt %669 : vector<1x512xf32>
    %cst_304 = arith.constant 0.000000e+00 : f32
    %671 = vector.broadcast %cst_304 : f32 to vector<1x512xf32>
    %672 = arith.cmpf one, %664, %671 : vector<1x512xf32>
    %cst_305 = arith.constant 0.000000e+00 : f32
    %673 = vector.broadcast %cst_305 : f32 to vector<1x512xf32>
    %674 = arith.select %672, %670, %673 : vector<1x512xi1>, vector<1x512xf32>
    %675 = arith.addf %660, %674 : vector<1x512xf32>
    %c6_306 = arith.constant 6 : index
    %c0_307 = arith.constant 0 : index
    %c512_308 = arith.constant 512 : index
    %676 = vector.load %arg1[%c6_306, %c0_307, %c512_308] : memref<10x4x1024xf32, #tpu.memory_space<vmem>>, vector<1x4x512xf32>
    %677 = vector.shape_cast %676 : vector<1x4x512xf32> to vector<4x512xf32>
    %cst_309 = arith.constant dense<0.000000e+00> : vector<512xf32>
    %678 = vector.multi_reduction <add>, %677, %cst_309 [0] : vector<4x512xf32> to vector<512xf32>
    %679 = vector.shape_cast %678 : vector<512xf32> to vector<1x512xf32>
    %680 = vector.extract_strided_slice %677 {offsets = [0, 0], sizes = [3, 512], strides = [1, 1]} : vector<4x512xf32> to vector<3x512xf32>
    %681 = arith.subf %680, %584 : vector<3x512xf32>
    %682 = arith.mulf %681, %681 : vector<3x512xf32>
    %cst_310 = arith.constant dense<0.000000e+00> : vector<512xf32>
    %683 = vector.multi_reduction <add>, %682, %cst_310 [0] : vector<3x512xf32> to vector<512xf32>
    %684 = vector.shape_cast %683 : vector<512xf32> to vector<1x512xf32>
    %685 = math.sqrt %684 : vector<1x512xf32>
    %cst_311 = arith.constant 0.000000e+00 : f32
    %686 = vector.broadcast %cst_311 : f32 to vector<1x512xf32>
    %687 = arith.cmpf one, %679, %686 : vector<1x512xf32>
    %cst_312 = arith.constant 0.000000e+00 : f32
    %688 = vector.broadcast %cst_312 : f32 to vector<1x512xf32>
    %689 = arith.select %687, %685, %688 : vector<1x512xi1>, vector<1x512xf32>
    %690 = arith.addf %675, %689 : vector<1x512xf32>
    %c7_313 = arith.constant 7 : index
    %c0_314 = arith.constant 0 : index
    %c512_315 = arith.constant 512 : index
    %691 = vector.load %arg1[%c7_313, %c0_314, %c512_315] : memref<10x4x1024xf32, #tpu.memory_space<vmem>>, vector<1x4x512xf32>
    %692 = vector.shape_cast %691 : vector<1x4x512xf32> to vector<4x512xf32>
    %cst_316 = arith.constant dense<0.000000e+00> : vector<512xf32>
    %693 = vector.multi_reduction <add>, %692, %cst_316 [0] : vector<4x512xf32> to vector<512xf32>
    %694 = vector.shape_cast %693 : vector<512xf32> to vector<1x512xf32>
    %695 = vector.extract_strided_slice %692 {offsets = [0, 0], sizes = [3, 512], strides = [1, 1]} : vector<4x512xf32> to vector<3x512xf32>
    %696 = arith.subf %695, %584 : vector<3x512xf32>
    %697 = arith.mulf %696, %696 : vector<3x512xf32>
    %cst_317 = arith.constant dense<0.000000e+00> : vector<512xf32>
    %698 = vector.multi_reduction <add>, %697, %cst_317 [0] : vector<3x512xf32> to vector<512xf32>
    %699 = vector.shape_cast %698 : vector<512xf32> to vector<1x512xf32>
    %700 = math.sqrt %699 : vector<1x512xf32>
    %cst_318 = arith.constant 0.000000e+00 : f32
    %701 = vector.broadcast %cst_318 : f32 to vector<1x512xf32>
    %702 = arith.cmpf one, %694, %701 : vector<1x512xf32>
    %cst_319 = arith.constant 0.000000e+00 : f32
    %703 = vector.broadcast %cst_319 : f32 to vector<1x512xf32>
    %704 = arith.select %702, %700, %703 : vector<1x512xi1>, vector<1x512xf32>
    %705 = arith.addf %690, %704 : vector<1x512xf32>
    %c8_320 = arith.constant 8 : index
    %c0_321 = arith.constant 0 : index
    %c512_322 = arith.constant 512 : index
    %706 = vector.load %arg1[%c8_320, %c0_321, %c512_322] : memref<10x4x1024xf32, #tpu.memory_space<vmem>>, vector<1x4x512xf32>
    %707 = vector.shape_cast %706 : vector<1x4x512xf32> to vector<4x512xf32>
    %cst_323 = arith.constant dense<0.000000e+00> : vector<512xf32>
    %708 = vector.multi_reduction <add>, %707, %cst_323 [0] : vector<4x512xf32> to vector<512xf32>
    %709 = vector.shape_cast %708 : vector<512xf32> to vector<1x512xf32>
    %710 = vector.extract_strided_slice %707 {offsets = [0, 0], sizes = [3, 512], strides = [1, 1]} : vector<4x512xf32> to vector<3x512xf32>
    %711 = arith.subf %710, %584 : vector<3x512xf32>
    %712 = arith.mulf %711, %711 : vector<3x512xf32>
    %cst_324 = arith.constant dense<0.000000e+00> : vector<512xf32>
    %713 = vector.multi_reduction <add>, %712, %cst_324 [0] : vector<3x512xf32> to vector<512xf32>
    %714 = vector.shape_cast %713 : vector<512xf32> to vector<1x512xf32>
    %715 = math.sqrt %714 : vector<1x512xf32>
    %cst_325 = arith.constant 0.000000e+00 : f32
    %716 = vector.broadcast %cst_325 : f32 to vector<1x512xf32>
    %717 = arith.cmpf one, %709, %716 : vector<1x512xf32>
    %cst_326 = arith.constant 0.000000e+00 : f32
    %718 = vector.broadcast %cst_326 : f32 to vector<1x512xf32>
    %719 = arith.select %717, %715, %718 : vector<1x512xi1>, vector<1x512xf32>
    %720 = arith.addf %705, %719 : vector<1x512xf32>
    %c9_327 = arith.constant 9 : index
    %c0_328 = arith.constant 0 : index
    %c512_329 = arith.constant 512 : index
    %721 = vector.load %arg1[%c9_327, %c0_328, %c512_329] : memref<10x4x1024xf32, #tpu.memory_space<vmem>>, vector<1x4x512xf32>
    %722 = vector.shape_cast %721 : vector<1x4x512xf32> to vector<4x512xf32>
    %cst_330 = arith.constant dense<0.000000e+00> : vector<512xf32>
    %723 = vector.multi_reduction <add>, %722, %cst_330 [0] : vector<4x512xf32> to vector<512xf32>
    %724 = vector.shape_cast %723 : vector<512xf32> to vector<1x512xf32>
    %725 = vector.extract_strided_slice %722 {offsets = [0, 0], sizes = [3, 512], strides = [1, 1]} : vector<4x512xf32> to vector<3x512xf32>
    %726 = arith.subf %725, %584 : vector<3x512xf32>
    %727 = arith.mulf %726, %726 : vector<3x512xf32>
    %cst_331 = arith.constant dense<0.000000e+00> : vector<512xf32>
    %728 = vector.multi_reduction <add>, %727, %cst_331 [0] : vector<3x512xf32> to vector<512xf32>
    %729 = vector.shape_cast %728 : vector<512xf32> to vector<1x512xf32>
    %730 = math.sqrt %729 : vector<1x512xf32>
    %cst_332 = arith.constant 0.000000e+00 : f32
    %731 = vector.broadcast %cst_332 : f32 to vector<1x512xf32>
    %732 = arith.cmpf one, %724, %731 : vector<1x512xf32>
    %cst_333 = arith.constant 0.000000e+00 : f32
    %733 = vector.broadcast %cst_333 : f32 to vector<1x512xf32>
    %734 = arith.select %732, %730, %733 : vector<1x512xi1>, vector<1x512xf32>
    %735 = arith.addf %720, %734 : vector<1x512xf32>
    %736 = arith.mulf %735, %375 : vector<1x512xf32>
    %c0_334 = arith.constant 0 : index
    %c512_335 = arith.constant 512 : index
    %737 = vector.load %arg3[%c0_334, %c512_335] : memref<12x1024xf32, #tpu.memory_space<vmem>>, vector<3x512xf32>
    tpu.vector_store %arg3[%c0_334, %c512_335], %584 {strides = array<i32>} : memref<12x1024xf32, #tpu.memory_space<vmem>>, vector<3x512xf32>,
    %738 = vector.extract_strided_slice %576 {offsets = [0, 0], sizes = [3, 512], strides = [1, 1]} : vector<4x512xf32> to vector<3x512xf32>
    %c3_336 = arith.constant 3 : index
    %c512_337 = arith.constant 512 : index
    %739 = vector.load %arg3[%c3_336, %c512_337] : memref<12x1024xf32, #tpu.memory_space<vmem>>, vector<3x512xf32>
    tpu.vector_store %arg3[%c3_336, %c512_337], %738 {strides = array<i32>} : memref<12x1024xf32, #tpu.memory_space<vmem>>, vector<3x512xf32>,
    %740 = vector.extract_strided_slice %579 {offsets = [0, 0], sizes = [3, 512], strides = [1, 1]} : vector<4x512xf32> to vector<3x512xf32>
    %c6_338 = arith.constant 6 : index
    %c512_339 = arith.constant 512 : index
    %741 = vector.load %arg3[%c6_338, %c512_339] : memref<12x1024xf32, #tpu.memory_space<vmem>>, vector<3x512xf32>
    tpu.vector_store %arg3[%c6_338, %c512_339], %740 {strides = array<i32>} : memref<12x1024xf32, #tpu.memory_space<vmem>>, vector<3x512xf32>,
    %742 = vector.extract_strided_slice %581 {offsets = [3, 0], sizes = [1, 512], strides = [1, 1]} : vector<4x512xf32> to vector<1x512xf32>
    %c9_340 = arith.constant 9 : index
    %c512_341 = arith.constant 512 : index
    %743 = vector.load %arg3[%c9_340, %c512_341] : memref<12x1024xf32, #tpu.memory_space<vmem>>, vector<1x512xf32>
    tpu.vector_store %arg3[%c9_340, %c512_341], %742 {strides = array<i32>} : memref<12x1024xf32, #tpu.memory_space<vmem>>, vector<1x512xf32>,
    %c10_342 = arith.constant 10 : index
    %c512_343 = arith.constant 512 : index
    %744 = vector.load %arg3[%c10_342, %c512_343] : memref<12x1024xf32, #tpu.memory_space<vmem>>, vector<1x512xf32>
    tpu.vector_store %arg3[%c10_342, %c512_343], %583 {strides = array<i32>} : memref<12x1024xf32, #tpu.memory_space<vmem>>, vector<1x512xf32>,
    %c11_344 = arith.constant 11 : index
    %c512_345 = arith.constant 512 : index
    %745 = vector.load %arg3[%c11_344, %c512_345] : memref<12x1024xf32, #tpu.memory_space<vmem>>, vector<1x512xf32>
    tpu.vector_store %arg3[%c11_344, %c512_345], %736 {strides = array<i32>} : memref<12x1024xf32, #tpu.memory_space<vmem>>, vector<1x512xf32>,
    return
  }
  func.func @transform_0(%arg0: i32) -> (i32, i32, i32) {
    %c0_i32 = arith.constant 0 : i32
    %c0_i32_0 = arith.constant 0 : i32
    %c0_i32_1 = arith.constant 0 : i32
    return %c0_i32, %c0_i32_0, %arg0 : i32, i32, i32
  }
  func.func @transform_1(%arg0: i32) -> (i32, i32) {
    %c0_i32 = arith.constant 0 : i32
    %c0_i32_0 = arith.constant 0 : i32
    return %c0_i32, %arg0 : i32, i32
  }
  func.func @transform_2(%arg0: i32) -> (i32, i32) {
    %c0_i32 = arith.constant 0 : i32
    %c0_i32_0 = arith.constant 0 : i32
    return %c0_i32, %arg0 : i32, i32
  }
}

</mosaic_0001>

<bundles_post_ra>
// kernel: tpu_custom_call.1
= control target key start
LH: loop header
LB: loop body
LE: loop exit
PB: predicated region body
PF: predicated region fallthrough
CT: control target
= control target key end

     0   :  { %7 = vsyncpa [#allocation3], 0  ;;  %s7554_s0 = inlined_call_operand.hbm [shape: f32[10,4,2048], index: 0, kind: input, shape index: {}]   ;;  %s7555_s1 = inlined_call_operand.hbm [shape: s32[1,2048], index: 1, kind: input, shape index: {}]   ;;  %s7556_s2 = inlined_call_operand.hbm [shape: f32[12,2048], index: 2, kind: output, shape index: {}]  }
   0x1   :  { %9 = vsyncpa [#allocation3 + $0x1], 0 }
   0x2   :  { %10 = vsyncpa [#allocation6], 0 }
   0x3   :  { %12 = vsyncpa [#allocation6 + $0x1], 0 }
   0x4   :  { %13 = vsyncpa [#allocation4], 0 }
   0x5   :  { %15 = vsyncpa [#allocation4 + $0x1], 0  ;;  %s4082_s9 = smov 0   ;;  %s4084_s10 = smov 0  }
   0x6   :  { %s4086_s11 = smov 0   ;;  %s4088_s12 = smov 0  }
   0x7 LB: > { %s4103_s13 = sadd.s32 4294967295, %s4053_s12   ;;  %s3558_s14 = sadd.s32 4294967294, %s4053_s12   ;;  %s4053_s12 = sphi %s4088_s12, %s8009_s12   ;;  %s4049_s11 = sphi %s4086_s11, %s8008_s11   ;;  %s4045_s10 = sphi %s4084_s10, %s8007_s10   ;;  %s4041_s9 = sphi %s4082_s9, %s8006_s9  }
   0x8   : > { %s4107_s15 = sadd.s32 1, %s4053_s12   ;;  %s28_s16 = sadd.s32 1, %s4049_s11 }
   0x9   : > { %s25_s17 = ssub.s32 %s4053_s12, %s4107_s15  ;;  %p35_p0 = scmp.ne.s32.totalorder %s4049_s11, %s4045_s10 }
   0xa   : > { %p26_p1 = scmp.eq.s32.totalorder %s25_s17, 0  ;;  %p36_p2 = scmp.eq.s32.totalorder %s4053_s12, 0 }
   0xb   : > { %p41_p3 = scmp.ne.s32.totalorder %s4045_s10, %s4041_s9  ;;  %p42_p4 = scmp.eq.s32.totalorder %s4103_s13, 0 }
   0xc   : > { %s4119_s18 = scalar_select %p26_p1, %s4049_s11, %s28_s16  }
   0xd   : > { %p37_p5 = por %p36_p2, %p35_p0  ;;  %p4121_p6 = por %p42_p4, %p41_p3 }
   0xe   : > { %p91_p7 = scmp.eq.s32.totalorder %s4103_s13, 1  ;;  %p97_p8 = scmp.eq.s32.totalorder %s3558_s14, 1 }
   0xf   : > { %s7718_s19 = scalar_select %p4121_p6, 1, 0 }
  0x10   : > { %p3638_p10 = scmp.lt.s32.totalorder %s4053_s12, 2  ;;  %p4128_p11 = por %p91_p7, %p35_p0 }
  0x11   : > { %p4132_p12 = por %p97_p8, %p41_p3  ;;  %s4137_s22 = sand.u32 1, %s4049_s11  }
  0x12   : > { %s7719_s20 = scalar_select %p4128_p11, 1, 0 }
  0x13   : > { %s7720_s21 = scalar_select %p4132_p12, 1, 0 }
  0x14   : > { %s3616_s23 = sshll.u32 %s4053_s12, 9  ;;  %s3619_s24 = smul.u32 320, %s4137_s22 }
  0x15   : > { %s4144_s27 = scalar_lea.hbm %s7554_s0, %s3616_s23  ;;  %p4146_p13 = pnand %p3638_p10, %p37_p5 }
  0x16   : > { %s121_s29 = scalar_lea.vmem [#allocation2], %s3619_s24  ;;  %s118_s3 = scalar_lea.sflag [#allocation3], %s4137_s22 }
  0x17   : > { %s128_s30 = sshll.u32 %s121_s29, 4  ;;  %s3923_s4 = scalar_lea.hbm %s4144_s27, 5120  ;;  %s4150_s30 = int_to_ptr.vmem [resolvable:$true] %s128_s30 }
  0x18   : > { %p3924_p1 = scmp.ne.s32.totalorder %s4144_s27, %s3923_s4  ;;  %p3925_p2 = pneg %p4146_p13 }
  0x19   : > { %s3928_s7 = scalar_lea.hbm %s7554_s0, 10240  ;;  %p3929_p5 = scmp.lt.u32.totalorder %s4144_s27, %s7554_s0 }
  0x1a   : > { %p3926_p3 = pnand %p3925_p2, %p3924_p1  ;;  %p3930_p7 = scmp.lt.u32.totalorder %s3928_s7, %s3923_s4 }
  0x1b   : > { %p3932_p10 = scmp.lt.u32.totalorder %s3923_s4, %s4144_s27 }
  0x1c   : > { %p3927_p4 = pneg %p3926_p3  ;;  %p3931_p8 = por %p3930_p7, %p3929_p5 }
  0x1e   : > { %p3933_p9 = por %p3932_p10, %p3931_p8 }
  0x20   : > { %p3934_p0 = pnand %p3933_p9, %p3927_p4 }
  0x22   : > { %3937 = shalt.err (!%p3934_p0)
}
  0x23   : > { %s3938_s16 = scalar_lea.vmem %s4150_s30, 5120  ;;  %s4055_s17 = smov [#allocation2]  }
  0x24   : > { %p3939_p1 = scmp.ne.s32.totalorder %s4150_s30, %s3938_s16  ;;  %s3943_s23 = sshll.u32 %s4055_s17, 4  ;;  %s3944_s23 = int_to_ptr.vmem [resolvable:$false] %s3943_s23 }
  0x25   : > { %s3945_s24 = scalar_lea.vmem %s3944_s23, 10240  ;;  %p3946_p11 = scmp.lt.s32.totalorder %s4150_s30, %s3944_s23 }
  0x26   : > { %p3941_p3 = pnand %p3939_p1, %p3925_p2  ;;  %p3947_p5 = scmp.lt.s32.totalorder %s3945_s24, %s3938_s16 }
  0x28   : > { %p3942_p12 = pneg %p3941_p3  ;;  %p3948_p7 = por %p3947_p5, %p3946_p11 }
  0x2a   : > { %p3949_p8 = pnand %p3948_p7, %p3942_p12 }
  0x2c   : > { %3952 = shalt.err (!%p3949_p8)
}
  0x2d   : > { %s4056_s25 = smov 1024   ;;  %s4057_s26 = smov 512  }
  0x2e   : > { %s4058_s29 = smov 32   ;;  %p155_p9 = scmp.lt.s32.totalorder %s4053_s12, 3 }
  0x2f   : > { %3630 = dma.hbm_to_vmem [thread:$0]  (!%p4146_p13), %s4144_s27, 5120, %s4150_s30, %s118_s3, %s4056_s25, %s4057_s26, %s4058_s29  }
  0x30   : > { %s3563_s4 = sshll.u32 %s4137_s22, 3  ;;  %s3617_s5 = sshll.u32 %s4053_s12, 7 }
  0x31   : > { %p7722_p11 = scmp.ge.s32.totalorder %s4053_s12, 1  ;;  %s4193_s14 = scalar_lea.hbm %s7555_s1, %s3617_s5 }
  0x32   : > { %s142_s16 = scalar_lea.vmem [#allocation5], %s3563_s4  ;;  %s139_s27 = scalar_lea.sflag [#allocation6], %s4137_s22 }
  0x33   : > { %p4186_p12 = pnand %p7722_p11, %p155_p9  ;;  %s150_s17 = sshll.u32 %s142_s16, 4  ;;  %s151_s17 = int_to_ptr.vmem [resolvable:$true] %s150_s17 }
  0x34   : > { %s3953_s30 = scalar_lea.hbm %s4193_s14, 128  ;;  %s3958_s24 = scalar_lea.hbm %s7555_s1, 256 }
  0x35   : > { %s7723_s6 = scalar_select %p4186_p12, 1, 0 }
  0x36   : > { %p3954_p0 = scmp.ne.s32.totalorder %s4193_s14, %s3953_s30  ;;  %p3959_p1 = scmp.lt.u32.totalorder %s4193_s14, %s7555_s1 }
  0x37   : > { %p3960_p3 = scmp.lt.u32.totalorder %s3958_s24, %s3953_s30  ;;  %p3962_p7 = scmp.lt.u32.totalorder %s3953_s30, %s4193_s14 }
  0x38   : > { %p3956_p4 = pnand %p3954_p0, %p3925_p2 }
  0x39   : > { %p3961_p5 = por %p3960_p3, %p3959_p1 }
  0x3a   : > { %p3957_p10 = pneg %p3956_p4 }
  0x3b   : > { %p3963_p8 = por %p3962_p7, %p3961_p5 }
  0x3d   : > { %p3964_p9 = pnand %p3963_p8, %p3957_p10 }
  0x3f   : > { %3967 = shalt.err (!%p3964_p9)
}
  0x40   : > { %s3968_s22 = scalar_lea.vmem %s151_s17, 128  ;;  %s4059_s29 = smov [#allocation5]  }
  0x41   : > { %p3969_p11 = scmp.ne.s32.totalorder %s151_s17, %s3968_s22  ;;  %s3973_s4 = sshll.u32 %s4059_s29, 4  ;;  %s3974_s4 = int_to_ptr.vmem [resolvable:$false] %s3973_s4 }
  0x42   : > { %s3975_s5 = scalar_lea.vmem %s3974_s4, 256  ;;  %p3976_p6 = scmp.lt.s32.totalorder %s151_s17, %s3974_s4 }
  0x43   : > { %p3971_p0 = pnand %p3969_p11, %p3925_p2  ;;  %p3977_p12 = scmp.lt.s32.totalorder %s3975_s5, %s3968_s22 }
  0x45   : > { %p3972_p4 = pneg %p3971_p0  ;;  %p3978_p1 = por %p3977_p12, %p3976_p6 }
  0x47   : > { %p3979_p3 = pnand %p3978_p1, %p3972_p4 }
  0x49   : > { %3982 = shalt.err (!%p3979_p3)
}
  0x4a   : > { %3633 = dma.hbm_to_vmem [thread:$0]  (!%p4146_p13), %s4193_s14, 128, %s151_s17, %s139_s27  }
  0x4b   : > { %p7724_p10 = scmp.ne.s32.totalorder %s7723_s6, 0 }
  0x4d   : > { %159 = sbr.rel (%p7724_p10) target bundleno = 807 (0x327), region = 28 }
  0x54   : > { %s4218_s7 = sand.u32 1, %s4045_s10   ;;  %p7725_p6 = scmp.ne.s32.totalorder %s7718_s19, 0 }
  0x55   : > { %s3620_s8 = smul.u32 320, %s4218_s7  ;;  %s162_s16 = scalar_lea.sflag [#allocation3], %s4218_s7 }
  0x57   : > { %s4222_s30 = scalar_lea.vmem [#allocation2], %s3620_s8 }
  0x58   : > { %4028 = dma.done.wait (%p7725_p6), %s162_s16, 5120  }
  0x59   : > { %4030 = vsyncadd (%p7725_p6), %s162_s16, 4294962176  ;;  %s3567_s28 = sshll.u32 %s4218_s7, 3  ;;  %s171_s6 = scalar_lea.sflag [#allocation6], %s4218_s7 }
  0x5a   : > { %s4230_s14 = scalar_lea.vmem [#allocation5], %s3567_s28 }
  0x5b   : > { %4032 = dma.done.wait (%p7725_p6), %s171_s6, 128  }
  0x5c   : > { %4034 = vsyncadd (%p7725_p6), %s171_s6, 4294967168  ;;  %vm7606_vm0 = vcmask 1043456   ;;  %v4237_v0 = vld [vmem:[%s4222_s30] sm:$0xff]  ;;  %v4240_v1 = vld [vmem:[%s4222_s30 + $0x8] sm:$0xff]  ;;  %v7562_v57 = vmov 100000.0   ;;  %v7559_v60 = vlaneseq  ;;  %s3568_s19 = sshll.u32 %s4218_s7, 7 }
  0x5d   : > { %v210_v2 = vcombine.high %v4237_v0, %v4237_v0  ;;  %v211_v3 = vcombine.high %v4240_v1, %v4240_v1  ;;  %v215_v4 = vsel %vm7606_vm0, %v4237_v0, 0.0  ;;  %v4249_v5 = vld [vmem:[%s4222_s30 + $0x20] sm:$0xff]  ;;  %v229_v7 = vsel %vm7606_vm0, %v4240_v1, 0.0  ;;  %v4254_v8 = vld [vmem:[%s4222_s30 + $0x28] sm:$0xff]  ;;  %s5061_s17 = scalar_lea.vmem [#allocation7], %s3568_s19  ;;  %s3618_s27 = sshll.u32 %s4103_s13, 10 }
  0x5e   : > { %v216_v6 = vrot.slane %v215_v4, 4  ;;  %v282_v9 = vcombine.high %v4249_v5, %v4249_v5  ;;  %v230_v11 = vrot.slane %v229_v7, 4  ;;  %v283_v13 = vcombine.high %v4254_v8, %v4254_v8  ;;  %v203_v55 = vld [vmem:[%s4230_s14] sm:$0xf]  ;;  %s3462_s3 = sshll.u32 %s5061_s17, 4  ;;  %s7504_s25 = scalar_lea.hbm %s7556_s2, %s3618_s27  ;;  %s7506_s3 = int_to_ptr.vmem [resolvable:$true] %s3462_s3 }
  0x5f   : > { %v222_v10 = vsel %vm7606_vm0, %v210_v2, 0.0  ;;  %v236_v12 = vsel %vm7606_vm0, %v211_v3, 0.0  ;;  %v286_v17 = vsel %vm7606_vm0, %v4249_v5, 0.0  ;;  %v300_v21 = vsel %vm7606_vm0, %v4254_v8, 0.0  ;;  %s3449_s13 = scalar_lea.sflag [#allocation4], %s4218_s7  ;;  %s3983_s26 = scalar_lea.vmem %s7506_s3, 2048 }
  0x60   : > { %v217_v14 = vadd.f32 %v216_v6, %v215_v4  ;;  %v223_v15 = vrot.slane %v222_v10, 4  ;;  %v237_v16 = vrot.slane %v236_v12, 4  ;;  %v231_v18 = vadd.f32 %v230_v11, %v229_v7  ;;  %p3984_p13 = scmp.ne.s32.totalorder %s7506_s3, %s3983_s26  ;;  %p8003_p2 = scmp.ne.s32.totalorder %s7719_s20, 0 }
  0x61   : > { %v287_v19 = vrot.slane %v286_v17, 4  ;;  %v293_v20 = vsel %vm7606_vm0, %v282_v9, 0.0  ;;  %v301_v28 = vrot.slane %v300_v21, 4  ;;  %v307_v29 = vsel %vm7606_vm0, %v283_v13, 0.0  ;;  %s4063_s22 = smov [#allocation7]  }
  0x62   : > { %v218_v22 = vrot.slane %v217_v14, 2  ;;  %v224_v23 = vadd.f32 %v223_v15, %v222_v10  ;;  %v238_v24 = vadd.f32 %v237_v16, %v236_v12  ;;  %v294_v25 = vrot.slane %v293_v20, 4  ;;  %p3985_p12 = pnand %p3984_p13, %p8003_p2  ;;  %s3987_s29 = sshll.u32 %s4063_s22, 4  ;;  %s3988_s29 = int_to_ptr.vmem [resolvable:$false] %s3987_s29 }
  0x63   : > { %v232_v26 = vrot.slane %v231_v18, 2  ;;  %v288_v27 = vadd.f32 %v287_v19, %v286_v17  ;;  %v302_v36 = vadd.f32 %v301_v28, %v300_v21  ;;  %v308_v37 = vrot.slane %v307_v29, 4  ;;  %s3989_s4 = scalar_lea.vmem %s3988_s29, 4096  ;;  %p3990_p7 = scmp.lt.s32.totalorder %s7506_s3, %s3988_s29 }
  0x64   : > { %v219_v30 = vadd.f32 %v218_v22, %v217_v14  ;;  %v225_v31 = vrot.slane %v224_v23, 2  ;;  %v239_v32 = vrot.slane %v238_v24, 2  ;;  %v295_v33 = vadd.f32 %v294_v25, %v293_v20  ;;  %v4343_v25 = vld [vmem:[%s4222_s30 + $0x48] sm:$0xff]  ;;  %p3986_p5 = pneg %p3985_p12  ;;  %p3991_p8 = scmp.lt.s32.totalorder %s3989_s4, %s3983_s26 }
  0x65   : > { %v233_v34 = vadd.f32 %v232_v26, %v231_v18  ;;  %v289_v35 = vrot.slane %v288_v27, 2  ;;  %v303_v43 = vrot.slane %v302_v36, 2  ;;  %v309_v44 = vadd.f32 %v308_v37, %v307_v29 }
  0x66   : > { %v220_v38 = vrot.slane %v219_v30, 1  ;;  %v226_v39 = vadd.f32 %v225_v31, %v224_v23  ;;  %v240_v40 = vadd.f32 %v239_v32, %v238_v24  ;;  %v296_v41 = vrot.slane %v295_v33, 2  ;;  %v4340_v24 = vld [vmem:[%s4222_s30 + $0x40] sm:$0xff]  ;;  %p3992_p9 = por %p3991_p8, %p3990_p7 }
  0x67   : > { %v234_v42 = vrot.slane %v233_v34, 1  ;;  %v290_v48 = vadd.f32 %v289_v35, %v288_v27  ;;  %v304_v53 = vadd.f32 %v303_v43, %v302_v36  ;;  %v310_v54 = vrot.slane %v309_v44, 2 }
  0x68   : > { %v4268_v45 = vadd.f32 %v220_v38, %v219_v30  ;;  %v227_v46 = vrot.slane %v226_v39, 1  ;;  %v241_v47 = vrot.slane %v240_v40, 1  ;;  %v297_v50 = vadd.f32 %v296_v41, %v295_v33  ;;  %p3993_p11 = pnand %p3992_p9, %p3986_p5 }
  0x69   : > { %v4270_v49 = vadd.f32 %v234_v42, %v233_v34  ;;  %v291_v56 = vrot.slane %v290_v48, 1  ;;  %v305_v2 = vrot.slane %v304_v53, 1  ;;  %v204_v3 = vcvt.s32.f32 %v203_v55  ;;  %v4394_v55 = vld [vmem:[%s4222_s30 + $0x60] sm:$0xff] }
  0x6a   : > { %v4272_v51 = vadd.f32 %v227_v46, %v226_v39  ;;  %v4274_v52 = vadd.f32 %v241_v47, %v240_v40  ;;  %vm243_vm1 = vcmp.ne.f32.partialorder %v4268_v45, 0.0  ;;  %v298_v59 = vrot.slane %v297_v50, 1 }
  0x6b   : > { %vm7644_vm2 = vcmp.ne.f32.partialorder %v4270_v49, 0.0  ;;  %v247_v58 = vsel %vm243_vm1, 0.0, %v7562_v57  ;;  %v311_v4 = vadd.f32 %v310_v54, %v309_v44  ;;  %v4293_v6 = vadd.f32 %v291_v56, %v290_v48  ;;  %v4397_v56 = vld [vmem:[%s4222_s30 + $0x68] sm:$0xff] }
  0x6c   : > { %vm7643_vm3 = vcmp.ne.f32.partialorder %v4272_v51, 0.0  ;;  %vm7641_vm4 = vcmp.ne.f32.partialorder %v4274_v52, 0.0  ;;  %v249_v62 = vsel %vm7644_vm2, 0.0, %v7562_v57  ;;  %v4297_v10 = vadd.f32 %v298_v59, %v297_v50 }
  0x6d   : > { %v248_v61 = vsel %vm7643_vm3, 0.0, %v7562_v57  ;;  %v250_v63 = vsel %vm7641_vm4, 0.0, %v7562_v57  ;;  %v312_v11 = vrot.slane %v311_v4, 1  ;;  %v4299_v12 = vadd.f32 %v305_v2, %v304_v53 }
  0x6e   : > { %v265_v7 = vcombine.low %v247_v58, %v248_v61  ;;  %v4295_v9 = vcombine.low %v249_v62, %v250_v63  ;;  %7726 = vst [vmem:[#allocation11_spill] sm:$0xff] %v4297_v10  ;;  %v4302_v13 = vshrl.u32 %v7559_v60, 7  ;;  %3721 = vrcp.f32 %v204_v3 }
  0x6f   : > { %7727 = vst [vmem:[#allocation12_spill] sm:$0xff] %v4299_v12  ;;  %v7560_v14 = vmov 0.0   ;;  %v4314_v17 = vadd.f32 %v312_v11, %v311_v4  ;;  %vm7642_vm5 = vcmp.ne.f32.partialorder %v4293_v6, 0.0  ;;  %v4329_v20 = vadd.f32 %v4249_v5, %v4237_v0 }
  0x70   : > { %7728 = vst [vmem:[#allocation13_spill] sm:$0xff] %v4302_v13  ;;  %v4307_v15 = vsel %vm243_vm1, 1.0, %v7560_v14  ;;  %v4312_v16 = vsel %vm7644_vm2, 1.0, %v7560_v14  ;;  %v4319_v18 = vsel %vm7643_vm3, 1.0, %v7560_v14  ;;  %v4324_v19 = vsel %vm7641_vm4, 1.0, %v7560_v14 }
  0x71   : > { %7729 = vst [vmem:[#allocation14_spill] sm:$0xff] %v4314_v17  ;;  %v269_v21 = vsub.f32 %v4237_v0, %v265_v7  ;;  %vm7639_vm6 = vcmp.ne.f32.partialorder %v4297_v10, 0.0  ;;  %v4337_v23 = vadd.f32 %v4254_v8, %v4240_v1  ;;  %vm7640_vm7 = vcmp.ne.f32.partialorder %v4299_v12, 0.0 }
  0x72   : > { %vm7638_vm8 = vcmp.ne.f32.partialorder %v4314_v17, 0.0  ;;  %v353_v26 = vcombine.high %v4340_v24, %v4340_v24  ;;  %v354_v27 = vcombine.high %v4343_v25, %v4343_v25  ;;  %v318_v28 = vsel %vm7642_vm5, 0.0, %v7562_v57 }
  0x73   : > { %v319_v29 = vsel %vm7639_vm6, 0.0, %v7562_v57  ;;  %v320_v30 = vsel %vm7640_vm7, 0.0, %v7562_v57  ;;  %v321_v31 = vsel %vm7638_vm8, 0.0, %v7562_v57  ;;  %v357_v32 = vsel %vm7606_vm0, %v4340_v24, 0.0 }
  0x74   : > { %v364_v33 = vsel %vm7606_vm0, %v353_v26, 0.0  ;;  %v371_v34 = vsel %vm7606_vm0, %v4343_v25, 0.0  ;;  %v378_v35 = vsel %vm7606_vm0, %v354_v27, 0.0  ;;  %v4369_v36 = vmax.f32 %v269_v21, -100000.0 }
  0x75   : > { %v4372_v37 = vadd.f32 %v265_v7, %v4237_v0  ;;  %v4376_v38 = vadd.f32 %v4295_v9, %v4240_v1  ;;  %v4381_v39 = vsel %vm7642_vm5, 1.0, %v7560_v14  ;;  %v358_v40 = vrot.slane %v357_v32, 4 }
  0x76   : > { %v365_v41 = vrot.slane %v364_v33, 4  ;;  %v372_v42 = vrot.slane %v371_v34, 4  ;;  %v379_v43 = vrot.slane %v378_v35, 4  ;;  %v325_v44 = vsel %vm7639_vm6, 1.0, %v7560_v14 }
  0x77   : > { %v326_v0 = vsel %vm7640_vm7, 1.0, %v7560_v14  ;;  %v4389_v46 = vcombine.low %v318_v28, %v319_v29  ;;  %v4391_v47 = vcombine.low %v320_v30, %v321_v31  ;;  %v359_v48 = vadd.f32 %v358_v40, %v357_v32 }
  0x78   : > { %v366_v50 = vadd.f32 %v365_v41, %v364_v33  ;;  %v373_v53 = vadd.f32 %v372_v42, %v371_v34  ;;  %v380_v54 = vadd.f32 %v379_v43, %v378_v35  ;;  %v4399_v58 = vpop.eup %3721  ;;  %v424_v59 = vcombine.high %v4394_v55, %v4394_v55 }
  0x79   : > { %v425_v61 = vcombine.high %v4397_v56, %v4397_v56  ;;  %v428_v62 = vsel %vm7606_vm0, %v4394_v55, 0.0  ;;  %v442_v63 = vsel %vm7606_vm0, %v4397_v56, 0.0  ;;  %v360_v2 = vrot.slane %v359_v48, 2 }
  0x7a   : > { %v367_v3 = vrot.slane %v366_v50, 2  ;;  %v374_v4 = vrot.slane %v373_v53, 2  ;;  %v381_v7 = vrot.slane %v380_v54, 2  ;;  %v429_v11 = vrot.slane %v428_v62, 4 }
  0x7b   : > { %v435_v21 = vsel %vm7606_vm0, %v424_v59, 0.0  ;;  %v443_v26 = vrot.slane %v442_v63, 4  ;;  %v449_v27 = vsel %vm7606_vm0, %v425_v61, 0.0  ;;  %v361_v28 = vadd.f32 %v360_v2, %v359_v48 }
  0x7c   : > { %v368_v29 = vadd.f32 %v367_v3, %v366_v50  ;;  %v375_v30 = vadd.f32 %v374_v4, %v373_v53  ;;  %v382_v31 = vadd.f32 %v381_v7, %v380_v54  ;;  %v430_v32 = vadd.f32 %v429_v11, %v428_v62 }
  0x7d   : > { %v436_v33 = vrot.slane %v435_v21, 4  ;;  %v444_v34 = vadd.f32 %v443_v26, %v442_v63  ;;  %v450_v35 = vrot.slane %v449_v27, 4  ;;  %v362_v40 = vrot.slane %v361_v28, 1 }
  0x7e   : > { %v369_v41 = vrot.slane %v368_v29, 1  ;;  %v376_v42 = vrot.slane %v375_v30, 1  ;;  %v383_v43 = vrot.slane %v382_v31, 1  ;;  %v431_v60 = vrot.slane %v430_v32, 2 }
  0x7f   : > { %v437_v14 = vadd.f32 %v436_v33, %v435_v21  ;;  %v445_v22 = vrot.slane %v444_v34, 2  ;;  %v451_v57 = vadd.f32 %v450_v35, %v449_v27  ;;  %v4411_v59 = vadd.f32 %v362_v40, %v361_v28 }
  0x80   : > { %v4413_v10 = vadd.f32 %v369_v41, %v368_v29  ;;  %v4415_v48 = vadd.f32 %v376_v42, %v375_v30  ;;  %v4417_v50 = vadd.f32 %v383_v43, %v382_v31  ;;  %v432_v53 = vadd.f32 %v431_v60, %v430_v32 }
  0x81   : > { %7730 = vst [vmem:[#allocation15_spill] sm:$0xff] %v4411_v59  ;;  %v438_v54 = vrot.slane %v437_v14, 2  ;;  %v446_v61 = vadd.f32 %v445_v22, %v444_v34  ;;  %v452_v62 = vrot.slane %v451_v57, 2  ;;  %vm7637_vm9 = vcmp.ne.f32.partialorder %v4411_v59, 0.0 }
  0x82   : > { %7731 = vst [vmem:[#allocation16_spill] sm:$0xff] %v4413_v10  ;;  %7732 = vst [vmem:[#allocation17_spill] sm:$0xff] %v4415_v48  ;;  %vm7636_vm10 = vcmp.ne.f32.partialorder %v4413_v10, 0.0  ;;  %vm7635_vm11 = vcmp.ne.f32.partialorder %v4415_v48, 0.0  ;;  %vm7565_vm12 = vcmp.ne.f32.partialorder %v4417_v50, 0.0  ;;  %v7734_v63 = vmov 100000.0  }
  0x83   : > { %7733 = vst [vmem:[#allocation18_spill] sm:$0xff] %v4417_v50  ;;  %v389_v2 = vsel %vm7637_vm9, 0.0, %v7734_v63  ;;  %v390_v3 = vsel %vm7636_vm10, 0.0, %v7734_v63  ;;  %v391_v60 = vsel %vm7635_vm11, 0.0, %v7734_v63  ;;  %v392_v22 = vsel %vm7565_vm12, 0.0, %v7734_v63 }
  0x84   : > { %v7735_v4 = vsub.f32 %v4240_v1, %v4295_v9  ;;  %v7736_v11 = vmov 0.0   ;;  %v340_v26 = vsub.f32 %v4249_v5, %v4389_v46  ;;  %v341_v27 = vsub.f32 %v4254_v8, %v4391_v47 }
  0x85   : > { %v327_v21 = vsel %vm7638_vm8, 1.0, %v7736_v11  ;;  %v275_v28 = vmin.f32 %v4372_v37, 100000.0  ;;  %v276_v29 = vmin.f32 %v4376_v38, 100000.0  ;;  %v328_v30 = vadd.f32 %v4381_v39, %v4307_v15 }
  0x86   : > { %v272_v7 = vmax.f32 %v7735_v4, -100000.0  ;;  %v329_v1 = vadd.f32 %v325_v44, %v4319_v18  ;;  %v330_v9 = vadd.f32 %v326_v0, %v4312_v16  ;;  %v407_v31 = vcombine.low %v389_v2, %v390_v3 }
  0x87   : > { %v408_v32 = vcombine.low %v391_v60, %v392_v22  ;;  %v439_v33 = vadd.f32 %v438_v54, %v437_v14  ;;  %v331_v34 = vadd.f32 %v327_v21, %v4324_v19  ;;  %v433_v35 = vrot.slane %v432_v53, 1 }
  0x88   : > { %v447_v40 = vrot.slane %v446_v61, 1  ;;  %v453_v41 = vadd.f32 %v452_v62, %v451_v57  ;;  %v342_v42 = vmax.f32 %v4369_v36, %v340_v26  ;;  %v343_v37 = vmax.f32 %v272_v7, %v341_v27  ;;  %v4517_v7 = vld [vmem:[%s4222_s30 + $0x88] sm:$0xff] }
  0x89   : > { %v344_v38 = vadd.f32 %v4249_v5, %v4389_v46  ;;  %v345_v15 = vadd.f32 %v4254_v8, %v4391_v47  ;;  %v395_v16 = vsel %vm7637_vm9, 1.0, %v7736_v11  ;;  %v396_v14 = vsel %vm7636_vm10, 1.0, %v7736_v11 }
  0x8a   : > { %v440_v18 = vrot.slane %v439_v33, 1  ;;  %v454_v19 = vrot.slane %v453_v41, 1  ;;  %v397_v57 = vsel %vm7635_vm11, 1.0, %v7736_v11  ;;  %v398_v5 = vsel %vm7565_vm12, 1.0, %v7736_v11 }
  0x8b   : > { %v411_v8 = vsub.f32 %v4340_v24, %v407_v31  ;;  %v412_v36 = vsub.f32 %v4343_v25, %v408_v32  ;;  %v4471_v39 = vadd.f32 %v433_v35, %v432_v53  ;;  %v4475_v0 = vadd.f32 %v447_v40, %v446_v61 }
  0x8c   : > { %v4473_v44 = vadd.f32 %v440_v18, %v439_v33  ;;  %v4477_v46 = vadd.f32 %v454_v19, %v453_v41  ;;  %v4479_v47 = vmin.f32 %v275_v28, %v344_v38  ;;  %v4481_v43 = vmin.f32 %v276_v29, %v345_v15  ;;  %v4552_v15 = vld [vmem:[%s4222_s30 + $0xa0] sm:$0xff] }
  0x8d   : > { %7737 = vst [vmem:[#allocation19_spill] sm:$0xff] %v4471_v39  ;;  %7739 = vst [vmem:[#allocation21_spill] sm:$0xff] %v4475_v0  ;;  %v4485_v54 = vadd.f32 %v4340_v24, %v4329_v20  ;;  %v4489_v53 = vadd.f32 %v4343_v25, %v4337_v23  ;;  %v4491_v62 = vadd.f32 %v395_v16, %v328_v30  ;;  %vm7575_vm13 = vcmp.ne.f32.partialorder %v4471_v39, 0.0  ;;  %v4514_v23 = vld [vmem:[%s4222_s30 + $0x80] sm:$0xff]  ;;  %v4555_v16 = vld [vmem:[%s4222_s30 + $0xa8] sm:$0xff] }
  0x8e   : > { %7738 = vst [vmem:[#allocation20_spill] sm:$0xff] %v4473_v44  ;;  %7740 = vst [vmem:[#allocation22_spill] sm:$0xff] %v4477_v46  ;;  %v4493_v61 = vadd.f32 %v396_v14, %v329_v1  ;;  %v4495_v2 = vadd.f32 %v397_v57, %v330_v9  ;;  %v4497_v3 = vadd.f32 %v398_v5, %v331_v34  ;;  %vm7574_vm14 = vcmp.ne.f32.partialorder %v4473_v44, 0.0 }
  0x8f   : > { %v4499_v60 = vmax.f32 %v342_v42, %v411_v8  ;;  %v4501_v22 = vmax.f32 %v343_v37, %v412_v36  ;;  %v4504_v4 = vadd.f32 %v4340_v24, %v407_v31  ;;  %v4507_v20 = vadd.f32 %v4343_v25, %v408_v32 }
  0x90   : > { %vm7573_vm15 = vcmp.ne.f32.partialorder %v4475_v0, 0.0  ;;  %vm7572_vm12 = vcmp.ne.f32.partialorder %v4477_v46, 0.0  ;;  %v495_v21 = vcombine.high %v4514_v23, %v4514_v23  ;;  %v496_v24 = vcombine.high %v4517_v7, %v4517_v7 }
  0x91   : > { %v499_v25 = vsel %vm7606_vm0, %v4514_v23, 0.0  ;;  %v513_v26 = vsel %vm7606_vm0, %v4517_v7, 0.0  ;;  %v460_v27 = vsel %vm7575_vm13, 0.0, %v7734_v63  ;;  %v461_v28 = vsel %vm7574_vm14, 0.0, %v7734_v63 }
  0x92   : > { %v462_v29 = vsel %vm7573_vm15, 0.0, %v7734_v63  ;;  %v463_v30 = vsel %vm7572_vm12, 0.0, %v7734_v63  ;;  %v500_v1 = vrot.slane %v499_v25, 4  ;;  %v506_v9 = vsel %vm7606_vm0, %v495_v21, 0.0 }
  0x93   : > { %v514_v31 = vrot.slane %v513_v26, 4  ;;  %v520_v32 = vsel %vm7606_vm0, %v496_v24, 0.0  ;;  %v466_v35 = vsel %vm7575_vm13, 1.0, %v7736_v11  ;;  %v468_v40 = vsel %vm7573_vm15, 1.0, %v7736_v11 }
  0x94   : > { %v501_v41 = vadd.f32 %v500_v1, %v499_v25  ;;  %v507_v42 = vrot.slane %v506_v9, 4  ;;  %v521_v38 = vrot.slane %v520_v32, 4  ;;  %v4557_v14 = vcombine.low %v460_v27, %v461_v28 }
  0x95   : > { %v515_v37 = vadd.f32 %v514_v31, %v513_v26  ;;  %v4559_v18 = vcombine.low %v462_v29, %v463_v30  ;;  %v566_v19 = vcombine.high %v4552_v15, %v4552_v15  ;;  %v567_v57 = vcombine.high %v4555_v16, %v4555_v16 }
  0x96   : > { %v502_v5 = vrot.slane %v501_v41, 2  ;;  %v508_v8 = vadd.f32 %v507_v42, %v506_v9  ;;  %v522_v21 = vadd.f32 %v521_v38, %v520_v32  ;;  %v570_v24 = vsel %vm7606_vm0, %v4552_v15, 0.0 }
  0x97   : > { %v516_v36 = vrot.slane %v515_v37, 2  ;;  %v577_v25 = vsel %vm7606_vm0, %v566_v19, 0.0  ;;  %v584_v26 = vsel %vm7606_vm0, %v4555_v16, 0.0  ;;  %v591_v27 = vsel %vm7606_vm0, %v567_v57, 0.0 }
  0x98   : > { %v503_v28 = vadd.f32 %v502_v5, %v501_v41  ;;  %v509_v29 = vrot.slane %v508_v8, 2  ;;  %v523_v1 = vrot.slane %v522_v21, 2  ;;  %v571_v31 = vrot.slane %v570_v24, 4 }
  0x99   : > { %v517_v30 = vadd.f32 %v516_v36, %v515_v37  ;;  %v578_v34 = vrot.slane %v577_v25, 4  ;;  %v585_v33 = vrot.slane %v584_v26, 4  ;;  %v592_v9 = vrot.slane %v591_v27, 4 }
  0x9a   : > { %v504_v42 = vrot.slane %v503_v28, 1  ;;  %v510_v32 = vadd.f32 %v509_v29, %v508_v8  ;;  %v524_v0 = vadd.f32 %v523_v1, %v522_v21  ;;  %v572_v39 = vadd.f32 %v571_v31, %v570_v24 }
  0x9b   : > { %v518_v38 = vrot.slane %v517_v30, 1  ;;  %v579_v50 = vadd.f32 %v578_v34, %v577_v25  ;;  %v586_v19 = vadd.f32 %v585_v33, %v584_v26  ;;  %v593_v48 = vadd.f32 %v592_v9, %v591_v27 }
  0x9c   : > { %v4571_v10 = vadd.f32 %v504_v42, %v503_v28  ;;  %v511_v59 = vrot.slane %v510_v32, 1  ;;  %v525_v41 = vrot.slane %v524_v0, 1  ;;  %v467_v37 = vsel %vm7574_vm14, 1.0, %v7736_v11 }
  0x9d   : > { %v4573_v57 = vadd.f32 %v518_v38, %v517_v30  ;;  %v469_v5 = vsel %vm7572_vm12, 1.0, %v7736_v11  ;;  %v482_v8 = vsub.f32 %v4394_v55, %v4557_v14  ;;  %v483_v33 = vsub.f32 %v4397_v56, %v4559_v18 }
  0x9e   : > { %7741 = vst [vmem:[#allocation23_spill] sm:$0xff] %v4571_v10  ;;  %v486_v34 = vadd.f32 %v4394_v55, %v4557_v14  ;;  %v487_v36 = vadd.f32 %v4397_v56, %v4559_v18  ;;  %v4589_v21 = vadd.f32 %v511_v59, %v510_v32  ;;  %v4591_v24 = vadd.f32 %v525_v41, %v524_v0 }
  0x9f   : > { %7742 = vst [vmem:[#allocation24_spill] sm:$0xff] %v4573_v57  ;;  %v573_v25 = vrot.slane %v572_v39, 2  ;;  %v580_v26 = vrot.slane %v579_v50, 2  ;;  %v587_v27 = vrot.slane %v586_v19, 2  ;;  %v594_v28 = vrot.slane %v593_v48, 2 }
  0xa0   : > { %7743 = vst [vmem:[#allocation25_spill] sm:$0xff] %v4589_v21  ;;  %7744 = vst [vmem:[#allocation26_spill] sm:$0xff] %v4591_v24  ;;  %vm7583_vm12 = vcmp.ne.f32.partialorder %v4571_v10, 0.0  ;;  %vm7582_vm15 = vcmp.ne.f32.partialorder %v4589_v21, 0.0  ;;  %vm7581_vm14 = vcmp.ne.f32.partialorder %v4573_v57, 0.0  ;;  %vm7580_vm13 = vcmp.ne.f32.partialorder %v4591_v24, 0.0 }
  0xa1   : > { %v531_v14 = vsel %vm7583_vm12, 0.0, %v7734_v63  ;;  %v532_v59 = vsel %vm7582_vm15, 0.0, %v7734_v63  ;;  %v533_v0 = vsel %vm7581_vm14, 0.0, %v7734_v63  ;;  %v534_v18 = vsel %vm7580_vm13, 0.0, %v7734_v63 }
  0xa2   : > { %v464_v29 = vadd.f32 %v4394_v55, %v4485_v54  ;;  %v465_v30 = vadd.f32 %v4397_v56, %v4489_v53  ;;  %v470_v1 = vadd.f32 %v466_v35, %v4491_v62  ;;  %v472_v31 = vadd.f32 %v468_v40, %v4495_v2 }
  0xa3   : > { %v574_v9 = vadd.f32 %v573_v25, %v572_v39  ;;  %v581_v42 = vadd.f32 %v580_v26, %v579_v50  ;;  %v588_v32 = vadd.f32 %v587_v27, %v586_v19  ;;  %v595_v38 = vadd.f32 %v594_v28, %v593_v48  ;;  %v4650_v19 = vld [vmem:[%s4222_s30 + $0xc0] sm:$0xff] }
  0xa4   : > { %v471_v41 = vadd.f32 %v467_v37, %v4493_v61  ;;  %v473_v46 = vadd.f32 %v469_v5, %v4497_v3  ;;  %v549_v44 = vcombine.low %v531_v14, %v532_v59  ;;  %v550_v17 = vcombine.low %v533_v0, %v534_v18 }
  0xa5   : > { %v484_v12 = vmax.f32 %v4499_v60, %v482_v8  ;;  %v485_v54 = vmax.f32 %v4501_v22, %v483_v33  ;;  %v7745_v53 = vmin.f32 %v4479_v47, %v4504_v4  ;;  %v7746_v50 = vmin.f32 %v4481_v43, %v4507_v20  ;;  %v4657_v33 = vld [vmem:[%s4222_s30 + $0xc8] sm:$0xff] }
  0xa6   : > { %v537_v39 = vsel %vm7583_vm12, 1.0, %v7736_v11  ;;  %v538_v61 = vsel %vm7582_vm15, 1.0, %v7736_v11  ;;  %v539_v47 = vsel %vm7581_vm14, 1.0, %v7736_v11  ;;  %v540_v2 = vsel %vm7580_vm13, 1.0, %v7736_v11 }
  0xa7   : > { %v4622_v62 = vmin.f32 %v7745_v53, %v486_v34  ;;  %v4627_v48 = vmin.f32 %v7746_v50, %v487_v36  ;;  %v575_v43 = vrot.slane %v574_v9, 1  ;;  %v582_v3 = vrot.slane %v581_v42, 1 }
  0xa8   : > { %v589_v60 = vrot.slane %v588_v32, 1  ;;  %v596_v22 = vrot.slane %v595_v38, 1  ;;  %v553_v4 = vsub.f32 %v4514_v23, %v549_v44  ;;  %v554_v20 = vsub.f32 %v4517_v7, %v550_v17 }
  0xa9   : > { %v4644_v35 = vadd.f32 %v4514_v23, %v549_v44  ;;  %v4647_v40 = vadd.f32 %v4517_v7, %v550_v17  ;;  %v535_v37 = vadd.f32 %v4514_v23, %v464_v29  ;;  %v536_v5 = vadd.f32 %v4517_v7, %v465_v30 }
  0xaa   : > { %v4654_v8 = vadd.f32 %v537_v39, %v470_v1  ;;  %v637_v34 = vcombine.high %v4650_v19, %v4650_v19  ;;  %v4661_v36 = vadd.f32 %v538_v61, %v471_v41  ;;  %v4663_v44 = vadd.f32 %v539_v47, %v472_v31 }
  0xab   : > { %v4665_v25 = vadd.f32 %v540_v2, %v473_v46  ;;  %v638_v17 = vcombine.high %v4657_v33, %v4657_v33  ;;  %v4669_v26 = vadd.f32 %v575_v43, %v574_v9  ;;  %v4671_v23 = vadd.f32 %v582_v3, %v581_v42  ;;  %v4714_v3 = vld [vmem:[%s4222_s30 + $0xe0] sm:$0xff] }
  0xac   : > { %v4673_v7 = vadd.f32 %v589_v60, %v588_v32  ;;  %v4675_v27 = vadd.f32 %v596_v22, %v595_v38  ;;  %v4677_v28 = vmax.f32 %v484_v12, %v553_v4  ;;  %v4679_v14 = vmax.f32 %v485_v54, %v554_v20  ;;  %v4717_v60 = vld [vmem:[%s4222_s30 + $0xe8] sm:$0xff] }
  0xad   : > { %7747 = vst [vmem:[#allocation27_spill] sm:$0xff] %v4669_v26  ;;  %7748 = vst [vmem:[#allocation28_spill] sm:$0xff] %v4671_v23  ;;  %v4686_v0 = vadd.f32 %v4552_v15, %v535_v37  ;;  %v4689_v18 = vadd.f32 %v4555_v16, %v536_v5  ;;  %v641_v29 = vsel %vm7606_vm0, %v4650_v19, 0.0  ;;  %v648_v12 = vsel %vm7606_vm0, %v637_v34, 0.0 }
  0xae   : > { %7749 = vst [vmem:[#allocation29_spill] sm:$0xff] %v4673_v7  ;;  %7750 = vst [vmem:[#allocation30_spill] sm:$0xff] %v4675_v27  ;;  %v642_v30 = vrot.slane %v641_v29, 4  ;;  %v649_v1 = vrot.slane %v648_v12, 4  ;;  %v655_v31 = vsel %vm7606_vm0, %v4657_v33, 0.0  ;;  %v662_v9 = vsel %vm7606_vm0, %v638_v17, 0.0 }
  0xaf   : > { %vm7594_vm13 = vcmp.ne.f32.partialorder %v4669_v26, 0.0  ;;  %vm7593_vm14 = vcmp.ne.f32.partialorder %v4671_v23, 0.0  ;;  %vm7592_vm15 = vcmp.ne.f32.partialorder %v4673_v7, 0.0  ;;  %vm7591_vm12 = vcmp.ne.f32.partialorder %v4675_v27, 0.0 }
  0xb0   : > { %v643_v42 = vadd.f32 %v642_v30, %v641_v29  ;;  %v650_v32 = vadd.f32 %v649_v1, %v648_v12  ;;  %v656_v38 = vrot.slane %v655_v31, 4  ;;  %v663_v41 = vrot.slane %v662_v9, 4 }
  0xb1   : > { %v602_v54 = vsel %vm7594_vm13, 0.0, %v7734_v63  ;;  %v603_v53 = vsel %vm7593_vm14, 0.0, %v7734_v63  ;;  %v604_v50 = vsel %vm7592_vm15, 0.0, %v7734_v63  ;;  %v605_v39 = vsel %vm7591_vm12, 0.0, %v7734_v63 }
  0xb2   : > { %v644_v61 = vrot.slane %v643_v42, 2  ;;  %v651_v47 = vrot.slane %v650_v32, 2  ;;  %v657_v2 = vadd.f32 %v656_v38, %v655_v31  ;;  %v664_v43 = vadd.f32 %v663_v41, %v662_v9 }
  0xb3   : > { %v608_v22 = vsel %vm7594_vm13, 1.0, %v7736_v11  ;;  %v609_v4 = vsel %vm7593_vm14, 1.0, %v7736_v11  ;;  %v708_v20 = vcombine.high %v4714_v3, %v4714_v3  ;;  %v709_v37 = vcombine.high %v4717_v60, %v4717_v60 }
  0xb4   : > { %v645_v5 = vadd.f32 %v644_v61, %v643_v42  ;;  %v652_v34 = vadd.f32 %v651_v47, %v650_v32  ;;  %v658_v17 = vrot.slane %v657_v2, 2  ;;  %v665_v29 = vrot.slane %v664_v43, 2 }
  0xb5   : > { %v712_v12 = vsel %vm7606_vm0, %v4714_v3, 0.0  ;;  %v719_v30 = vsel %vm7606_vm0, %v708_v20, 0.0  ;;  %v726_v1 = vsel %vm7606_vm0, %v4717_v60, 0.0  ;;  %v733_v31 = vsel %vm7606_vm0, %v709_v37, 0.0 }
  0xb6   : > { %v646_v9 = vrot.slane %v645_v5, 1  ;;  %v653_v38 = vrot.slane %v652_v34, 1  ;;  %v659_v41 = vadd.f32 %v658_v17, %v657_v2  ;;  %v666_v46 = vadd.f32 %v665_v29, %v664_v43 }
  0xb7   : > { %v713_v59 = vrot.slane %v712_v12, 4  ;;  %v720_v23 = vrot.slane %v719_v30, 4  ;;  %v727_v42 = vrot.slane %v726_v1, 4  ;;  %v734_v32 = vrot.slane %v733_v31, 4 }
  0xb8   : > { %v620_v61 = vcombine.low %v602_v54, %v603_v53  ;;  %v621_v47 = vcombine.low %v604_v50, %v605_v39  ;;  %v660_v26 = vrot.slane %v659_v41, 1  ;;  %v667_v24 = vrot.slane %v666_v46, 1 }
  0xb9   : > { %v610_v20 = vsel %vm7592_vm15, 1.0, %v7736_v11  ;;  %v611_v37 = vsel %vm7591_vm12, 1.0, %v7736_v11  ;;  %v4741_v57 = vadd.f32 %v646_v9, %v645_v5  ;;  %v4743_v2 = vadd.f32 %v653_v38, %v652_v34 }
  0xba   : > { %v612_v43 = vadd.f32 %v608_v22, %v4654_v8  ;;  %v613_v17 = vadd.f32 %v609_v4, %v4661_v36  ;;  %v4747_v54 = vadd.f32 %v660_v26, %v659_v41  ;;  %v4749_v53 = vadd.f32 %v667_v24, %v666_v46 }
  0xbb   : > { %7751 = vst [vmem:[#allocation31_spill] sm:$0xff] %v4741_v57  ;;  %7752 = vst [vmem:[#allocation32_spill] sm:$0xff] %v4743_v2  ;;  %v714_v50 = vadd.f32 %v713_v59, %v712_v12  ;;  %v721_v39 = vadd.f32 %v720_v23, %v719_v30  ;;  %v728_v29 = vadd.f32 %v727_v42, %v726_v1  ;;  %vm7598_vm12 = vcmp.ne.f32.partialorder %v4741_v57, 0.0 }
  0xbc   : > { %7753 = vst [vmem:[#allocation33_spill] sm:$0xff] %v4747_v54  ;;  %7754 = vst [vmem:[#allocation34_spill] sm:$0xff] %v4749_v53  ;;  %v735_v7 = vadd.f32 %v734_v32, %v733_v31  ;;  %v624_v21 = vsub.f32 %v4552_v15, %v620_v61  ;;  %v625_v27 = vsub.f32 %v4555_v16, %v621_v47  ;;  %vm7597_vm15 = vcmp.ne.f32.partialorder %v4743_v2, 0.0 }
  0xbd   : > { %v628_v5 = vadd.f32 %v4552_v15, %v620_v61  ;;  %v629_v34 = vadd.f32 %v4555_v16, %v621_v47  ;;  %vm7596_vm14 = vcmp.ne.f32.partialorder %v4747_v54, 0.0  ;;  %vm7595_vm13 = vcmp.ne.f32.partialorder %v4749_v53, 0.0  ;;  %v4788_v61 = vld [vmem:[%s4222_s30 + $0x100] sm:$0xff] }
  0xbe   : > { %v673_v24 = vsel %vm7598_vm12, 0.0, %v7734_v63  ;;  %v674_v8 = vsel %vm7597_vm15, 0.0, %v7734_v63  ;;  %v675_v15 = vsel %vm7596_vm14, 0.0, %v7734_v63  ;;  %v676_v16 = vsel %vm7595_vm13, 0.0, %v7734_v63 }
  0xbf   : > { %v715_v36 = vrot.slane %v714_v50, 2  ;;  %v722_v26 = vrot.slane %v721_v39, 2  ;;  %v729_v23 = vrot.slane %v728_v29, 2  ;;  %v736_v59 = vrot.slane %v735_v7, 2 }
  0xc0   : > { %v614_v46 = vadd.f32 %v610_v20, %v4663_v44  ;;  %v615_v22 = vadd.f32 %v611_v37, %v4665_v25  ;;  %v626_v4 = vmax.f32 %v4677_v28, %v624_v21  ;;  %v627_v12 = vmax.f32 %v4679_v14, %v625_v27 }
  0xc1   : > { %v716_v30 = vadd.f32 %v715_v36, %v714_v50  ;;  %v723_v1 = vadd.f32 %v722_v26, %v721_v39  ;;  %v730_v31 = vadd.f32 %v729_v23, %v728_v29  ;;  %v737_v9 = vadd.f32 %v736_v59, %v735_v7 }
  0xc2   : > { %v7755_v38 = vmin.f32 %v4622_v62, %v4644_v35  ;;  %v7756_v44 = vmin.f32 %v4627_v48, %v4647_v40  ;;  %v691_v25 = vcombine.low %v673_v24, %v674_v8  ;;  %v692_v32 = vcombine.low %v675_v15, %v676_v16  ;;  %v4801_v40 = vld [vmem:[%s4222_s30 + $0x108] sm:$0xff] }
  0xc3   : > { %v677_v21 = vadd.f32 %v4650_v19, %v4686_v0  ;;  %v717_v27 = vrot.slane %v716_v30, 1  ;;  %v724_v28 = vrot.slane %v723_v1, 1  ;;  %v731_v14 = vrot.slane %v730_v31, 1 }
  0xc4   : > { %v4778_v41 = vmin.f32 %v7755_v38, %v628_v5  ;;  %v4783_v42 = vmin.f32 %v7756_v44, %v629_v34  ;;  %v4792_v62 = vadd.f32 %v4657_v33, %v4689_v18  ;;  %v679_v48 = vsel %vm7598_vm12, 1.0, %v7736_v11 }
  0xc5   : > { %v680_v35 = vsel %vm7597_vm15, 1.0, %v7736_v11  ;;  %v779_v7 = vcombine.high %v4788_v61, %v4788_v61  ;;  %v681_v0 = vsel %vm7596_vm14, 1.0, %v7736_v11  ;;  %v682_v18 = vsel %vm7595_vm13, 1.0, %v7736_v11 }
  0xc6   : > { %v738_v47 = vrot.slane %v737_v9, 1  ;;  %v780_v20 = vcombine.high %v4801_v40, %v4801_v40  ;;  %v695_v37 = vsub.f32 %v4650_v19, %v691_v25  ;;  %v696_v50 = vsub.f32 %v4657_v33, %v692_v32 }
  0xc7   : > { %v4816_v39 = vadd.f32 %v4650_v19, %v691_v25  ;;  %v4818_v29 = vadd.f32 %v717_v27, %v716_v30  ;;  %v4820_v5 = vadd.f32 %v679_v48, %v612_v43  ;;  %v4822_v34 = vadd.f32 %v680_v35, %v613_v17 }
  0xc8   : > { %v4824_v24 = vadd.f32 %v724_v28, %v723_v1  ;;  %v4826_v8 = vadd.f32 %v731_v14, %v730_v31  ;;  %v4828_v15 = vadd.f32 %v681_v0, %v614_v46  ;;  %v4830_v16 = vadd.f32 %v682_v18, %v615_v22 }
  0xc9   : > { %7757 = vst [vmem:[#allocation35_spill] sm:$0xff] %v4818_v29  ;;  %v783_v36 = vsel %vm7606_vm0, %v4788_v61, 0.0  ;;  %v790_v19 = vsel %vm7606_vm0, %v779_v7, 0.0  ;;  %v4836_v26 = vadd.f32 %v4657_v33, %v692_v32  ;;  %v4838_v43 = vadd.f32 %v738_v47, %v737_v9 }
  0xca   : > { %7758 = vst [vmem:[#allocation36_spill] sm:$0xff] %v4824_v24  ;;  %v797_v17 = vsel %vm7606_vm0, %v4801_v40, 0.0  ;;  %v804_v23 = vsel %vm7606_vm0, %v780_v20, 0.0  ;;  %v4843_v59 = vmax.f32 %v626_v4, %v695_v37  ;;  %v4845_v46 = vmax.f32 %v627_v12, %v696_v50  ;;  %v4875_v20 = vld [vmem:[%s4222_s30 + $0x120] sm:$0xff]  ;;  %v4878_v37 = vld [vmem:[%s4222_s30 + $0x128] sm:$0xff] }
  0xcb   : > { %vm7634_vm13 = vcmp.ne.f32.partialorder %v4818_v29, 0.0  ;;  %vm7609_vm14 = vcmp.ne.f32.partialorder %v4824_v24, 0.0  ;;  %vm7608_vm15 = vcmp.ne.f32.partialorder %v4826_v8, 0.0  ;;  %v784_v33 = vrot.slane %v783_v36, 4 }
  0xcc   : > { %v791_v30 = vrot.slane %v790_v19, 4  ;;  %v744_v1 = vsel %vm7634_vm13, 0.0, %v7734_v63  ;;  %v745_v4 = vsel %vm7609_vm14, 0.0, %v7734_v63  ;;  %v798_v12 = vrot.slane %v797_v17, 4 }
  0xcd   : > { %v805_v31 = vrot.slane %v804_v23, 4  ;;  %vm7607_vm12 = vcmp.ne.f32.partialorder %v4838_v43, 0.0  ;;  %v746_v38 = vsel %vm7608_vm15, 0.0, %v7734_v63  ;;  %v748_v44 = vadd.f32 %v4714_v3, %v677_v21 }
  0xce   : > { %v785_v25 = vadd.f32 %v784_v33, %v783_v36  ;;  %v792_v32 = vadd.f32 %v791_v30, %v790_v19  ;;  %v799_v27 = vadd.f32 %v798_v12, %v797_v17  ;;  %v747_v14 = vsel %vm7607_vm12, 0.0, %v7734_v63 }
  0xcf   : > { %v806_v28 = vadd.f32 %v805_v31, %v804_v23  ;;  %v750_v48 = vsel %vm7634_vm13, 1.0, %v7736_v11  ;;  %v751_v35 = vsel %vm7609_vm14, 1.0, %v7736_v11  ;;  %v762_v7 = vcombine.low %v744_v1, %v745_v4 }
  0xd0   : > { %v786_v0 = vrot.slane %v785_v25, 2  ;;  %v793_v18 = vrot.slane %v792_v32, 2  ;;  %v800_v21 = vrot.slane %v799_v27, 2  ;;  %v850_v50 = vcombine.high %v4875_v20, %v4875_v20 }
  0xd1   : > { %v807_v47 = vrot.slane %v806_v28, 2  ;;  %v851_v36 = vcombine.high %v4878_v37, %v4878_v37  ;;  %v854_v19 = vsel %vm7606_vm0, %v4875_v20, 0.0  ;;  %v868_v17 = vsel %vm7606_vm0, %v4878_v37, 0.0 }
  0xd2   : > { %v787_v23 = vadd.f32 %v786_v0, %v785_v25  ;;  %v794_v33 = vadd.f32 %v793_v18, %v792_v32  ;;  %v801_v30 = vadd.f32 %v800_v21, %v799_v27  ;;  %v855_v4 = vrot.slane %v854_v19, 4 }
  0xd3   : > { %v808_v1 = vadd.f32 %v807_v47, %v806_v28  ;;  %v861_v12 = vsel %vm7606_vm0, %v850_v50, 0.0  ;;  %v869_v31 = vrot.slane %v868_v17, 4  ;;  %v875_v9 = vsel %vm7606_vm0, %v851_v36, 0.0 }
  0xd4   : > { %v788_v22 = vrot.slane %v787_v23, 1  ;;  %v795_v24 = vrot.slane %v794_v33, 1  ;;  %v802_v29 = vrot.slane %v801_v30, 1  ;;  %v856_v54 = vadd.f32 %v855_v4, %v854_v19 }
  0xd5   : > { %v809_v53 = vrot.slane %v808_v1, 1  ;;  %v862_v2 = vrot.slane %v861_v12, 4  ;;  %v870_v57 = vadd.f32 %v869_v31, %v868_v17  ;;  %v876_v10 = vrot.slane %v875_v9, 4 }
  0xd6   : > { %v749_v25 = vadd.f32 %v4717_v60, %v4792_v62  ;;  %v752_v32 = vsel %vm7608_vm15, 1.0, %v7736_v11  ;;  %v753_v27 = vsel %vm7607_vm12, 1.0, %v7736_v11  ;;  %v763_v28 = vcombine.low %v746_v38, %v747_v14 }
  0xd7   : > { %v754_v0 = vadd.f32 %v750_v48, %v4820_v5  ;;  %v755_v18 = vadd.f32 %v751_v35, %v4822_v34  ;;  %v766_v21 = vsub.f32 %v4714_v3, %v762_v7  ;;  %v4901_v47 = vadd.f32 %v788_v22, %v787_v23 }
  0xd8   : > { %v4903_v50 = vadd.f32 %v795_v24, %v794_v33  ;;  %v4905_v62 = vadd.f32 %v802_v29, %v801_v30  ;;  %v857_v36 = vrot.slane %v856_v54, 2  ;;  %v863_v19 = vadd.f32 %v862_v2, %v861_v12 }
  0xd9   : > { %v756_v17 = vadd.f32 %v752_v32, %v4828_v15  ;;  %v4908_v4 = vadd.f32 %v809_v53, %v808_v1  ;;  %v871_v31 = vrot.slane %v870_v57, 2  ;;  %v877_v38 = vadd.f32 %v876_v10, %v875_v9 }
  0xda   : > { %v757_v5 = vadd.f32 %v753_v27, %v4830_v16  ;;  %v767_v34 = vsub.f32 %v4717_v60, %v763_v28  ;;  %v819_v14 = vadd.f32 %v4788_v61, %v748_v44  ;;  %v820_v22 = vadd.f32 %v4801_v40, %v749_v25 }
  0xdb   : > { %7759 = vst [vmem:[#allocation37_spill] sm:$0xff] %v4908_v4  ;;  %v768_v24 = vmax.f32 %v4843_v59, %v766_v21  ;;  %v770_v29 = vadd.f32 %v4714_v3, %v762_v7  ;;  %v771_v2 = vadd.f32 %v4717_v60, %v763_v28  ;;  %vm7613_vm0 = vcmp.ne.f32.partialorder %v4901_v47, 0.0 }
  0xdc   : > { %vm7612_vm12 = vcmp.ne.f32.partialorder %v4903_v50, 0.0  ;;  %vm7611_vm15 = vcmp.ne.f32.partialorder %v4905_v62, 0.0  ;;  %v858_v10 = vadd.f32 %v857_v36, %v856_v54  ;;  %v864_v53 = vrot.slane %v863_v19, 2 }
  0xdd   : > { %vm7610_vm14 = vcmp.ne.f32.partialorder %v4908_v4, 0.0  ;;  %v815_v15 = vsel %vm7613_vm0, 0.0, %v7734_v63  ;;  %v872_v16 = vadd.f32 %v871_v31, %v870_v57  ;;  %v878_v59 = vrot.slane %v877_v38, 2 }
  0xde   : > { %v816_v3 = vsel %vm7612_vm12, 0.0, %v7734_v63  ;;  %v817_v60 = vsel %vm7611_vm15, 0.0, %v7734_v63  ;;  %v818_v54 = vsel %vm7610_vm14, 0.0, %v7734_v63  ;;  %v821_v9 = vsel %vm7613_vm0, 1.0, %v7736_v11 }
  0xdf   : > { %v859_v44 = vrot.slane %v858_v10, 1  ;;  %v865_v48 = vadd.f32 %v864_v53, %v863_v19  ;;  %v873_v57 = vrot.slane %v872_v16, 1  ;;  %v879_v35 = vadd.f32 %v878_v59, %v877_v38 }
  0xe0   : > { %v769_v7 = vmax.f32 %v4845_v46, %v767_v34  ;;  %v7760_v23 = vmin.f32 %v4778_v41, %v4816_v39  ;;  %v822_v30 = vsel %vm7612_vm12, 1.0, %v7736_v11  ;;  %v823_v1 = vsel %vm7611_vm15, 1.0, %v7736_v11 }
  0xe1   : > { %v7761_v12 = vmin.f32 %v4783_v42, %v4836_v26  ;;  %v833_v32 = vcombine.low %v815_v15, %v816_v3  ;;  %v866_v46 = vrot.slane %v865_v48, 1  ;;  %v880_v27 = vrot.slane %v879_v35, 1 }
  0xe2   : > { %v4940_v33 = vmin.f32 %v7760_v23, %v770_v29  ;;  %v824_v41 = vsel %vm7610_vm14, 1.0, %v7736_v11  ;;  %v825_v39 = vadd.f32 %v821_v9, %v754_v0  ;;  %v834_v28 = vcombine.low %v817_v60, %v818_v54 }
  0xe3   : > { %v4951_v25 = vmin.f32 %v7761_v12, %v771_v2  ;;  %v4956_v21 = vadd.f32 %v859_v44, %v858_v10  ;;  %v826_v36 = vadd.f32 %v822_v30, %v755_v18  ;;  %v827_v19 = vadd.f32 %v823_v1, %v756_v17 }
  0xe4   : > { %v4958_v31 = vadd.f32 %v866_v46, %v865_v48  ;;  %v4960_v38 = vadd.f32 %v873_v57, %v872_v16  ;;  %v7618_v42 = vsub.s32 0, %v4302_v13  ;;  %v7617_v26 = vsub.s32 1, %v4302_v13 }
  0xe5   : > { %7762 = vst [vmem:[#allocation38_spill] sm:$0xff] %v4956_v21  ;;  %v7616_v34 = vsub.s32 2, %v4302_v13  ;;  %v7615_v29 = vsub.s32 3, %v4302_v13  ;;  %v828_v2 = vadd.f32 %v824_v41, %v757_v5  ;;  %v837_v0 = vsub.f32 %v4788_v61, %v833_v32  ;;  %v3885_v41 = vld [vmem:[%s4222_s30] sm:$0xff] }
  0xe6   : > { %7763 = vst [vmem:[#allocation39_spill] sm:$0xff] %v4958_v31  ;;  %7764 = vst [vmem:[#allocation40_spill] sm:$0xff] %v4960_v38  ;;  %v4967_v10 = vadd.f32 %v880_v27, %v879_v35  ;;  %v890_v18 = vadd.f32 %v4875_v20, %v819_v14  ;;  %v838_v17 = vsub.f32 %v4801_v40, %v834_v28  ;;  %vm7633_vm14 = vcmp.ne.f32.partialorder %v4956_v21, 0.0 }
  0xe7   : > { %vm7632_vm15 = vcmp.ne.f32.partialorder %v4958_v31, 0.0  ;;  %v891_v53 = vadd.f32 %v4878_v37, %v820_v22  ;;  %v4975_v15 = vadd.f32 %v4788_v61, %v833_v32  ;;  %vm7631_vm12 = vcmp.ne.f32.partialorder %v4960_v38, 0.0 }
  0xe8   : > { %7765 = vst [vmem:[#allocation41_spill] sm:$0xff] %v4967_v10  ;;  %v886_v5 = vsel %vm7633_vm14, 0.0, %v7734_v63  ;;  %v887_v14 = vsel %vm7632_vm15, 0.0, %v7734_v63  ;;  %v4988_v16 = vrot.slane %v4399_v58, %v7618_v42  ;;  %v4993_v61 = vrot.slane %v4399_v58, %v7617_v26 }
  0xe9   : > { %v4998_v22 = vrot.slane %v4399_v58, %v7616_v34  ;;  %v5003_v59 = vrot.slane %v4399_v58, %v7615_v29  ;;  %v5005_v3 = vmax.f32 %v768_v24, %v837_v0  ;;  %v5008_v60 = vadd.f32 %v4801_v40, %v834_v28  ;;  %v3886_v0 = vld [vmem:[%s4222_s30 + $0x8] sm:$0xff] }
  0xea   : > { %7766 = vst [vmem:[#allocation42_spill] sm:$0xff] %v4988_v16  ;;  %7767 = vst [vmem:[#allocation43_spill] sm:$0xff] %v4993_v61  ;;  %vm7614_vm0 = vcmp.ne.f32.partialorder %v4967_v10, 0.0  ;;  %v892_v54 = vsel %vm7633_vm14, 1.0, %v7736_v11  ;;  %v893_v9 = vsel %vm7632_vm15, 1.0, %v7736_v11  ;;  %v894_v58 = vsel %vm7631_vm12, 1.0, %v7736_v11 }
  0xeb   : > { %7768 = vst [vmem:[#allocation44_spill] sm:$0xff] %v4998_v22  ;;  %7769 = vst [vmem:[#allocation45_spill] sm:$0xff] %v5003_v59  ;;  %v933_v24 = vcombine.low %v4988_v16, %v4993_v61  ;;  %v934_v40 = vcombine.low %v4998_v22, %v5003_v59  ;;  %v5024_v44 = vmax.f32 %v769_v7, %v838_v17  ;;  %v888_v57 = vsel %vm7631_vm12, 0.0, %v7734_v63 }
  0xec   : > { %v5031_v35 = vcombine.low %v886_v5, %v887_v14  ;;  %v889_v23 = vsel %vm7614_vm0, 0.0, %v7734_v63  ;;  %v895_v7 = vsel %vm7614_vm0, 1.0, %v7736_v11  ;;  %v5045_v32 = vadd.f32 %v892_v54, %v825_v39  ;;  %v3888_v5 = vld [vmem:[%s4222_s30 + $0x28] sm:$0xff] }
  0xed   : > { %v5039_v30 = vmul.f32 %v933_v24, %v890_v18  ;;  %v5041_v1 = vmul.f32 %v934_v40, %v891_v53  ;;  %v5047_v46 = vadd.f32 %v893_v9, %v826_v36  ;;  %v5049_v27 = vadd.f32 %v894_v58, %v827_v19  ;;  %v3887_v18 = vld [vmem:[%s4222_s30 + $0x20] sm:$0xff] }
  0xee   : > { %v5067_v39 = vadd.f32 %v895_v7, %v828_v2  ;;  %v5069_v36 = vcombine.low %v888_v57, %v889_v23  ;;  %vm953_vm0 = vcmask 1042432   ;;  %v3889_v40 = vld [vmem:[%s4222_s30 + $0x40] sm:$0xff] }
  0xef   : > { %v943_v28 = vsub.f32 %v3885_v41, %v5039_v30  ;;  %v944_v17 = vsub.f32 %v3886_v0, %v5041_v1  ;;  %v1018_v53 = vsub.f32 %v3887_v18, %v5039_v30  ;;  %v1019_v14 = vsub.f32 %v3888_v5, %v5041_v1  ;;  %1698 = vst [vmem:[%s5061_s17] sm:$0x7] %v5039_v30  ;;  %v3890_v0 = vld [vmem:[%s4222_s30 + $0x48] sm:$0xff] }
  0xf0   : > { %1700 = vst [vmem:[%s5061_s17 + $0x10] sm:$0x7] %v5041_v1  ;;  %7770 = vst [vmem:[#allocation46_spill] sm:$0xff] %v5067_v39  ;;  %v5075_v41 = vsub.f32 %v3889_v40, %v5039_v30  ;;  %v5079_v18 = vsub.f32 %v3890_v0, %v5041_v1  ;;  %v5083_v2 = vsub.f32 %v4394_v55, %v5039_v30 }
  0xf1   : > { %v945_v54 = vmul.f32 %v943_v28, %v943_v28  ;;  %v946_v9 = vmul.f32 %v944_v17, %v944_v17  ;;  %v1020_v58 = vmul.f32 %v1018_v53, %v1018_v53  ;;  %v1021_v24 = vmul.f32 %v1019_v14, %v1019_v14 }
  0xf2   : > { %v5087_v57 = vsub.f32 %v4397_v56, %v5041_v1 }
  0xf3   : > { %v949_v23 = vcombine.high %v945_v54, %v945_v54  ;;  %v950_v7 = vcombine.high %v946_v9, %v946_v9  ;;  %v954_v28 = vsel %vm953_vm0, %v945_v54, 0.0  ;;  %v968_v17 = vsel %vm953_vm0, %v946_v9, 0.0 }
  0xf4   : > { %v955_v53 = vrot.slane %v954_v28, 4  ;;  %v969_v5 = vrot.slane %v968_v17, 4  ;;  %v1024_v14 = vcombine.high %v1020_v58, %v1020_v58  ;;  %v1025_v40 = vcombine.high %v1021_v24, %v1021_v24 }
  0xf5   : > { %v961_v0 = vsel %vm953_vm0, %v949_v23, 0.0  ;;  %v975_v29 = vsel %vm953_vm0, %v950_v7, 0.0  ;;  %v1028_v55 = vsel %vm953_vm0, %v1020_v58, 0.0  ;;  %v1042_v34 = vsel %vm953_vm0, %v1021_v24, 0.0 }
  0xf6   : > { %v956_v56 = vadd.f32 %v955_v53, %v954_v28  ;;  %v962_v26 = vrot.slane %v961_v0, 4  ;;  %v970_v42 = vadd.f32 %v969_v5, %v968_v17  ;;  %v976_v12 = vrot.slane %v975_v29, 4 }
  0xf7   : > { %v1029_v48 = vrot.slane %v1028_v55, 4  ;;  %v1035_v54 = vsel %vm953_vm0, %v1024_v14, 0.0  ;;  %v1043_v9 = vrot.slane %v1042_v34, 4  ;;  %v1049_v19 = vsel %vm953_vm0, %v1025_v40, 0.0 }
  0xf8   : > { %v957_v11 = vrot.slane %v956_v56, 2  ;;  %v963_v63 = vadd.f32 %v962_v26, %v961_v0  ;;  %v971_v59 = vrot.slane %v970_v42, 2  ;;  %v977_v23 = vadd.f32 %v976_v12, %v975_v29 }
  0xf9   : > { %v1030_v22 = vadd.f32 %v1029_v48, %v1028_v55  ;;  %v1036_v7 = vrot.slane %v1035_v54, 4  ;;  %v1044_v61 = vadd.f32 %v1043_v9, %v1042_v34  ;;  %v1050_v58 = vrot.slane %v1049_v19, 4 }
  0xfa   : > { %v958_v10 = vadd.f32 %v957_v11, %v956_v56  ;;  %v964_v24 = vrot.slane %v963_v63, 2  ;;  %v972_v28 = vadd.f32 %v971_v59, %v970_v42  ;;  %v978_v53 = vrot.slane %v977_v23, 2 }
  0xfb   : > { %v1031_v17 = vrot.slane %v1030_v22, 2  ;;  %v1037_v5 = vadd.f32 %v1036_v7, %v1035_v54  ;;  %v1045_v38 = vrot.slane %v1044_v61, 2  ;;  %v1051_v31 = vadd.f32 %v1050_v58, %v1049_v19 }
  0xfc   : > { %v959_v14 = vrot.slane %v958_v10, 1  ;;  %v965_v16 = vadd.f32 %v964_v24, %v963_v63  ;;  %v973_v21 = vrot.slane %v972_v28, 1  ;;  %v979_v40 = vadd.f32 %v978_v53, %v977_v23 }
  0xfd   : > { %v1032_v13 = vadd.f32 %v1031_v17, %v1030_v22  ;;  %v1038_v26 = vrot.slane %v1037_v5, 2  ;;  %v1046_v0 = vadd.f32 %v1045_v38, %v1044_v61  ;;  %v1052_v29 = vrot.slane %v1051_v31, 2 }
  0xfe   : > { %v5097_v48 = vadd.f32 %v959_v14, %v958_v10  ;;  %v966_v34 = vrot.slane %v965_v16, 1  ;;  %v5099_v12 = vadd.f32 %v973_v21, %v972_v28  ;;  %v980_v11 = vrot.slane %v979_v40, 1 }
  0xff   : > { %v5105_v59 = vadd.f32 %v4875_v20, %v5031_v35  ;;  %v5109_v63 = vadd.f32 %v4878_v37, %v5069_v36  ;;  %v1033_v22 = vrot.slane %v1032_v13, 1  ;;  %v1039_v21 = vadd.f32 %v1038_v26, %v1037_v5 }
 0x100   : > { %v5111_v38 = vadd.f32 %v966_v34, %v965_v16  ;;  %v5113_v10 = vadd.f32 %v980_v11, %v979_v40  ;;  %3723 = vrsqrt.f32 %v5097_v48  ;;  %v1047_v61 = vrot.slane %v1046_v0, 1 }
 0x101   : > { %3725 = vrsqrt.f32 %v5099_v12  ;;  %v1053_v19 = vadd.f32 %v1052_v29, %v1051_v31  ;;  %v1094_v55 = vmul.f32 %v5075_v41, %v5075_v41  ;;  %v5122_v56 = vmul.f32 %v5079_v18, %v5079_v18 }
 0x102   : > { %3727 = vrsqrt.f32 %v5111_v38  ;;  %v5126_v16 = vmul.f32 %v5083_v2, %v5083_v2  ;;  %v5130_v54 = vmul.f32 %v5087_v57, %v5087_v57  ;;  %vm984_vm12 = vcmp.eq.f32.partialorder %v5097_v48, inf }
 0x103   : > { %vm986_vm15 = vcmp.eq.f32.partialorder %v5097_v48, 0.0  ;;  %v987_v31 = vand.u32 2147483648, %v5097_v48  ;;  %3729 = vrsqrt.f32 %v5113_v10  ;;  %vm991_vm14 = vcmp.eq.f32.partialorder %v5111_v38, inf }
 0x104   : > { %vm998_vm13 = vcmp.eq.f32.partialorder %v5099_v12, inf  ;;  %v5138_v41 = vadd.f32 %v1033_v22, %v1032_v13  ;;  %v1040_v18 = vrot.slane %v1039_v21, 1  ;;  %v994_v2 = vand.u32 2147483648, %v5111_v38 }
 0x105   : > { %vm1000_vm11 = vcmp.eq.f32.partialorder %v5099_v12, 0.0  ;;  %v5142_v57 = vadd.f32 %v1047_v61, %v1046_v0  ;;  %v1054_v9 = vrot.slane %v1053_v19, 1  ;;  %vm993_vm10 = vcmp.eq.f32.partialorder %v5111_v38, 0.0 }
 0x106   : > { %v1001_v23 = vand.u32 2147483648, %v5099_v12  ;;  %v5146_v7 = vadd.f32 %v1040_v18, %v1039_v21  ;;  %3731 = vrsqrt.f32 %v5138_v41  ;;  %v1098_v58 = vcombine.high %v1094_v55, %v1094_v55 }
 0x107   : > { %vm1005_vm9 = vcmp.eq.f32.partialorder %v5113_v10, inf  ;;  %vm1007_vm8 = vcmp.eq.f32.partialorder %v5113_v10, 0.0  ;;  %v5151_v13 = vadd.f32 %v1054_v9, %v1053_v19  ;;  %3733 = vrsqrt.f32 %v5142_v57 }
 0x108   : > { %v1008_v24 = vand.u32 2147483648, %v5113_v10  ;;  %vm1058_vm6 = vcmp.eq.f32.partialorder %v5138_v41, inf  ;;  %3735 = vrsqrt.f32 %v5146_v7  ;;  %v1099_v28 = vcombine.high %v5122_v56, %v5122_v56 }
 0x109   : > { %vm1060_vm7 = vcmp.eq.f32.partialorder %v5138_v41, 0.0  ;;  %v1061_v53 = vand.u32 2147483648, %v5138_v41  ;;  %vm1072_vm4 = vcmp.eq.f32.partialorder %v5142_v57, inf  ;;  %3737 = vrsqrt.f32 %v5151_v13 }
 0x10a   : > { %v3724_v5 = vpop.eup %3723  ;;  %v1075_v14 = vand.u32 2147483648, %v5142_v57  ;;  %v1102_v40 = vsel %vm953_vm0, %v1094_v55, 0.0  ;;  %v1109_v26 = vsel %vm953_vm0, %v1098_v58, 0.0  ;;  %vm1067_vm2 = vcmp.eq.f32.partialorder %v5146_v7, 0.0 }
 0x10b   : > { %v3726_v0 = vpop.eup %3725  ;;  %v983_v29 = vmul.f32 %v3724_v5, %v5097_v48  ;;  %v1103_v34 = vrot.slane %v1102_v40, 4  ;;  %v1110_v11 = vrot.slane %v1109_v26, 4  ;;  %v1116_v22 = vsel %vm953_vm0, %v5122_v56, 0.0 }
 0x10c   : > { %v3728_v21 = vpop.eup %3727  ;;  %v997_v61 = vmul.f32 %v3726_v0, %v5099_v12  ;;  %vm1079_vm3 = vcmp.eq.f32.partialorder %v5151_v13, inf  ;;  %vm1081_vm5 = vcmp.eq.f32.partialorder %v5151_v13, 0.0  ;;  %v1117_v19 = vrot.slane %v1116_v22, 4 }
 0x10d   : > { %v3730_v55 = vpop.eup %3729  ;;  %v985_v18 = vsel %vm984_vm12, %v5097_v48, %v983_v29  ;;  %v990_v9 = vmul.f32 %v3728_v21, %v5111_v38  ;;  %v1104_v58 = vadd.f32 %v1103_v34, %v1102_v40  ;;  %v1111_v5 = vadd.f32 %v1110_v11, %v1109_v26 }
 0x10e   : > { %v988_v56 = vsel %vm986_vm15, %v987_v31, %v985_v18  ;;  %v999_v0 = vsel %vm998_vm13, %v5099_v12, %v997_v61  ;;  %v1004_v42 = vmul.f32 %v3730_v55, %v5113_v10  ;;  %v1118_v17 = vadd.f32 %v1117_v19, %v1116_v22 }
 0x10f   : > { %v992_v39 = vsel %vm991_vm14, %v5111_v38, %v990_v9  ;;  %v1082_v29 = vand.u32 2147483648, %v5151_v13  ;;  %v1105_v4 = vrot.slane %v1104_v58, 2  ;;  %v1123_v40 = vsel %vm953_vm0, %v1099_v28, 0.0 }
 0x110   : > { %v3732_v26 = vpop.eup %3731  ;;  %v1002_v48 = vsel %vm1000_vm11, %v1001_v23, %v999_v0  ;;  %v1006_v31 = vsel %vm1005_vm9, %v5113_v10, %v1004_v42  ;;  %v1112_v34 = vrot.slane %v1111_v5, 2  ;;  %v1172_v11 = vcombine.high %v5126_v16, %v5126_v16 }
 0x111   : > { %v3734_v22 = vpop.eup %3733  ;;  %v995_v21 = vsel %vm993_vm10, %v994_v2, %v992_v39  ;;  %v1010_v61 = vsel %vm243_vm1, %v988_v56, 0.0  ;;  %v1057_v28 = vmul.f32 %v3732_v26, %v5138_v41  ;;  %v1106_v19 = vadd.f32 %v1105_v4, %v1104_v58 }
 0x112   : > { %v3736_v12 = vpop.eup %3735  ;;  %v1009_v23 = vsel %vm1007_vm8, %v1008_v24, %v1006_v31  ;;  %v1071_v42 = vmul.f32 %v3734_v22, %v5142_v57  ;;  %v1113_v55 = vadd.f32 %v1112_v34, %v1111_v5  ;;  %v1119_v18 = vrot.slane %v1118_v17, 2 }
 0x113   : > { %v3738_v9 = vpop.eup %3737  ;;  %v1059_v38 = vsel %vm1058_vm6, %v5138_v41, %v1057_v28  ;;  %v1064_v39 = vmul.f32 %v3736_v12, %v5146_v7  ;;  %v1107_v45 = vrot.slane %v1106_v19, 1  ;;  %v1124_v2 = vrot.slane %v1123_v40, 4  ;;  %v7782_v28 = vld [vmem:[#allocation14_spill] sm:$0xff] }
 0x114   : > { %v1062_v4 = vsel %vm1060_vm7, %v1061_v53, %v1059_v38  ;;  %v1073_v10 = vsel %vm1072_vm4, %v5142_v57, %v1071_v42  ;;  %v1078_v24 = vmul.f32 %v3738_v9, %v5151_v13  ;;  %v1114_v58 = vrot.slane %v1113_v55, 1 }
 0x115   : > { %vm7771_vm1 = vcmp.ne.f32.partialorder %v4270_v49, 0.0  ;;  %vm7772_vm6 = vcmp.eq.f32.partialorder %v5146_v7, inf  ;;  %vm7773_vm8 = vcmp.eq.f32.partialorder %v5142_v57, 0.0  ;;  %v5223_v26 = vadd.f32 %v1107_v45, %v1106_v19 }
 0x116   : > { %v1012_v5 = vsel %vm7771_vm1, %v1002_v48, 0.0  ;;  %v1066_v56 = vsel %vm7772_vm6, %v5146_v7, %v1064_v39  ;;  %v1076_v0 = vsel %vm7773_vm8, %v1075_v14, %v1073_v10  ;;  %vm7774_vm7 = vcmp.ne.f32.partialorder %v4272_v51, 0.0  ;;  %v7778_v51 = vld [vmem:[#allocation12_spill] sm:$0xff] }
 0x117   : > { %v1011_v41 = vsel %vm7774_vm7, %v995_v21, 0.0  ;;  %v7775_v53 = vand.u32 2147483648, %v5146_v7  ;;  %v1080_v49 = vsel %vm1079_vm3, %v5151_v13, %v1078_v24  ;;  %vm7776_vm4 = vcmp.ne.f32.partialorder %v4293_v6, 0.0  ;;  %v7780_v7 = vld [vmem:[#allocation11_spill] sm:$0xff] }
 0x118   : > { %v1084_v48 = vsel %vm7776_vm4, %v1062_v4, 0.0  ;;  %vm7777_vm9 = vcmp.ne.f32.partialorder %v4274_v52, 0.0  ;;  %v1083_v14 = vsel %vm1081_vm5, %v1082_v29, %v1080_v49  ;;  %vm7779_vm10 = vcmp.ne.f32.partialorder %v7778_v51, 0.0 }
 0x119   : > { %v1069_v31 = vsel %vm1067_vm2, %v7775_v53, %v1066_v56  ;;  %v1013_v57 = vsel %vm7777_vm9, %v1009_v23, 0.0  ;;  %v1086_v34 = vsel %vm7779_vm10, %v1076_v0, 0.0  ;;  %v5242_v22 = vadd.f32 %v1114_v58, %v1113_v55  ;;  %v3891_v0 = vld [vmem:[%s4222_s30 + $0x80] sm:$0xff]  ;;  %v3892_v53 = vld [vmem:[%s4222_s30 + $0x88] sm:$0xff] }
 0x11a   : > { %vm7781_vm2 = vcmp.ne.f32.partialorder %v7780_v7, 0.0  ;;  %vm7783_vm11 = vcmp.ne.f32.partialorder %v7782_v28, 0.0  ;;  %v1120_v12 = vadd.f32 %v1119_v18, %v1118_v17  ;;  %v1125_v6 = vadd.f32 %v1124_v2, %v1123_v40  ;;  %v3893_v28 = vld [vmem:[%s4222_s30 + $0xa0] sm:$0xff] }
 0x11b   : > { %v1085_v21 = vsel %vm7781_vm2, %v1069_v31, 0.0  ;;  %v1087_v19 = vsel %vm7783_vm11, %v1083_v14, 0.0  ;;  %v7784_v52 = vsub.f32 %v4875_v20, %v5031_v35  ;;  %v7785_v13 = vsub.f32 %v4878_v37, %v5069_v36 }
 0x11c   : > { %v5260_v42 = vadd.f32 %v1084_v48, %v1010_v61  ;;  %3739 = vrsqrt.f32 %v5223_v26  ;;  %v5263_v55 = vadd.f32 %v1086_v34, %v1012_v5  ;;  %v1121_v17 = vrot.slane %v1120_v12, 1 }
 0x11d   : > { %v5252_v23 = vmax.f32 %v5005_v3, %v7784_v52  ;;  %v5258_v29 = vmax.f32 %v5024_v44, %v7785_v13  ;;  %v1126_v40 = vrot.slane %v1125_v6, 2  ;;  %3741 = vrsqrt.f32 %v5242_v22 }
 0x11e   : > { %v5266_v20 = vadd.f32 %v1085_v21, %v1011_v41  ;;  %v5268_v3 = vadd.f32 %v1087_v19, %v1013_v57  ;;  %vm1132_vm3 = vcmp.eq.f32.partialorder %v5223_v26, inf  ;;  %v1173_v37 = vcombine.high %v5130_v54, %v5130_v54 }
 0x11f   : > { %v5273_v44 = vadd.f32 %v1121_v17, %v1120_v12  ;;  %v1127_v35 = vadd.f32 %v1126_v40, %v1125_v6  ;;  %v1176_v36 = vsel %vm953_vm0, %v5126_v16, 0.0  ;;  %v1183_v61 = vsel %vm953_vm0, %v1172_v11, 0.0 }
 0x120   : > { %v1177_v18 = vrot.slane %v1176_v36, 4  ;;  %v1184_v9 = vrot.slane %v1183_v61, 4  ;;  %v1190_v38 = vsel %vm953_vm0, %v5130_v54, 0.0  ;;  %v1197_v39 = vsel %vm953_vm0, %v1173_v37, 0.0 }
 0x121   : > { %v1128_v45 = vrot.slane %v1127_v35, 1  ;;  %vm1134_vm5 = vcmp.eq.f32.partialorder %v5223_v26, 0.0  ;;  %v1135_v2 = vand.u32 2147483648, %v5223_v26  ;;  %3743 = vrsqrt.f32 %v5273_v44 }
 0x122   : > { %vm1139_vm12 = vcmp.eq.f32.partialorder %v5242_v22, inf  ;;  %v1178_v16 = vadd.f32 %v1177_v18, %v1176_v36  ;;  %v1185_v11 = vadd.f32 %v1184_v9, %v1183_v61  ;;  %v1191_v4 = vrot.slane %v1190_v38, 4 }
 0x123   : > { %v5285_v10 = vadd.f32 %v1128_v45, %v1127_v35  ;;  %vm1141_vm13 = vcmp.eq.f32.partialorder %v5242_v22, 0.0  ;;  %v1142_v54 = vand.u32 2147483648, %v5242_v22  ;;  %v1198_v24 = vrot.slane %v1197_v39, 4 }
 0x124   : > { %vm1146_vm14 = vcmp.eq.f32.partialorder %v5273_v44, inf  ;;  %v1179_v58 = vrot.slane %v1178_v16, 2  ;;  %v1186_v5 = vrot.slane %v1185_v11, 2  ;;  %v1192_v56 = vadd.f32 %v1191_v4, %v1190_v38  ;;  %v7788_v4 = vld [vmem:[#allocation16_spill] sm:$0xff] }
 0x125   : > { %vm1148_vm15 = vcmp.eq.f32.partialorder %v5273_v44, 0.0  ;;  %3745 = vrsqrt.f32 %v5285_v10  ;;  %v1240_v41 = vsub.f32 %v3891_v0, %v5039_v30  ;;  %v1241_v31 = vsub.f32 %v3892_v53, %v5041_v1 }
 0x126   : > { %v3740_v49 = vpop.eup %3739  ;;  %v1180_v48 = vadd.f32 %v1179_v58, %v1178_v16  ;;  %v1187_v57 = vadd.f32 %v1186_v5, %v1185_v11  ;;  %v1193_v14 = vrot.slane %v1192_v56, 2  ;;  %v1199_v51 = vadd.f32 %v1198_v24, %v1197_v39 }
 0x127   : > { %v3742_v34 = vpop.eup %3741  ;;  %v1131_v7 = vmul.f32 %v3740_v49, %v5223_v26  ;;  %v1149_v21 = vand.u32 2147483648, %v5273_v44  ;;  %vm1153_vm1 = vcmp.eq.f32.partialorder %v5285_v10, inf  ;;  %v5301_v19 = vsub.f32 %v3893_v28, %v5039_v30 }
 0x128   : > { %v1138_v12 = vmul.f32 %v3742_v34, %v5242_v22  ;;  %v1181_v6 = vrot.slane %v1180_v48, 1  ;;  %v1188_v52 = vrot.slane %v1187_v57, 1  ;;  %v1194_v13 = vadd.f32 %v1193_v14, %v1192_v56  ;;  %v7790_v34 = vld [vmem:[#allocation17_spill] sm:$0xff] }
 0x129   : > { %v1133_v17 = vsel %vm1132_vm3, %v5223_v26, %v1131_v7  ;;  %v1200_v40 = vrot.slane %v1199_v51, 2  ;;  %v1242_v37 = vmul.f32 %v1240_v41, %v1240_v41  ;;  %v1243_v35 = vmul.f32 %v1241_v31, %v1241_v31 }
 0x12a   : > { %v1136_v36 = vsel %vm1134_vm5, %v1135_v2, %v1133_v17  ;;  %v1140_v61 = vsel %vm1139_vm12, %v5242_v22, %v1138_v12  ;;  %v5312_v18 = vadd.f32 %v1181_v6, %v1180_v48  ;;  %v5314_v9 = vadd.f32 %v1188_v52, %v1187_v57  ;;  %v7786_v2 = vld [vmem:[#allocation15_spill] sm:$0xff]  ;;  %v7792_v17 = vld [vmem:[#allocation18_spill] sm:$0xff] }
 0x12b   : > { %v3744_v38 = vpop.eup %3743  ;;  %v1143_v39 = vsel %vm1141_vm13, %v1142_v54, %v1140_v61  ;;  %vm1155_vm6 = vcmp.eq.f32.partialorder %v5285_v10, 0.0  ;;  %v1195_v45 = vrot.slane %v1194_v13, 1  ;;  %v1201_v16 = vadd.f32 %v1200_v40, %v1199_v51  ;;  %v3894_v54 = vld [vmem:[%s4222_s30 + $0xa8] sm:$0xff] }
 0x12c   : > { %v1145_v26 = vmul.f32 %v3744_v38, %v5273_v44  ;;  %vm7787_vm8 = vcmp.ne.f32.partialorder %v7786_v2, 0.0  ;;  %vm7789_vm7 = vcmp.ne.f32.partialorder %v7788_v4, 0.0  ;;  %3747 = vrsqrt.f32 %v5312_v18 }
 0x12d   : > { %v1158_v11 = vsel %vm7787_vm8, %v1136_v36, 0.0  ;;  %v1159_v24 = vsel %vm7789_vm7, %v1143_v39, 0.0  ;;  %v1156_v58 = vand.u32 2147483648, %v5285_v10  ;;  %v5326_v5 = vadd.f32 %v1195_v45, %v1194_v13 }
 0x12e   : > { %v1202_v22 = vrot.slane %v1201_v16, 1  ;;  %v1315_v56 = vsub.f32 %v3894_v54, %v5041_v1  ;;  %v1147_v0 = vsel %vm1146_vm14, %v5273_v44, %v1145_v26  ;;  %3749 = vrsqrt.f32 %v5314_v9 }
 0x12f   : > { %v1246_v41 = vcombine.high %v1242_v37, %v1242_v37  ;;  %v1247_v53 = vcombine.high %v1243_v35, %v1243_v35  ;;  %v3746_v31 = vpop.eup %3745  ;;  %v1150_v49 = vsel %vm1148_vm15, %v1149_v21, %v1147_v0  ;;  %v5337_v48 = vadd.f32 %v1158_v11, %v5260_v42 }
 0x130   : > { %v5340_v57 = vadd.f32 %v1159_v24, %v5266_v20  ;;  %v5342_v14 = vadd.f32 %v1202_v22, %v1201_v16  ;;  %v1152_v51 = vmul.f32 %v3746_v31, %v5285_v10  ;;  %vm7791_vm4 = vcmp.ne.f32.partialorder %v7790_v34, 0.0 }
 0x131   : > { %v1160_v7 = vsel %vm7791_vm4, %v1150_v49, 0.0  ;;  %vm1206_vm9 = vcmp.eq.f32.partialorder %v5312_v18, inf  ;;  %3751 = vrsqrt.f32 %v5326_v5  ;;  %vm1208_vm10 = vcmp.eq.f32.partialorder %v5312_v18, 0.0 }
 0x132   : > { %v1209_v44 = vand.u32 2147483648, %v5312_v18  ;;  %vm1213_vm2 = vcmp.eq.f32.partialorder %v5314_v9, inf  ;;  %vm1215_vm11 = vcmp.eq.f32.partialorder %v5314_v9, 0.0  ;;  %v1154_v42 = vsel %vm1153_vm1, %v5285_v10, %v1152_v51 }
 0x133   : > { %v5357_v20 = vadd.f32 %v1160_v7, %v5263_v55  ;;  %v1216_v21 = vand.u32 2147483648, %v5314_v9  ;;  %3753 = vrsqrt.f32 %v5342_v14  ;;  %v1157_v28 = vsel %vm1155_vm6, %v1156_v58, %v1154_v42 }
 0x134   : > { %vm1220_vm3 = vcmp.eq.f32.partialorder %v5326_v5, inf  ;;  %v1250_v12 = vsel %vm953_vm0, %v1242_v37, 0.0  ;;  %v1257_v6 = vsel %vm953_vm0, %v1246_v41, 0.0  ;;  %vm1222_vm5 = vcmp.eq.f32.partialorder %v5326_v5, 0.0 }
 0x135   : > { %v1251_v52 = vrot.slane %v1250_v12, 4  ;;  %v1258_v13 = vrot.slane %v1257_v6, 4  ;;  %v1264_v55 = vsel %vm953_vm0, %v1243_v35, 0.0  ;;  %vm7793_vm12 = vcmp.ne.f32.partialorder %v7792_v17, 0.0 }
 0x136   : > { %v1161_v40 = vsel %vm7793_vm12, %v1157_v28, 0.0  ;;  %v1223_v36 = vand.u32 2147483648, %v5326_v5  ;;  %v1265_v61 = vrot.slane %v1264_v55, 4  ;;  %v1271_v10 = vsel %vm953_vm0, %v1247_v53, 0.0  ;;  %v3748_v38 = vpop.eup %3747 }
 0x137   : > { %vm1227_vm13 = vcmp.eq.f32.partialorder %v5342_v14, inf  ;;  %v1252_v37 = vadd.f32 %v1251_v52, %v1250_v12  ;;  %v1259_v39 = vadd.f32 %v1258_v13, %v1257_v6  ;;  %v1272_v45 = vrot.slane %v1271_v10, 4  ;;  %v7794_v13 = vld [vmem:[#allocation19_spill] sm:$0xff] }
 0x138   : > { %v1205_v16 = vmul.f32 %v3748_v38, %v5312_v18  ;;  %vm1229_vm14 = vcmp.eq.f32.partialorder %v5342_v14, 0.0  ;;  %v1230_v35 = vand.u32 2147483648, %v5342_v14  ;;  %v1266_v26 = vadd.f32 %v1265_v61, %v1264_v55  ;;  %v3750_v2 = vpop.eup %3749  ;;  %v7796_v61 = vld [vmem:[#allocation20_spill] sm:$0xff] }
 0x139   : > { %v1165_v11 = vadd.f32 %v1161_v40, %v5268_v3  ;;  %v1253_v4 = vrot.slane %v1252_v37, 2  ;;  %v1260_v24 = vrot.slane %v1259_v39, 2  ;;  %v1273_v58 = vadd.f32 %v1272_v45, %v1271_v10 }
 0x13a   : > { %v1207_v22 = vsel %vm1206_vm9, %v5312_v18, %v1205_v16  ;;  %v1212_v54 = vmul.f32 %v3750_v2, %v5314_v9  ;;  %v1267_v0 = vrot.slane %v1266_v26, 2  ;;  %v1316_v41 = vmul.f32 %v5301_v19, %v5301_v19  ;;  %v7800_v2 = vld [vmem:[#allocation22_spill] sm:$0xff] }
 0x13b   : > { %v3752_v53 = vpop.eup %3751  ;;  %v1210_v31 = vsel %vm1208_vm10, %v1209_v44, %v1207_v22  ;;  %v1254_v49 = vadd.f32 %v1253_v4, %v1252_v37  ;;  %v1261_v51 = vadd.f32 %v1260_v24, %v1259_v39  ;;  %v1317_v3 = vmul.f32 %v1315_v56, %v1315_v56  ;;  %v7798_v37 = vld [vmem:[#allocation21_spill] sm:$0xff] }
 0x13c   : > { %v1214_v34 = vsel %vm1213_vm2, %v5314_v9, %v1212_v54  ;;  %v1219_v7 = vmul.f32 %v3752_v53, %v5326_v5  ;;  %v1268_v42 = vadd.f32 %v1267_v0, %v1266_v26  ;;  %v1274_v28 = vrot.slane %v1273_v58, 2 }
 0x13d   : > { %v3754_v12 = vpop.eup %3753  ;;  %v1217_v6 = vsel %vm1215_vm11, %v1216_v21, %v1214_v34  ;;  %v1255_v19 = vrot.slane %v1254_v49, 1  ;;  %v1262_v52 = vrot.slane %v1261_v51, 1  ;;  %v1324_v18 = vsel %vm953_vm0, %v1316_v41, 0.0 }
 0x13e   : > { %v1221_v56 = vsel %vm1220_vm3, %v5326_v5, %v1219_v7  ;;  %v1226_v44 = vmul.f32 %v3754_v12, %v5342_v14  ;;  %vm7795_vm15 = vcmp.ne.f32.partialorder %v7794_v13, 0.0  ;;  %v1269_v17 = vrot.slane %v1268_v42, 1  ;;  %v3895_v12 = vld [vmem:[%s4222_s30 + $0xc0] sm:$0xff] }
 0x13f   : > { %v1232_v55 = vsel %vm7795_vm15, %v1210_v31, 0.0  ;;  %v1224_v40 = vsel %vm1222_vm5, %v1223_v36, %v1221_v56  ;;  %vm7797_vm1 = vcmp.ne.f32.partialorder %v7796_v61, 0.0  ;;  %v5402_v21 = vadd.f32 %v1255_v19, %v1254_v49  ;;  %v3896_v19 = vld [vmem:[%s4222_s30 + $0xc8] sm:$0xff] }
 0x140   : > { %v1233_v9 = vsel %vm7797_vm1, %v1217_v6, 0.0  ;;  %v5404_v10 = vadd.f32 %v1262_v52, %v1261_v51  ;;  %v1228_v38 = vsel %vm1227_vm13, %v5342_v14, %v1226_v44  ;;  %vm7799_vm6 = vcmp.ne.f32.partialorder %v7798_v37, 0.0  ;;  %v3898_v37 = vld [vmem:[%s4222_s30 + $0xe8] sm:$0xff] }
 0x141   : > { %v1234_v39 = vsel %vm7799_vm6, %v1224_v40, 0.0  ;;  %v5411_v45 = vadd.f32 %v1269_v17, %v1268_v42  ;;  %v1275_v16 = vadd.f32 %v1274_v28, %v1273_v58  ;;  %v1231_v5 = vsel %vm1229_vm14, %v1230_v35, %v1228_v38  ;;  %v3897_v17 = vld [vmem:[%s4222_s30 + $0xe0] sm:$0xff] }
 0x142   : > { %3755 = vrsqrt.f32 %v5402_v21  ;;  %v1320_v36 = vcombine.high %v1316_v41, %v1316_v41  ;;  %v1325_v26 = vrot.slane %v1324_v18, 4  ;;  %vm7801_vm8 = vcmp.ne.f32.partialorder %v7800_v2, 0.0 }
 0x143   : > { %v1235_v4 = vsel %vm7801_vm8, %v1231_v5, 0.0  ;;  %v5419_v24 = vadd.f32 %v1232_v55, %v5337_v48  ;;  %v1276_v22 = vrot.slane %v1275_v16, 1  ;;  %v1321_v54 = vcombine.high %v1317_v3, %v1317_v3 }
 0x144   : > { %v5422_v0 = vadd.f32 %v1233_v9, %v5340_v57  ;;  %v5425_v58 = vadd.f32 %v1234_v39, %v5357_v20  ;;  %vm1280_vm7 = vcmp.eq.f32.partialorder %v5402_v21, inf  ;;  %3757 = vrsqrt.f32 %v5404_v10 }
 0x145   : > { %v5429_v14 = vadd.f32 %v1276_v22, %v1275_v16  ;;  %vm1282_vm4 = vcmp.eq.f32.partialorder %v5402_v21, 0.0  ;;  %v1283_v35 = vand.u32 2147483648, %v5402_v21  ;;  %3759 = vrsqrt.f32 %v5411_v45 }
 0x146   : > { %v5434_v48 = vadd.f32 %v1235_v4, %v1165_v11  ;;  %vm1287_vm9 = vcmp.eq.f32.partialorder %v5404_v10, inf  ;;  %v1326_v57 = vadd.f32 %v1325_v26, %v1324_v18  ;;  %v1331_v20 = vsel %vm953_vm0, %v1320_v36, 0.0 }
 0x147   : > { %vm1289_vm10 = vcmp.eq.f32.partialorder %v5404_v10, 0.0  ;;  %v1290_v41 = vand.u32 2147483648, %v5404_v10  ;;  %vm1294_vm2 = vcmp.eq.f32.partialorder %v5411_v45, inf  ;;  %3761 = vrsqrt.f32 %v5429_v14 }
 0x148   : > { %v1327_v53 = vrot.slane %v1326_v57, 2  ;;  %v1332_v31 = vrot.slane %v1331_v20, 4  ;;  %v1338_v11 = vsel %vm953_vm0, %v1317_v3, 0.0  ;;  %v1345_v49 = vsel %vm953_vm0, %v1321_v54, 0.0 }
 0x149   : > { %vm1296_vm11 = vcmp.eq.f32.partialorder %v5411_v45, 0.0  ;;  %v1297_v51 = vand.u32 2147483648, %v5411_v45  ;;  %v1339_v34 = vrot.slane %v1338_v11, 4  ;;  %v1346_v7 = vrot.slane %v1345_v49, 4 }
 0x14a   : > { %v1328_v42 = vadd.f32 %v1327_v53, %v1326_v57  ;;  %v1333_v28 = vadd.f32 %v1332_v31, %v1331_v20  ;;  %v1388_v6 = vsub.f32 %v3895_v12, %v5039_v30  ;;  %v1389_v52 = vsub.f32 %v3896_v19, %v5041_v1 }
 0x14b   : > { %vm1301_vm3 = vcmp.eq.f32.partialorder %v5429_v14, inf  ;;  %vm1303_vm5 = vcmp.eq.f32.partialorder %v5429_v14, 0.0  ;;  %v1340_v3 = vadd.f32 %v1339_v34, %v1338_v11  ;;  %v1347_v18 = vadd.f32 %v1346_v7, %v1345_v49 }
 0x14c   : > { %v3756_v56 = vpop.eup %3755  ;;  %v1304_v44 = vand.u32 2147483648, %v5429_v14  ;;  %v1329_v13 = vrot.slane %v1328_v42, 1  ;;  %v1334_v55 = vrot.slane %v1333_v28, 2  ;;  %v1462_v40 = vsub.f32 %v3897_v17, %v5039_v30 }
 0x14d   : > { %v1279_v61 = vmul.f32 %v3756_v56, %v5402_v21  ;;  %v1341_v9 = vrot.slane %v1340_v3, 2  ;;  %v1348_v38 = vrot.slane %v1347_v18, 2  ;;  %v1463_v39 = vsub.f32 %v3898_v37, %v5041_v1 }
 0x14e   : > { %v3758_v16 = vpop.eup %3757  ;;  %v5458_v5 = vadd.f32 %v1329_v13, %v1328_v42  ;;  %v1335_v36 = vadd.f32 %v1334_v55, %v1333_v28  ;;  %v1390_v26 = vmul.f32 %v1388_v6, %v1388_v6  ;;  %v1391_v2 = vmul.f32 %v1389_v52, %v1389_v52  ;;  %v7802_v6 = vld [vmem:[#allocation23_spill] sm:$0xff] }
 0x14f   : > { %v3760_v4 = vpop.eup %3759  ;;  %v1281_v22 = vsel %vm1280_vm7, %v5402_v21, %v1279_v61  ;;  %v1286_v54 = vmul.f32 %v3758_v16, %v5404_v10  ;;  %v1342_v57 = vadd.f32 %v1341_v9, %v1340_v3  ;;  %v1349_v20 = vadd.f32 %v1348_v38, %v1347_v18  ;;  %v7804_v3 = vld [vmem:[#allocation25_spill] sm:$0xff]  ;;  %v7808_v38 = vld [vmem:[#allocation26_spill] sm:$0xff] }
 0x150   : > { %v1284_v53 = vsel %vm1282_vm4, %v1283_v35, %v1281_v22  ;;  %v1293_v31 = vmul.f32 %v3760_v4, %v5411_v45  ;;  %v1336_v11 = vrot.slane %v1335_v36, 1  ;;  %3763 = vrsqrt.f32 %v5458_v5 }
 0x151   : > { %v3762_v49 = vpop.eup %3761  ;;  %v1288_v34 = vsel %vm1287_vm9, %v5404_v10, %v1286_v54  ;;  %v1343_v7 = vrot.slane %v1342_v57, 1  ;;  %v1350_v42 = vrot.slane %v1349_v20, 1  ;;  %v1464_v28 = vmul.f32 %v1462_v40, %v1462_v40 }
 0x152   : > { %v1291_v12 = vsel %vm1289_vm10, %v1290_v41, %v1288_v34  ;;  %v1295_v21 = vsel %vm1294_vm2, %v5411_v45, %v1293_v31  ;;  %v1300_v35 = vmul.f32 %v3762_v49, %v5429_v14  ;;  %vm7803_vm12 = vcmp.ne.f32.partialorder %v7802_v6, 0.0  ;;  %v7806_v41 = vld [vmem:[#allocation24_spill] sm:$0xff] }
 0x153   : > { %v1306_v19 = vsel %vm7803_vm12, %v1284_v53, 0.0  ;;  %v1298_v52 = vsel %vm1296_vm11, %v1297_v51, %v1295_v21  ;;  %vm7805_vm13 = vcmp.ne.f32.partialorder %v7804_v3, 0.0  ;;  %v5483_v56 = vadd.f32 %v1336_v11, %v1335_v36 }
 0x154   : > { %v1307_v18 = vsel %vm7805_vm13, %v1291_v12, 0.0  ;;  %v5485_v13 = vadd.f32 %v1343_v7, %v1342_v57  ;;  %v1302_v10 = vsel %vm1301_vm3, %v5429_v14, %v1300_v35  ;;  %vm7807_vm14 = vcmp.ne.f32.partialorder %v7806_v41, 0.0 }
 0x155   : > { %v1308_v55 = vsel %vm7807_vm14, %v1298_v52, 0.0  ;;  %v5492_v17 = vadd.f32 %v1350_v42, %v1349_v20  ;;  %v5494_v40 = vmul.f32 %v1463_v39, %v1463_v39  ;;  %v1305_v45 = vsel %vm1303_vm5, %v1304_v44, %v1302_v10 }
 0x156   : > { %v1394_v51 = vcombine.high %v1390_v26, %v1390_v26  ;;  %v1395_v61 = vcombine.high %v1391_v2, %v1391_v2  ;;  %v1398_v9 = vsel %vm953_vm0, %v1390_v26, 0.0  ;;  %vm7809_vm15 = vcmp.ne.f32.partialorder %v7808_v38, 0.0 }
 0x157   : > { %v1309_v37 = vsel %vm7809_vm15, %v1305_v45, 0.0  ;;  %v5502_v16 = vadd.f32 %v1306_v19, %v5419_v24  ;;  %v5505_v36 = vadd.f32 %v1307_v18, %v5422_v0  ;;  %3765 = vrsqrt.f32 %v5483_v56 }
 0x158   : > { %v5509_v39 = vadd.f32 %v1308_v55, %v5425_v58  ;;  %vm1354_vm1 = vcmp.eq.f32.partialorder %v5458_v5, inf  ;;  %vm1356_vm6 = vcmp.eq.f32.partialorder %v5458_v5, 0.0  ;;  %3767 = vrsqrt.f32 %v5485_v13 }
 0x159   : > { %v5515_v14 = vadd.f32 %v1309_v37, %v5434_v48  ;;  %v1357_v24 = vand.u32 2147483648, %v5458_v5  ;;  %vm1361_vm8 = vcmp.eq.f32.partialorder %v5483_v56, inf  ;;  %3769 = vrsqrt.f32 %v5492_v17 }
 0x15a   : > { %vm1363_vm7 = vcmp.eq.f32.partialorder %v5483_v56, 0.0  ;;  %v1364_v0 = vand.u32 2147483648, %v5483_v56  ;;  %vm1368_vm4 = vcmp.eq.f32.partialorder %v5485_v13, inf  ;;  %v1399_v58 = vrot.slane %v1398_v9, 4  ;;  %v3764_v44 = vpop.eup %3763 }
 0x15b   : > { %v1405_v26 = vsel %vm953_vm0, %v1394_v51, 0.0  ;;  %v1412_v4 = vsel %vm953_vm0, %v1391_v2, 0.0  ;;  %v1419_v48 = vsel %vm953_vm0, %v1395_v61, 0.0  ;;  %v1468_v22 = vcombine.high %v1464_v28, %v1464_v28 }
 0x15c   : > { %v1353_v54 = vmul.f32 %v3764_v44, %v5458_v5  ;;  %v1400_v57 = vadd.f32 %v1399_v58, %v1398_v9  ;;  %v1406_v20 = vrot.slane %v1405_v26, 4  ;;  %v1413_v53 = vrot.slane %v1412_v4, 4 }
 0x15d   : > { %vm1370_vm9 = vcmp.eq.f32.partialorder %v5485_v13, 0.0  ;;  %v1420_v31 = vrot.slane %v1419_v48, 4  ;;  %v1472_v11 = vsel %vm953_vm0, %v1464_v28, 0.0  ;;  %v1479_v49 = vsel %vm953_vm0, %v1468_v22, 0.0 }
 0x15e   : > { %v1355_v34 = vsel %vm1354_vm1, %v5458_v5, %v1353_v54  ;;  %v1401_v2 = vrot.slane %v1400_v57, 2  ;;  %v1407_v7 = vadd.f32 %v1406_v20, %v1405_v26  ;;  %v1414_v42 = vadd.f32 %v1413_v53, %v1412_v4 }
 0x15f   : > { %v1371_v12 = vand.u32 2147483648, %v5485_v13  ;;  %v1421_v21 = vadd.f32 %v1420_v31, %v1419_v48  ;;  %v1473_v35 = vrot.slane %v1472_v11, 4  ;;  %v1480_v6 = vrot.slane %v1479_v49, 4 }
 0x160   : > { %vm1375_vm10 = vcmp.eq.f32.partialorder %v5492_v17, inf  ;;  %v1402_v19 = vadd.f32 %v1401_v2, %v1400_v57  ;;  %v1408_v52 = vrot.slane %v1407_v7, 2  ;;  %v1415_v3 = vrot.slane %v1414_v42, 2 }
 0x161   : > { %v3766_v28 = vpop.eup %3765  ;;  %v1358_v18 = vsel %vm1356_vm6, %v1357_v24, %v1355_v34  ;;  %vm1377_vm2 = vcmp.eq.f32.partialorder %v5492_v17, 0.0  ;;  %v1378_v10 = vand.u32 2147483648, %v5492_v17  ;;  %v1422_v41 = vrot.slane %v1421_v21, 2 }
 0x162   : > { %v3768_v55 = vpop.eup %3767  ;;  %v1360_v45 = vmul.f32 %v3766_v28, %v5483_v56  ;;  %v1403_v51 = vrot.slane %v1402_v19, 1  ;;  %v1409_v61 = vadd.f32 %v1408_v52, %v1407_v7  ;;  %v1416_v9 = vadd.f32 %v1415_v3, %v1414_v42  ;;  %v7814_v7 = vld [vmem:[#allocation29_spill] sm:$0xff] }
 0x163   : > { %v3770_v38 = vpop.eup %3769  ;;  %v1367_v37 = vmul.f32 %v3768_v55, %v5485_v13  ;;  %v1423_v58 = vadd.f32 %v1422_v41, %v1421_v21  ;;  %v1474_v44 = vadd.f32 %v1473_v35, %v1472_v11  ;;  %v1481_v26 = vadd.f32 %v1480_v6, %v1479_v49  ;;  %v7810_v11 = vld [vmem:[#allocation27_spill] sm:$0xff]  ;;  %v7817_v35 = vld [vmem:[#allocation30_spill] sm:$0xff]  ;;  %v3899_v55 = vld [vmem:[%s4222_s30 + $0x100] sm:$0xff] }
 0x164   : > { %v1362_v5 = vsel %vm1361_vm8, %v5483_v56, %v1360_v45  ;;  %v1374_v24 = vmul.f32 %v3770_v38, %v5492_v17  ;;  %v5545_v4 = vadd.f32 %v1403_v51, %v1402_v19  ;;  %v1410_v48 = vrot.slane %v1409_v61, 1 }
 0x165   : > { %v1365_v22 = vsel %vm1363_vm7, %v1364_v0, %v1362_v5  ;;  %v1369_v54 = vsel %vm1368_vm4, %v5485_v13, %v1367_v37  ;;  %v1417_v57 = vrot.slane %v1416_v9, 1  ;;  %v1424_v20 = vrot.slane %v1423_v58, 1  ;;  %v7812_v0 = vld [vmem:[#allocation28_spill] sm:$0xff] }
 0x166   : > { %v1372_v53 = vsel %vm1370_vm9, %v1371_v12, %v1369_v54  ;;  %v1376_v31 = vsel %vm1375_vm10, %v5492_v17, %v1374_v24  ;;  %vm7811_vm11 = vcmp.ne.f32.partialorder %v7810_v11, 0.0  ;;  %v5559_v34 = vadd.f32 %v1410_v48, %v1409_v61 }
 0x167   : > { %v1380_v49 = vsel %vm7811_vm11, %v1358_v18, 0.0  ;;  %v1379_v56 = vsel %vm1377_vm2, %v1378_v10, %v1376_v31  ;;  %vm7813_vm3 = vcmp.ne.f32.partialorder %v7812_v0, 0.0  ;;  %vm7815_vm5 = vcmp.ne.f32.partialorder %v7814_v7, 0.0 }
 0x168   : > { %v1381_v2 = vsel %vm7813_vm3, %v1365_v22, 0.0  ;;  %v1382_v42 = vsel %vm7815_vm5, %v1372_v53, 0.0  ;;  %v5567_v13 = vadd.f32 %v1417_v57, %v1416_v9  ;;  %v7816_v12 = vmin.f32 %v4940_v33, %v4975_v15  ;;  %v3900_v9 = vld [vmem:[%s4222_s30 + $0x108] sm:$0xff] }
 0x169   : > { %vm7818_vm12 = vcmp.ne.f32.partialorder %v7817_v35, 0.0  ;;  %v5577_v19 = vadd.f32 %v1424_v20, %v1423_v58  ;;  %3771 = vrsqrt.f32 %v5545_v4  ;;  %v7819_v17 = vmin.f32 %v4951_v25, %v5008_v60  ;;  %v3902_v22 = vld [vmem:[%s4222_s30 + $0x128] sm:$0xff] }
 0x16a   : > { %v5573_v21 = vmin.f32 %v7816_v12, %v5105_v59  ;;  %v1383_v6 = vsel %vm7818_vm12, %v1379_v56, 0.0  ;;  %v1469_v3 = vcombine.high %v5494_v40, %v5494_v40  ;;  %v1475_v28 = vrot.slane %v1474_v44, 2 }
 0x16b   : > { %v5584_v52 = vmin.f32 %v7819_v17, %v5109_v63  ;;  %v1482_v33 = vrot.slane %v1481_v26, 2  ;;  %v5589_v15 = vadd.f32 %v1380_v49, %v5502_v16  ;;  %v5592_v59 = vadd.f32 %v1381_v2, %v5505_v36 }
 0x16c   : > { %v5595_v18 = vadd.f32 %v1382_v42, %v5509_v39  ;;  %3773 = vrsqrt.f32 %v5559_v34  ;;  %v5599_v25 = vadd.f32 %v1383_v6, %v5515_v14  ;;  %vm1428_vm13 = vcmp.eq.f32.partialorder %v5545_v4, inf }
 0x16d   : > { %vm1430_vm14 = vcmp.eq.f32.partialorder %v5545_v4, 0.0  ;;  %3775 = vrsqrt.f32 %v5567_v13  ;;  %v1431_v60 = vand.u32 2147483648, %v5545_v4  ;;  %vm1435_vm15 = vcmp.eq.f32.partialorder %v5559_v34, inf }
 0x16e   : > { %v1438_v63 = vand.u32 2147483648, %v5559_v34  ;;  %3777 = vrsqrt.f32 %v5577_v19  ;;  %vm1437_vm1 = vcmp.eq.f32.partialorder %v5559_v34, 0.0  ;;  %v1476_v16 = vadd.f32 %v1475_v28, %v1474_v44  ;;  %v3901_v44 = vld [vmem:[%s4222_s30 + $0x120] sm:$0xff] }
 0x16f   : > { %v1483_v36 = vadd.f32 %v1482_v33, %v1481_v26  ;;  %v1486_v39 = vsel %vm953_vm0, %v5494_v40, 0.0  ;;  %v1493_v14 = vsel %vm953_vm0, %v1469_v3, 0.0  ;;  %vm1442_vm6 = vcmp.eq.f32.partialorder %v5567_v13, inf }
 0x170   : > { %v1487_v10 = vrot.slane %v1486_v39, 4  ;;  %v1494_v41 = vrot.slane %v1493_v14, 4  ;;  %v1536_v45 = vsub.f32 %v3899_v55, %v5039_v30  ;;  %vm1444_vm8 = vcmp.eq.f32.partialorder %v5567_v13, 0.0 }
 0x171   : > { %v1477_v51 = vrot.slane %v1476_v16, 1  ;;  %v1484_v61 = vrot.slane %v1483_v36, 1  ;;  %v1537_v38 = vsub.f32 %v3900_v9, %v5041_v1  ;;  %v1445_v37 = vand.u32 2147483648, %v5567_v13  ;;  %v7822_v9 = vld [vmem:[#allocation32_spill] sm:$0xff] }
 0x172   : > { %v1488_v40 = vadd.f32 %v1487_v10, %v1486_v39  ;;  %v1495_v58 = vadd.f32 %v1494_v41, %v1493_v14  ;;  %v1610_v26 = vsub.f32 %v3901_v44, %v5039_v30  ;;  %v1538_v48 = vmul.f32 %v1536_v45, %v1536_v45  ;;  %v7826_v44 = vld [vmem:[#allocation34_spill] sm:$0xff] }
 0x173   : > { %v5621_v5 = vadd.f32 %v1477_v51, %v1476_v16  ;;  %v5623_v24 = vadd.f32 %v1484_v61, %v1483_v36  ;;  %v1611_v54 = vsub.f32 %v3902_v22, %v5041_v1  ;;  %v3772_v57 = vpop.eup %3771  ;;  %vm1449_vm7 = vcmp.eq.f32.partialorder %v5577_v19, inf }
 0x174   : > { %vm1451_vm4 = vcmp.eq.f32.partialorder %v5577_v19, 0.0  ;;  %v1489_v20 = vrot.slane %v1488_v40, 2  ;;  %v1496_v53 = vrot.slane %v1495_v58, 2  ;;  %v1427_v31 = vmul.f32 %v3772_v57, %v5545_v4 }
 0x175   : > { %v1452_v11 = vand.u32 2147483648, %v5577_v19  ;;  %3779 = vrsqrt.f32 %v5621_v5  ;;  %v1539_v49 = vmul.f32 %v1537_v38, %v1537_v38  ;;  %v5633_v7 = vmul.f32 %v1610_v26, %v1610_v26 }
 0x176   : > { %v3774_v56 = vpop.eup %3773  ;;  %v1490_v0 = vadd.f32 %v1489_v20, %v1488_v40  ;;  %v1497_v2 = vadd.f32 %v1496_v53, %v1495_v58  ;;  %3781 = vrsqrt.f32 %v5623_v24  ;;  %v1429_v12 = vsel %vm1428_vm13, %v5545_v4, %v1427_v31  ;;  %v7824_v40 = vld [vmem:[#allocation33_spill] sm:$0xff] }
 0x177   : > { %v3776_v42 = vpop.eup %3775  ;;  %v1434_v35 = vmul.f32 %v3774_v56, %v5559_v34  ;;  %v1542_v6 = vcombine.high %v1538_v48, %v1538_v48  ;;  %v5639_v17 = vmul.f32 %v1611_v54, %v1611_v54  ;;  %v1432_v28 = vsel %vm1430_vm14, %v1431_v60, %v1429_v12  ;;  %v7820_v60 = vld [vmem:[#allocation31_spill] sm:$0xff] }
 0x178   : > { %v3778_v3 = vpop.eup %3777  ;;  %v1441_v33 = vmul.f32 %v3776_v42, %v5567_v13  ;;  %v1491_v16 = vrot.slane %v1490_v0, 1  ;;  %v1498_v36 = vrot.slane %v1497_v2, 1  ;;  %vm1502_vm9 = vcmp.eq.f32.partialorder %v5621_v5, inf }
 0x179   : > { %v1436_v39 = vsel %vm1435_vm15, %v5559_v34, %v1434_v35  ;;  %v1448_v14 = vmul.f32 %v3778_v3, %v5577_v19  ;;  %v1543_v10 = vcombine.high %v1539_v49, %v1539_v49  ;;  %vm7821_vm10 = vcmp.ne.f32.partialorder %v7820_v60, 0.0 }
 0x17a   : > { %v1439_v41 = vsel %vm1437_vm1, %v1438_v63, %v1436_v39  ;;  %v1443_v4 = vsel %vm1442_vm6, %v5567_v13, %v1441_v33  ;;  %v1454_v55 = vsel %vm7821_vm10, %v1432_v28, 0.0  ;;  %v5656_v45 = vadd.f32 %v1491_v16, %v1490_v0 }
 0x17b   : > { %v1446_v51 = vsel %vm1444_vm8, %v1445_v37, %v1443_v4  ;;  %v1450_v61 = vsel %vm1449_vm7, %v5577_v19, %v1448_v14  ;;  %vm7823_vm2 = vcmp.ne.f32.partialorder %v7822_v9, 0.0  ;;  %v5665_v63 = vadd.f32 %v1498_v36, %v1497_v2 }
 0x17c   : > { %v1455_v34 = vsel %vm7823_vm2, %v1439_v41, 0.0  ;;  %v1453_v38 = vsel %vm1451_vm4, %v1452_v11, %v1450_v61  ;;  %vm7825_vm11 = vcmp.ne.f32.partialorder %v7824_v40, 0.0  ;;  %vm1504_vm3 = vcmp.eq.f32.partialorder %v5621_v5, 0.0 }
 0x17d   : > { %v1456_v58 = vsel %vm7825_vm11, %v1446_v51, 0.0  ;;  %3783 = vrsqrt.f32 %v5656_v45  ;;  %v1505_v13 = vand.u32 2147483648, %v5621_v5  ;;  %vm1509_vm5 = vcmp.eq.f32.partialorder %v5623_v24, inf }
 0x17e   : > { %vm1511_vm12 = vcmp.eq.f32.partialorder %v5623_v24, 0.0  ;;  %v1512_v37 = vand.u32 2147483648, %v5623_v24  ;;  %vm7827_vm13 = vcmp.ne.f32.partialorder %v7826_v44, 0.0  ;;  %v1458_v19 = vadd.f32 %v1454_v55, %v5589_v15 }
 0x17f   : > { %v1457_v26 = vsel %vm7827_vm13, %v1453_v38, 0.0  ;;  %v1459_v22 = vadd.f32 %v1455_v34, %v5592_v59  ;;  %3785 = vrsqrt.f32 %v5665_v63  ;;  %v3780_v54 = vpop.eup %3779  ;;  %v5683_v57 = vadd.f32 %v1456_v58, %v5595_v18  ;;  %v7828_v38 = vld [vmem:[#allocation35_spill] sm:$0xff] }
 0x180   : > { %vm1516_vm14 = vcmp.eq.f32.partialorder %v5656_v45, inf  ;;  %v1546_v20 = vsel %vm953_vm0, %v1538_v48, 0.0  ;;  %v1553_v53 = vsel %vm953_vm0, %v1542_v6, 0.0  ;;  %v3782_v31 = vpop.eup %3781  ;;  %v1501_v11 = vmul.f32 %v3780_v54, %v5621_v5 }
 0x181   : > { %v1547_v56 = vrot.slane %v1546_v20, 4  ;;  %v1554_v0 = vrot.slane %v1553_v53, 4  ;;  %v1560_v15 = vsel %vm953_vm0, %v1539_v49, 0.0  ;;  %v1508_v59 = vmul.f32 %v3782_v31, %v5623_v24 }
 0x182   : > { %vm1518_vm15 = vcmp.eq.f32.partialorder %v5656_v45, 0.0  ;;  %v1561_v2 = vrot.slane %v1560_v15, 4  ;;  %v1567_v18 = vsel %vm953_vm0, %v1543_v10, 0.0  ;;  %v1503_v48 = vsel %vm1502_vm9, %v5621_v5, %v1501_v11 }
 0x183   : > { %v1548_v42 = vadd.f32 %v1547_v56, %v1546_v20  ;;  %v1555_v12 = vadd.f32 %v1554_v0, %v1553_v53  ;;  %v1568_v35 = vrot.slane %v1567_v18, 4  ;;  %v5697_v6 = vadd.f32 %v1457_v26, %v5599_v25  ;;  %v7830_v20 = vld [vmem:[#allocation36_spill] sm:$0xff] }
 0x184   : > { %v1519_v3 = vand.u32 2147483648, %v5656_v45  ;;  %vm1523_vm1 = vcmp.eq.f32.partialorder %v5665_v63, inf  ;;  %v1562_v49 = vadd.f32 %v1561_v2, %v1560_v15  ;;  %v1510_v28 = vsel %vm1509_vm5, %v5623_v24, %v1508_v59 }
 0x185   : > { %vm1525_vm6 = vcmp.eq.f32.partialorder %v5665_v63, 0.0  ;;  %v1549_v33 = vrot.slane %v1548_v42, 2  ;;  %v1556_v16 = vrot.slane %v1555_v12, 2  ;;  %v1506_v36 = vsel %vm1504_vm3, %v1505_v13, %v1503_v48 }
 0x186   : > { %v1526_v39 = vand.u32 2147483648, %v5665_v63  ;;  %v1563_v25 = vrot.slane %v1562_v49, 2  ;;  %v1569_v14 = vadd.f32 %v1568_v35, %v1567_v18  ;;  %v1616_v60 = vcombine.high %v5633_v7, %v5633_v7 }
 0x187   : > { %v3784_v10 = vpop.eup %3783  ;;  %v1550_v41 = vadd.f32 %v1549_v33, %v1548_v42  ;;  %v1557_v4 = vadd.f32 %v1556_v16, %v1555_v12  ;;  %v1620_v55 = vsel %vm953_vm0, %v5633_v7, 0.0  ;;  %v1513_v51 = vsel %vm1511_vm12, %v1512_v37, %v1510_v28 }
 0x188   : > { %v1515_v61 = vmul.f32 %v3784_v10, %v5656_v45  ;;  %v1564_v5 = vadd.f32 %v1563_v25, %v1562_v49  ;;  %v1570_v9 = vrot.slane %v1569_v14, 2  ;;  %vm7829_vm8 = vcmp.ne.f32.partialorder %v7828_v38, 0.0 }
 0x189   : > { %v3786_v34 = vpop.eup %3785  ;;  %v1528_v40 = vsel %vm7829_vm8, %v1506_v36, 0.0  ;;  %v1551_v58 = vrot.slane %v1550_v41, 1  ;;  %v1558_v13 = vrot.slane %v1557_v4, 1  ;;  %v1621_v44 = vrot.slane %v1620_v55, 4 }
 0x18a   : > { %v1517_v26 = vsel %vm1516_vm14, %v5656_v45, %v1515_v61  ;;  %v1522_v7 = vmul.f32 %v3786_v34, %v5665_v63  ;;  %v1565_v54 = vrot.slane %v1564_v5, 1  ;;  %v1571_v24 = vadd.f32 %v1570_v9, %v1569_v14 }
 0x18b   : > { %v1520_v37 = vsel %vm1518_vm15, %v1519_v3, %v1517_v26  ;;  %vm7831_vm7 = vcmp.ne.f32.partialorder %v7830_v20, 0.0  ;;  %v5725_v31 = vadd.f32 %v1551_v58, %v1550_v41  ;;  %v5727_v11 = vadd.f32 %v1558_v13, %v1557_v4 }
 0x18c   : > { %v1529_v53 = vsel %vm7831_vm7, %v1513_v51, 0.0  ;;  %v1524_v56 = vsel %vm1523_vm1, %v5665_v63, %v1522_v7  ;;  %vm7832_vm4 = vcmp.ne.f32.partialorder %v4826_v8, 0.0  ;;  %v5734_v15 = vadd.f32 %v1565_v54, %v1564_v5 }
 0x18d   : > { %v1530_v0 = vsel %vm7832_vm4, %v1520_v37, 0.0  ;;  %v1572_v59 = vrot.slane %v1571_v24, 1  ;;  %v1527_v45 = vsel %vm1525_vm6, %v1526_v39, %v1524_v56  ;;  %v5738_v2 = vadd.f32 %v1528_v40, %v1458_v19 }
 0x18e   : > { %3787 = vrsqrt.f32 %v5725_v31  ;;  %v1617_v18 = vcombine.high %v5639_v17, %v5639_v17  ;;  %v5743_v48 = vadd.f32 %v1529_v53, %v1459_v22  ;;  %v1622_v12 = vadd.f32 %v1621_v44, %v1620_v55 }
 0x18f   : > { %v5745_v42 = vadd.f32 %v1572_v59, %v1571_v24  ;;  %v1627_v8 = vsel %vm953_vm0, %v1616_v60, 0.0  ;;  %v5749_v35 = vadd.f32 %v1530_v0, %v5683_v57  ;;  %vm1576_vm9 = vcmp.eq.f32.partialorder %v5725_v31, inf }
 0x190   : > { %3789 = vrsqrt.f32 %v5727_v11  ;;  %v1634_v63 = vsel %vm953_vm0, %v5639_v17, 0.0  ;;  %vm7833_vm10 = vcmp.ne.f32.partialorder %v4838_v43, 0.0  ;;  %vm1578_vm2 = vcmp.eq.f32.partialorder %v5725_v31, 0.0 }
 0x191   : > { %v5757_v19 = vsel %vm7833_vm10, %v1527_v45, 0.0  ;;  %v1579_v22 = vand.u32 2147483648, %v5725_v31  ;;  %3791 = vrsqrt.f32 %v5734_v15  ;;  %vm1583_vm11 = vcmp.eq.f32.partialorder %v5727_v11, inf }
 0x192   : > { %v1586_v57 = vand.u32 2147483648, %v5727_v11  ;;  %v1593_v3 = vand.u32 2147483648, %v5734_v15  ;;  %3793 = vrsqrt.f32 %v5745_v42  ;;  %vm1585_vm3 = vcmp.eq.f32.partialorder %v5727_v11, 0.0 }
 0x193   : > { %vm1590_vm5 = vcmp.eq.f32.partialorder %v5734_v15, inf  ;;  %v1600_v43 = vand.u32 2147483648, %v5745_v42  ;;  %v1623_v17 = vrot.slane %v1622_v12, 2  ;;  %v1628_v49 = vrot.slane %v1627_v8, 4 }
 0x194   : > { %v1635_v28 = vrot.slane %v1634_v63, 4  ;;  %vm1592_vm12 = vcmp.eq.f32.partialorder %v5734_v15, 0.0  ;;  %vm1597_vm13 = vcmp.eq.f32.partialorder %v5745_v42, inf  ;;  %v1641_v33 = vsel %vm953_vm0, %v1617_v18, 0.0 }
 0x195   : > { %v1694_v16 = vcombine.high %v5039_v30, %v5039_v30  ;;  %v1695_v36 = vcombine.high %v5041_v1, %v5041_v1  ;;  %v1704_v39 = vcombine.high %v5252_v23, %v5252_v23  ;;  %v1624_v25 = vadd.f32 %v1623_v17, %v1622_v12 }
 0x196   : > { %v1629_v14 = vadd.f32 %v1628_v49, %v1627_v8  ;;  %v1636_v10 = vadd.f32 %v1635_v28, %v1634_v63  ;;  %v1642_v41 = vrot.slane %v1641_v33, 4  ;;  %v1705_v4 = vcombine.high %v5258_v29, %v5258_v29 }
 0x197   : > { %1699 = vst [vmem:[%s5061_s17 + $0x8] sm:$0x7] %v1694_v16  ;;  %1701 = vst [vmem:[%s5061_s17 + $0x18] sm:$0x7] %v1695_v36  ;;  %v1706_v60 = vrot.slane %v5252_v23, 5  ;;  %v1707_v55 = vrot.slane %v1704_v39, 5  ;;  %v1720_v58 = vcombine.high %v5573_v21, %v5573_v21  ;;  %v1721_v23 = vcombine.high %v5584_v52, %v5584_v52 }
 0x198   : > { %v1708_v51 = vrot.slane %v5258_v29, 5  ;;  %v1625_v61 = vrot.slane %v1624_v25, 1  ;;  %v1630_v5 = vrot.slane %v1629_v14, 2  ;;  %v1637_v9 = vrot.slane %v1636_v10, 2  ;;  %v3788_v38 = vpop.eup %3787 }
 0x199   : > { %v1643_v34 = vadd.f32 %v1642_v41, %v1641_v33  ;;  %v1709_v40 = vrot.slane %v1705_v4, 5  ;;  %1714 = vst [vmem:[%s5061_s17] sm:$0x38] %v1706_v60  ;;  %1715 = vst [vmem:[%s5061_s17 + $0x8] sm:$0x38] %v1707_v55  ;;  %v1722_v13 = vrot.slane %v5573_v21, 2  ;;  %v1575_v29 = vmul.f32 %v3788_v38, %v5725_v31  ;;  %v7839_v4 = vld [vmem:[#allocation46_spill] sm:$0xff] }
 0x19a   : > { %1716 = vst [vmem:[%s5061_s17 + $0x10] sm:$0x38] %v1708_v51  ;;  %v5793_v44 = vadd.f32 %v1625_v61, %v1624_v25  ;;  %v1631_v26 = vadd.f32 %v1630_v5, %v1629_v14  ;;  %v1638_v7 = vadd.f32 %v1637_v9, %v1636_v10  ;;  %v3790_v54 = vpop.eup %3789  ;;  %v1723_v37 = vrot.slane %v1720_v58, 2  ;;  %v7837_v10 = vld [vmem:[#allocation37_spill] sm:$0xff]  ;;  %v5876_v55 = vld [vmem:[%s4222_s30 + $0x18] sm:$0xff] }
 0x19b   : > { %v1644_v24 = vrot.slane %v1643_v34, 2  ;;  %1717 = vst [vmem:[%s5061_s17 + $0x18] sm:$0x38] %v1709_v40  ;;  %v1724_v20 = vrot.slane %v5584_v52, 2  ;;  %v1725_v53 = vrot.slane %v1721_v23, 2  ;;  %v3792_v56 = vpop.eup %3791  ;;  %v1577_v21 = vsel %vm1576_vm9, %v5725_v31, %v1575_v29 }
 0x19c   : > { %1730 = vst [vmem:[%s5061_s17 + $0x40] ss:$-60 sps:$4 sm:$0xc1] %v1722_v13   ;;  %v1582_v0 = vmul.f32 %v3790_v54, %v5727_v11  ;;  %v1632_v59 = vrot.slane %v1631_v26, 1  ;;  %v1639_v45 = vrot.slane %v1638_v7, 1  ;;  %v3794_v18 = vpop.eup %3793  ;;  %v1580_v12 = vsel %vm1578_vm2, %v1579_v22, %v1577_v21  ;;  %v7843_v54 = vld [vmem:[#allocation13_spill] sm:$0xff] }
 0x19d   : > { %v1589_v8 = vmul.f32 %v3792_v56, %v5734_v15  ;;  %v1645_v63 = vadd.f32 %v1644_v24, %v1643_v34  ;;  %3795 = vrsqrt.f32 %v5793_v44  ;;  %1731 = vst [vmem:[%s5061_s17 + $0x48] ss:$-60 sps:$4 sm:$0xc1] %v1723_v37   ;;  %1732 = vst [vmem:[%s5061_s17 + $0x50] ss:$-60 sps:$4 sm:$0xc1] %v1724_v20   ;;  %v1596_v17 = vmul.f32 %v3794_v18, %v5745_v42 }
 0x19e   : > { %1733 = vst [vmem:[%s5061_s17 + $0x58] ss:$-60 sps:$4 sm:$0xc1] %v1725_v53   ;;  %v1584_v52 = vsel %vm1583_vm11, %v5727_v11, %v1582_v0  ;;  %vm1599_vm14 = vcmp.eq.f32.partialorder %v5745_v42, 0.0  ;;  %vm7834_vm15 = vcmp.ne.f32.partialorder %v4901_v47, 0.0  ;;  %v5823_v28 = vadd.f32 %v1632_v59, %v1631_v26  ;;  %v7845_v56 = vld [vmem:[#allocation38_spill] sm:$0xff] }
 0x19f   : > { %v1602_v31 = vsel %vm7834_vm15, %v1580_v12, 0.0  ;;  %v1587_v22 = vsel %vm1585_vm3, %v1586_v57, %v1584_v52  ;;  %v1591_v49 = vsel %vm1590_vm5, %v5734_v15, %v1589_v8  ;;  %v5825_v33 = vadd.f32 %v1639_v45, %v1638_v7 }
 0x1a0   : > { %v1594_v16 = vsel %vm1592_vm12, %v1593_v3, %v1591_v49  ;;  %v1598_v47 = vsel %vm1597_vm13, %v5745_v42, %v1596_v17  ;;  %vm7835_vm1 = vcmp.ne.f32.partialorder %v4903_v50, 0.0  ;;  %v1646_v57 = vrot.slane %v1645_v63, 1 }
 0x1a1   : > { %v1603_v11 = vsel %vm7835_vm1, %v1587_v22, 0.0  ;;  %v939_v36 = vmul.f32 0.1, %v5045_v32  ;;  %v1535_v39 = vadd.f32 %v5757_v19, %v5697_v6  ;;  %v1601_v25 = vsel %vm1599_vm14, %v1600_v43, %v1598_v47  ;;  %v5873_v43 = vld [vmem:[%s4222_s30 + $0x10] sm:$0xff] }
 0x1a2   : > { %vm7836_vm6 = vcmp.ne.f32.partialorder %v4905_v62, 0.0  ;;  %v940_v3 = vmul.f32 0.1, %v5047_v46  ;;  %v941_v14 = vmul.f32 0.1, %v5049_v27  ;;  %vm7838_vm8 = vcmp.ne.f32.partialorder %v7837_v10, 0.0 }
 0x1a3   : > { %v1604_v15 = vsel %vm7836_vm6, %v1594_v16, 0.0  ;;  %v1605_v50 = vsel %vm7838_vm8, %v1601_v25, 0.0  ;;  %v5847_v41 = vadd.f32 %v1646_v57, %v1645_v63  ;;  %v942_v32 = vmul.f32 0.1, %v7839_v4 }
 0x1a4   : > { %v1606_v60 = vadd.f32 %v1602_v31, %v5738_v2  ;;  %v5852_v6 = vadd.f32 %v1603_v11, %v5743_v48  ;;  %3797 = vrsqrt.f32 %v5823_v28  ;;  %v5856_v62 = vadd.f32 %v1604_v15, %v5749_v35 }
 0x1a5   : > { %vm1650_vm7 = vcmp.eq.f32.partialorder %v5793_v44, inf  ;;  %vm1652_vm4 = vcmp.eq.f32.partialorder %v5793_v44, 0.0  ;;  %3799 = vrsqrt.f32 %v5825_v33  ;;  %v5861_v46 = vadd.f32 %v1605_v50, %v1535_v39  ;;  %v7852_v39 = vld [vmem:[#allocation42_spill] sm:$0xff] }
 0x1a6   : > { %v1653_v27 = vand.u32 2147483648, %v5793_v44  ;;  %vm1657_vm9 = vcmp.eq.f32.partialorder %v5823_v28, inf  ;;  %3801 = vrsqrt.f32 %v5847_v41  ;;  %vm1659_vm10 = vcmp.eq.f32.partialorder %v5823_v28, 0.0 }
 0x1a7   : > { %v1660_v2 = vand.u32 2147483648, %v5823_v28  ;;  %vm1664_vm2 = vcmp.eq.f32.partialorder %v5825_v33, inf  ;;  %v3796_v48 = vpop.eup %3795  ;;  %vm1666_vm11 = vcmp.eq.f32.partialorder %v5825_v33, 0.0  ;;  %v1667_v42 = vand.u32 2147483648, %v5825_v33 }
 0x1a8   : > { %vm1671_vm3 = vcmp.eq.f32.partialorder %v5847_v41, inf  ;;  %v4062_v35 = vmov 1966171168   ;;  %v1649_v51 = vmul.f32 %v3796_v48, %v5793_v44  ;;  %vm1673_vm5 = vcmp.eq.f32.partialorder %v5847_v41, 0.0  ;;  %v7855_v48 = vld [vmem:[#allocation40_spill] sm:$0xff] }
 0x1a9   : > { %v1739_v19 = vunpack.c.l.s4 %v4062_v35  ;;  %v1840_v61 = vcombine.high %v5873_v43, %v5873_v43  ;;  %v1841_v5 = vcombine.high %v5876_v55, %v5876_v55  ;;  %vm7840_vm12 = vcmask 1043456  }
 0x1aa   : > { %v1844_v9 = vsel %vm7840_vm12, %v5873_v43, 0.0  ;;  %v1773_v38 = vcombine.low %v939_v36, %v940_v3  ;;  %vm7841_vm13 = vmmov %vm7840_vm12  ;;  %v1651_v23 = vsel %vm1650_vm7, %v5793_v44, %v1649_v51  ;;  %v1774_v13 = vcombine.low %v941_v14, %v942_v32 }
 0x1ab   : > { %v1740_v34 = vunpack.c.0.s8 %v1739_v19  ;;  %v1845_v40 = vrot.slane %v1844_v9, 4  ;;  %v1858_v58 = vsel %vm7841_vm13, %v5876_v55, 0.0  ;;  %vm7842_vm14 = vmmov %vm7840_vm12  ;;  %v1654_v7 = vsel %vm1652_vm4, %v1653_v27, %v1651_v23 }
 0x1ac   : > { %v1851_v29 = vsel %vm7842_vm14, %v1840_v61, 0.0  ;;  %v1859_v26 = vrot.slane %v1858_v58, 4  ;;  %v1674_v53 = vand.u32 2147483648, %v5847_v41  ;;  %vm7846_vm15 = vcmp.ne.f32.partialorder %v7845_v56, 0.0  ;;  %vm7851_vm6 = vmmov %vm7840_vm12 }
 0x1ad   : > { %v5895_v24 = vsub.s32 %v1740_v34, %v7843_v54  ;;  %v1846_v37 = vadd.f32 %v1845_v40, %v1844_v9  ;;  %v1852_v20 = vrot.slane %v1851_v29, 4  ;;  %v1676_v21 = vsel %vm7846_vm15, %v1654_v7, 0.0  ;;  %v7859_v34 = vld [vmem:[#allocation43_spill] sm:$0xff] }
 0x1ae   : > { %v7847_v0 = vlaneseq  ;;  %v7848_v59 = vmov 0  ;;  %v1865_v45 = vsel %vm7851_vm6, %v1841_v5, 0.0  ;;  %v3798_v18 = vpop.eup %3797  ;;  %v1680_v44 = vadd.f32 %v1676_v21, %v1606_v60  ;;  %v7853_v60 = vld [vmem:[#allocation39_spill] sm:$0xff] }
 0x1af   : > { %7844 = vst [vmem:[#allocation12_spill] sm:$0xff] %v5895_v24  ;;  %v1744_v12 = vrot.slane %v5039_v30, %v5895_v24  ;;  %v1751_v8 = vrot.slane %v5041_v1, %v5895_v24  ;;  %v1781_v63 = vrot.slane %v1773_v38, %v5895_v24  ;;  %v3800_v52 = vpop.eup %3799  ;;  %v1656_v17 = vmul.f32 %v3798_v18, %v5823_v28 }
 0x1b0   : > { %vm5901_vm1 = vcmp.lt.s32.totalorder %v7847_v0, 512  ;;  %v1788_v31 = vrot.slane %v1774_v13, %v5895_v24  ;;  %v1853_v22 = vadd.f32 %v1852_v20, %v1851_v29  ;;  %v1860_v49 = vadd.f32 %v1859_v26, %v1858_v58  ;;  %v3802_v16 = vpop.eup %3801  ;;  %v7860_v58 = vld [vmem:[#allocation44_spill] sm:$0xff] }
 0x1b1   : > { %v7849_v59 = vsel %vm5901_vm1, 4294967295, %v7848_v59  ;;  %v1663_v47 = vmul.f32 %v3800_v52, %v5825_v33  ;;  %v1752_v11 = vcombine.high %v1744_v12, %v1751_v8  ;;  %v1847_v57 = vrot.slane %v1846_v37, 2 }
 0x1b2   : > { %7850 = vst [vmem:[#allocation11_spill] sm:$0xff] %v7849_v59  ;;  %v1866_v36 = vrot.slane %v1865_v45, 4  ;;  %v1658_v30 = vsel %vm1657_vm9, %v5823_v28, %v1656_v17  ;;  %v1670_v1 = vmul.f32 %v3802_v16, %v5847_v41  ;;  %v1688_v25 = vmul.f32 %v1680_v44, %v7852_v39  ;;  %vm7861_vm9 = vmmov %vm7851_vm6  ;;  %v5960_v44 = vld [vmem:[%s4222_s30 + $0x38] sm:$0xff] }
 0x1b3   : > { %v1789_v15 = vcombine.low %v1781_v63, %v1788_v31  ;;  %v1661_v3 = vsel %vm1659_vm10, %v1660_v2, %v1658_v30  ;;  %v1665_v14 = vsel %vm1664_vm2, %v5825_v33, %v1663_v47  ;;  %v1759_v10 = vrot.slane %v1752_v11, %v5895_v24  ;;  %vm7863_vm10 = vmmov %vm7851_vm6 }
 0x1b4   : > { %v1854_v50 = vrot.slane %v1853_v22, 2  ;;  %v1668_v4 = vsel %vm1666_vm11, %v1667_v42, %v1665_v14  ;;  %v1672_v32 = vsel %vm1671_vm3, %v5847_v41, %v1670_v1  ;;  %vm7854_vm8 = vcmp.ne.f32.partialorder %v7853_v60, 0.0  ;;  %v7857_v42 = vld [vmem:[#allocation41_spill] sm:$0xff]  ;;  %vm7864_vm2 = vmmov %vm7851_vm6 }
 0x1b5   : > { %v1677_v28 = vsel %vm7854_vm8, %v1661_v3, 0.0  ;;  %v1796_v27 = vrot.slane %v1789_v15, %v5895_v24  ;;  %v1675_v2 = vsel %vm1673_vm5, %v1674_v53, %v1672_v32  ;;  %vm7856_vm7 = vcmp.ne.f32.partialorder %v7855_v48, 0.0  ;;  %vm7865_vm11 = vmmov %vm7864_vm2  ;;  %v1833_v60 = vld [vmem:[%s4230_s14 + $0x4] sm:$0xf] }
 0x1b6   : > { %v1678_v35 = vsel %vm7856_vm7, %v1668_v4, 0.0  ;;  %v1681_v19 = vadd.f32 %v1677_v28, %v5852_v6  ;;  %v1760_v33 = vcombine.high %v1759_v10, %v1759_v10  ;;  %vm7858_vm4 = vcmp.ne.f32.partialorder %v7857_v42, 0.0  ;;  %v5950_v6 = vld [vmem:[%s4222_s30 + $0x30] sm:$0xff]  ;;  %vm7867_vm14 = vmmov %vm7864_vm2 }
 0x1b7   : > { %v1679_v51 = vsel %vm7858_vm4, %v1675_v2, 0.0  ;;  %v1682_v61 = vadd.f32 %v1678_v35, %v5856_v62  ;;  %3588 = vst.msk [vmem:[%s5061_s17 + $0x42] ss:$8 sm:$0xf] %vm5901_vm1, %v1796_v27  ;;  %v1861_v5 = vrot.slane %v1860_v49, 2  ;;  %v1848_v38 = vadd.f32 %v1847_v57, %v1846_v37  ;;  %v5994_v35 = vld [vmem:[%s4222_s30 + $0x58] sm:$0xff]  ;;  %vm7868_vm15 = vmmov %vm7864_vm2 }
 0x1b8   : > { %v1683_v9 = vadd.f32 %v1679_v51, %v5861_v46  ;;  %v1689_v41 = vmul.f32 %v1681_v19, %v7859_v34  ;;  %3587 = vst.msk [vmem:[%s5061_s17 + $0x41] ss:$8 sm:$0xf] %vm5901_vm1, %v1760_v33  ;;  %v1867_v40 = vadd.f32 %v1866_v36, %v1865_v45  ;;  %v1855_v13 = vadd.f32 %v1854_v50, %v1853_v22  ;;  %v7862_v46 = vld [vmem:[#allocation45_spill] sm:$0xff]  ;;  %v5984_v50 = vld [vmem:[%s4222_s30 + $0x50] sm:$0xff]  ;;  %vm7869_vm6 = vmmov %vm7864_vm2 }
 0x1b9   : > { %v1690_v23 = vmul.f32 %v1682_v61, %v7860_v58  ;;  %v1910_v62 = vcombine.high %v5950_v6, %v5950_v6  ;;  %v1914_v29 = vsel %vm7861_vm9, %v5950_v6, 0.0  ;;  %v1862_v53 = vadd.f32 %v1861_v5, %v1860_v49  ;;  %vm7870_vm8 = vmmov %vm7864_vm2 }
 0x1ba   : > { %v1691_v26 = vmul.f32 %v1683_v9, %v7862_v46  ;;  %v1805_v7 = vcombine.low %v1688_v25, %v1689_v41  ;;  %v1868_v20 = vrot.slane %v1867_v40, 2  ;;  %v1915_v56 = vrot.slane %v1914_v29, 4 }
 0x1bb   : > { %v1849_v0 = vrot.slane %v1848_v38, 1  ;;  %v1856_v18 = vrot.slane %v1855_v13, 1  ;;  %v1921_v8 = vsel %vm7863_vm10, %v1910_v62, 0.0  ;;  %v1911_v52 = vcombine.high %v5960_v44, %v5960_v44 }
 0x1bc   : > { %v1806_v37 = vcombine.low %v1690_v23, %v1691_v26  ;;  %v1813_v21 = vrot.slane %v1805_v7, %v5895_v24  ;;  %v1869_v45 = vadd.f32 %v1868_v20, %v1867_v40  ;;  %v1916_v12 = vadd.f32 %v1915_v56, %v1914_v29 }
 0x1bd   : > { %v1863_v17 = vrot.slane %v1862_v53, 1  ;;  %v5966_v22 = vadd.f32 %v1849_v0, %v1848_v38  ;;  %v1922_v16 = vrot.slane %v1921_v8, 4  ;;  %v5968_v47 = vadd.f32 %v1856_v18, %v1855_v13 }
 0x1be   : > { %v1820_v63 = vrot.slane %v1806_v37, %v5895_v24  ;;  %v1870_v49 = vrot.slane %v1869_v45, 1  ;;  %v1917_v11 = vrot.slane %v1916_v12, 2  ;;  %v1928_v57 = vsel %vm7864_vm2, %v5960_v44, 0.0 }
 0x1bf   : > { %v1923_v30 = vadd.f32 %v1922_v16, %v1921_v8  ;;  %v1935_v1 = vsel %vm7865_vm11, %v1911_v52, 0.0  ;;  %v5974_v39 = vadd.f32 %v1863_v17, %v1862_v53  ;;  %vm1872_vm3 = vcmp.ne.f32.partialorder %v5966_v22, 0.0  ;;  %vm7872_vm11 = vmmov %vm7864_vm2 }
 0x1c0   : > { %v1821_v31 = vcombine.low %v1813_v21, %v1820_v63  ;;  %v5979_v25 = vadd.f32 %v1870_v49, %v1869_v45  ;;  %v1929_v3 = vrot.slane %v1928_v57, 4  ;;  %vm7717_vm5 = vcmp.ne.f32.partialorder %v5968_v47, 0.0 }
 0x1c1   : > { %v1924_v15 = vrot.slane %v1923_v30, 2  ;;  %v1918_v14 = vadd.f32 %v1917_v11, %v1916_v12  ;;  %v1936_v10 = vrot.slane %v1935_v1, 4  ;;  %v1980_v32 = vcombine.high %v5984_v50, %v5984_v50 }
 0x1c2   : > { %v1828_v36 = vrot.slane %v1821_v31, %v5895_v24  ;;  %vm1874_vm12 = vcmp.ne.f32.partialorder %v5974_v39, 0.0  ;;  %v7866_v28 = vmov 100000.0   ;;  %v1930_v2 = vadd.f32 %v1929_v3, %v1928_v57 }
 0x1c3   : > { %v1925_v4 = vadd.f32 %v1924_v15, %v1923_v30  ;;  %v1876_v27 = vsel %vm1872_vm3, 0.0, %v7866_v28  ;;  %v1937_v48 = vadd.f32 %v1936_v10, %v1935_v1  ;;  %vm7713_vm13 = vcmp.ne.f32.partialorder %v5979_v25, 0.0 }
 0x1c4   : > { %3589 = vst.msk [vmem:[%s5061_s17 + $0x43] ss:$8 sm:$0xf] %vm5901_vm1, %v1828_v36  ;;  %v1877_v19 = vsel %vm7717_vm5, 0.0, %v7866_v28  ;;  %v1981_v33 = vcombine.high %v5994_v35, %v5994_v35  ;;  %v1984_v42 = vsel %vm7867_vm14, %v5984_v50, 0.0  ;;  %v1919_v51 = vrot.slane %v1918_v14, 1  ;;  %vm7873_vm14 = vmmov %vm7864_vm2 }
 0x1c5   : > { %v1926_v61 = vrot.slane %v1925_v4, 1  ;;  %v1931_v5 = vrot.slane %v1930_v2, 2  ;;  %v1938_v9 = vrot.slane %v1937_v48, 2  ;;  %v1834_v34 = vcvt.s32.f32 %v1833_v60 }
 0x1c6   : > { %v1991_v41 = vsel %vm7868_vm15, %v1980_v32, 0.0  ;;  %v1985_v58 = vrot.slane %v1984_v42, 4  ;;  %v1998_v23 = vsel %vm7869_vm6, %v5994_v35, 0.0  ;;  %v1878_v13 = vsel %vm1874_vm12, 0.0, %v7866_v28  ;;  %vm7874_vm15 = vmmov %vm7864_vm2 }
 0x1c7   : > { %v1932_v38 = vadd.f32 %v1931_v5, %v1930_v2  ;;  %v1939_v40 = vadd.f32 %v1938_v9, %v1937_v48  ;;  %v1879_v62 = vsel %vm7713_vm13, 0.0, %v7866_v28  ;;  %v1894_v29 = vcombine.low %v1876_v27, %v1877_v19 }
 0x1c8   : > { %v2005_v46 = vsel %vm7870_vm8, %v1981_v33, 0.0  ;;  %v6014_v26 = vadd.f32 %v1919_v51, %v1918_v14  ;;  %v6016_v7 = vadd.f32 %v1926_v61, %v1925_v4  ;;  %v1992_v20 = vrot.slane %v1991_v41, 4 }
 0x1c9   : > { %v1999_v53 = vrot.slane %v1998_v23, 4  ;;  %v1933_v56 = vrot.slane %v1932_v38, 1  ;;  %v1940_v37 = vrot.slane %v1939_v40, 1  ;;  %v1986_v21 = vadd.f32 %v1985_v58, %v1984_v42 }
 0x1ca   : > { %v2006_v0 = vrot.slane %v2005_v46, 4  ;;  %3803 = vrcp.f32 %v1834_v34  ;;  %v1895_v45 = vcombine.low %v1878_v13, %v1879_v62  ;;  %v1898_v18 = vsub.f32 %v5873_v43, %v1894_v29 }
 0x1cb   : > { %vm7716_vm7 = vcmp.ne.f32.partialorder %v6014_v26, 0.0  ;;  %vm7714_vm4 = vcmp.ne.f32.partialorder %v6016_v7, 0.0  ;;  %v1993_v12 = vadd.f32 %v1992_v20, %v1991_v41  ;;  %v2000_v8 = vadd.f32 %v1999_v53, %v1998_v23  ;;  %v6086_v53 = vld [vmem:[%s4222_s30 + $0x78] sm:$0xff] }
 0x1cc   : > { %v7871_v63 = vmov 0.0   ;;  %v1902_v17 = vadd.f32 %v1894_v29, %v5873_v43  ;;  %v1946_v31 = vsel %vm7716_vm7, 0.0, %v7866_v28  ;;  %v1947_v49 = vsel %vm7714_vm4, 0.0, %v7866_v28 }
 0x1cd   : > { %v1882_v52 = vsel %vm1872_vm3, 1.0, %v7871_v63  ;;  %v6031_v16 = vadd.f32 %v1933_v56, %v1932_v38  ;;  %v6033_v11 = vadd.f32 %v1940_v37, %v1939_v40  ;;  %v1987_v57 = vrot.slane %v1986_v21, 2 }
 0x1ce   : > { %v2007_v36 = vadd.f32 %v2006_v0, %v2005_v46  ;;  %v1883_v30 = vsel %vm7717_vm5, 1.0, %v7871_v63  ;;  %v1884_v1 = vsel %vm1874_vm12, 1.0, %v7871_v63  ;;  %v1899_v15 = vsub.f32 %v5876_v55, %v1895_v45 }
 0x1cf   : > { %v6043_v3 = vadd.f32 %v1895_v45, %v5876_v55  ;;  %v1885_v14 = vsel %vm7713_vm13, 1.0, %v7871_v63  ;;  %v1900_v10 = vmax.f32 %v1898_v18, -100000.0  ;;  %v1994_v4 = vrot.slane %v1993_v12, 2 }
 0x1d0   : > { %v2001_v32 = vrot.slane %v2000_v8, 2  ;;  %v1904_v60 = vmin.f32 %v1902_v17, 100000.0  ;;  %v1950_v27 = vadd.f32 %v5950_v6, %v5873_v43  ;;  %v1951_v2 = vadd.f32 %v5960_v44, %v5876_v55  ;;  %v6064_v55 = vld [vmem:[%s4222_s30 + $0x70] sm:$0xff] }
 0x1d1   : > { %v1964_v48 = vcombine.low %v1946_v31, %v1947_v49  ;;  %vm7715_vm9 = vcmp.ne.f32.partialorder %v6031_v16, 0.0  ;;  %vm7712_vm10 = vcmp.ne.f32.partialorder %v6033_v11, 0.0  ;;  %v1988_v19 = vadd.f32 %v1987_v57, %v1986_v21 }
 0x1d2   : > { %v2008_v33 = vrot.slane %v2007_v36, 2  ;;  %v6054_v42 = vmax.f32 %v1899_v15, -100000.0  ;;  %v1905_v51 = vmin.f32 %v6043_v3, 100000.0  ;;  %v1948_v61 = vsel %vm7715_vm9, 0.0, %v7866_v28 }
 0x1d3   : > { %v1949_v43 = vsel %vm7712_vm10, 0.0, %v7866_v28  ;;  %v1995_v5 = vadd.f32 %v1994_v4, %v1993_v12  ;;  %v2002_v9 = vadd.f32 %v2001_v32, %v2000_v8  ;;  %v2050_v34 = vcombine.high %v6064_v55, %v6064_v55 }
 0x1d4   : > { %v2054_v41 = vsel %vm7864_vm2, %v6064_v55, 0.0  ;;  %v6070_v38 = vpop.eup %3803  ;;  %v1952_v40 = vsel %vm7716_vm7, 1.0, %v7871_v63  ;;  %v1953_v58 = vsel %vm7714_vm4, 1.0, %v7871_v63  ;;  %v1968_v23 = vsub.f32 %v5950_v6, %v1964_v48 }
 0x1d5   : > { %v2055_v13 = vrot.slane %v2054_v41, 4  ;;  %v1954_v62 = vsel %vm7715_vm9, 1.0, %v7871_v63  ;;  %v1955_v29 = vsel %vm7712_vm10, 1.0, %v7871_v63  ;;  %v1989_v46 = vrot.slane %v1988_v19, 1 }
 0x1d6   : > { %v2009_v20 = vadd.f32 %v2008_v33, %v2007_v36  ;;  %v1965_v56 = vcombine.low %v1948_v61, %v1949_v43  ;;  %v1972_v37 = vadd.f32 %v5950_v6, %v1964_v48  ;;  %v2051_v21 = vcombine.high %v6086_v53, %v6086_v53 }
 0x1d7   : > { %v2056_v0 = vadd.f32 %v2055_v13, %v2054_v41  ;;  %v1996_v45 = vrot.slane %v1995_v5, 1  ;;  %v2003_v18 = vrot.slane %v2002_v9, 1  ;;  %v2061_v12 = vsel %vm7872_vm11, %v2050_v34, 0.0 }
 0x1d8   : > { %v2068_v8 = vsel %vm7873_vm14, %v6086_v53, 0.0  ;;  %v6094_v17 = vadd.f32 %v1952_v40, %v1882_v52  ;;  %v6096_v31 = vadd.f32 %v1953_v58, %v1883_v30  ;;  %v6098_v49 = vadd.f32 %v1954_v62, %v1884_v1  ;;  %vm7876_vm14 = vmmov %vm7872_vm11 }
 0x1d9   : > { %v6100_v57 = vadd.f32 %v1955_v29, %v1885_v14  ;;  %v6102_v6 = vmax.f32 %v1900_v10, %v1968_v23  ;;  %v6104_v36 = vadd.f32 %v1989_v46, %v1988_v19  ;;  %v2010_v15 = vrot.slane %v2009_v20, 1 }
 0x1da   : > { %v2062_v4 = vrot.slane %v2061_v12, 4  ;;  %v6106_v32 = vmin.f32 %v1904_v60, %v1972_v37  ;;  %v2057_v48 = vrot.slane %v2056_v0, 2  ;;  %v2069_v33 = vrot.slane %v2068_v8, 4  ;;  %v6145_v37 = vld [vmem:[%s4222_s30 + $0x98] sm:$0xff] }
 0x1db   : > { %v2075_v52 = vsel %vm7874_vm15, %v2051_v21, 0.0  ;;  %v1969_v30 = vsub.f32 %v5960_v44, %v1965_v56  ;;  %v6110_v61 = vadd.f32 %v1996_v45, %v1995_v5  ;;  %v6112_v1 = vadd.f32 %v2003_v18, %v2002_v9  ;;  %v6125_v5 = vld [vmem:[%s4222_s30 + $0x90] sm:$0xff] }
 0x1dc   : > { %v2063_v14 = vadd.f32 %v2062_v4, %v2061_v12  ;;  %v1973_v10 = vadd.f32 %v5960_v44, %v1965_v56  ;;  %v6116_v19 = vadd.f32 %v5984_v50, %v1950_v27  ;;  %v2070_v43 = vadd.f32 %v2069_v33, %v2068_v8 }
 0x1dd   : > { %v2076_v60 = vrot.slane %v2075_v52, 4  ;;  %v6118_v34 = vadd.f32 %v2010_v15, %v2009_v20  ;;  %vm7675_vm6 = vcmp.ne.f32.partialorder %v6104_v36, 0.0  ;;  %v6122_v41 = vadd.f32 %v5994_v35, %v1951_v2 }
 0x1de   : > { %v2064_v40 = vrot.slane %v2063_v14, 2  ;;  %v2058_v9 = vadd.f32 %v2057_v48, %v2056_v0  ;;  %v2071_v58 = vrot.slane %v2070_v43, 2  ;;  %v2120_v44 = vcombine.high %v6125_v5, %v6125_v5 }
 0x1df   : > { %7875 = vst [vmem:[#allocation14_spill] sm:$0xff] %v6118_v34  ;;  %v2077_v23 = vadd.f32 %v2076_v60, %v2075_v52  ;;  %vm7660_vm8 = vcmp.ne.f32.partialorder %v6110_v61, 0.0  ;;  %vm7649_vm2 = vcmp.ne.f32.partialorder %v6112_v1, 0.0  ;;  %v2016_v27 = vsel %vm7675_vm6, 0.0, %v7866_v28 }
 0x1e0   : > { %v2124_v2 = vsel %vm7872_vm11, %v6125_v5, 0.0  ;;  %v2065_v13 = vadd.f32 %v2064_v40, %v2063_v14  ;;  %v2131_v46 = vsel %vm7876_vm14, %v2120_v44, 0.0  ;;  %vm7648_vm15 = vcmp.ne.f32.partialorder %v6118_v34, 0.0  ;;  %vm7878_vm14 = vmmov %vm7872_vm11 }
 0x1e1   : > { %v2078_v62 = vrot.slane %v2077_v23, 2  ;;  %v2125_v29 = vrot.slane %v2124_v2, 4  ;;  %v2017_v20 = vsel %vm7660_vm8, 0.0, %v7866_v28  ;;  %v2018_v56 = vsel %vm7649_vm2, 0.0, %v7866_v28 }
 0x1e2   : > { %v2132_v21 = vrot.slane %v2131_v46, 4  ;;  %v2019_v0 = vsel %vm7648_vm15, 0.0, %v7866_v28  ;;  %v2059_v45 = vrot.slane %v2058_v9, 1  ;;  %v2072_v18 = vadd.f32 %v2071_v58, %v2070_v43 }
 0x1e3   : > { %v2121_v12 = vcombine.high %v6145_v37, %v6145_v37  ;;  %v1971_v8 = vmax.f32 %v6054_v42, %v1969_v30  ;;  %v2079_v15 = vadd.f32 %v2078_v62, %v2077_v23  ;;  %v2126_v4 = vadd.f32 %v2125_v29, %v2124_v2 }
 0x1e4   : > { %v2133_v48 = vadd.f32 %v2132_v21, %v2131_v46  ;;  %v2022_v33 = vsel %vm7675_vm6, 1.0, %v7871_v63  ;;  %v2034_v52 = vcombine.low %v2016_v27, %v2017_v20  ;;  %v2066_v14 = vrot.slane %v2065_v13, 1 }
 0x1e5   : > { %v2138_v60 = vsel %vm7872_vm11, %v6145_v37, 0.0  ;;  %v2023_v43 = vsel %vm7660_vm8, 1.0, %v7871_v63  ;;  %v2024_v42 = vsel %vm7649_vm2, 1.0, %v7871_v63  ;;  %v2025_v30 = vsel %vm7648_vm15, 1.0, %v7871_v63 }
 0x1e6   : > { %v2035_v40 = vcombine.low %v2018_v56, %v2019_v0  ;;  %v6167_v58 = vadd.f32 %v2059_v45, %v2058_v9  ;;  %v2073_v23 = vrot.slane %v2072_v18, 1  ;;  %v2127_v44 = vrot.slane %v2126_v4, 2 }
 0x1e7   : > { %v2145_v27 = vsel %vm7878_vm14, %v2121_v12, 0.0  ;;  %v6172_v2 = vmin.f32 %v1905_v51, %v1973_v10  ;;  %v2080_v62 = vrot.slane %v2079_v15, 1  ;;  %v2134_v29 = vrot.slane %v2133_v48, 2 }
 0x1e8   : > { %7877 = vst [vmem:[#allocation15_spill] sm:$0xff] %v6167_v58  ;;  %v2139_v46 = vrot.slane %v2138_v60, 4  ;;  %v2026_v20 = vadd.f32 %v2022_v33, %v6094_v17  ;;  %v2038_v21 = vsub.f32 %v5984_v50, %v2034_v52  ;;  %v6177_v59 = vadd.f32 %v5984_v50, %v2034_v52 }
 0x1e9   : > { %v6179_v9 = vadd.f32 %v2066_v14, %v2065_v13  ;;  %v2027_v56 = vadd.f32 %v2023_v43, %v6096_v31  ;;  %v2028_v0 = vadd.f32 %v2024_v42, %v6098_v49  ;;  %v2029_v3 = vadd.f32 %v2025_v30, %v6100_v57  ;;  %v6221_v14 = vld [vmem:[%s4222_s30 + $0xb0] sm:$0xff] }
 0x1ea   : > { %v2146_v51 = vrot.slane %v2145_v27, 4  ;;  %v2039_v10 = vsub.f32 %v5994_v35, %v2035_v40  ;;  %v6185_v45 = vadd.f32 %v2073_v23, %v2072_v18  ;;  %vm7657_vm11 = vcmp.ne.f32.partialorder %v6167_v58, 0.0 }
 0x1eb   : > { %7879 = vst [vmem:[#allocation16_spill] sm:$0xff] %v6179_v9  ;;  %v2128_v17 = vadd.f32 %v2127_v44, %v2126_v4  ;;  %v6189_v12 = vadd.f32 %v5994_v35, %v2035_v40  ;;  %v6191_v50 = vadd.f32 %v2080_v62, %v2079_v15  ;;  %v2135_v13 = vadd.f32 %v2134_v29, %v2133_v48  ;;  %v6240_v44 = vld [vmem:[%s4222_s30 + $0xb8] sm:$0xff] }
 0x1ec   : > { %7880 = vst [vmem:[#allocation17_spill] sm:$0xff] %v6185_v45  ;;  %v2140_v33 = vadd.f32 %v2139_v46, %v2138_v60  ;;  %v2040_v31 = vmax.f32 %v6102_v6, %v2038_v21  ;;  %v2044_v49 = vmin.f32 %v6106_v32, %v6177_v59  ;;  %vm7650_vm14 = vcmp.ne.f32.partialorder %v6179_v9, 0.0 }
 0x1ed   : > { %7881 = vst [vmem:[#allocation18_spill] sm:$0xff] %v6191_v50  ;;  %v6199_v57 = vadd.f32 %v6064_v55, %v6116_v19  ;;  %v2086_v35 = vsel %vm7657_vm11, 0.0, %v7866_v28  ;;  %v2087_v18 = vsel %vm7650_vm14, 0.0, %v7866_v28  ;;  %v2092_v6 = vsel %vm7657_vm11, 1.0, %v7871_v63 }
 0x1ee   : > { %v2147_v15 = vadd.f32 %v2146_v51, %v2145_v27  ;;  %v6210_v59 = vmax.f32 %v1971_v8, %v2039_v10  ;;  %vm7651_vm15 = vcmp.ne.f32.partialorder %v6185_v45, 0.0  ;;  %v6215_v32 = vadd.f32 %v6086_v53, %v6122_v41 }
 0x1ef   : > { %v2129_v19 = vrot.slane %v2128_v17, 1  ;;  %vm7656_vm2 = vcmp.ne.f32.partialorder %v6191_v50, 0.0  ;;  %v2136_v48 = vrot.slane %v2135_v13, 1  ;;  %v2141_v52 = vrot.slane %v2140_v33, 2 }
 0x1f0   : > { %v2093_v8 = vsel %vm7650_vm14, 1.0, %v7871_v63  ;;  %v6226_v60 = vadd.f32 %v2092_v6, %v2026_v20  ;;  %v2104_v43 = vcombine.low %v2086_v35, %v2087_v18  ;;  %v2190_v41 = vcombine.high %v6221_v14, %v6221_v14 }
 0x1f1   : > { %v2088_v42 = vsel %vm7651_vm15, 0.0, %v7866_v28  ;;  %v2089_v30 = vsel %vm7656_vm2, 0.0, %v7866_v28  ;;  %v2094_v40 = vsel %vm7651_vm15, 1.0, %v7871_v63  ;;  %v2148_v23 = vrot.slane %v2147_v15, 2 }
 0x1f2   : > { %v2095_v27 = vsel %vm7656_vm2, 1.0, %v7871_v63  ;;  %v6245_v62 = vadd.f32 %v2129_v19, %v2128_v17  ;;  %v2191_v29 = vcombine.high %v6240_v44, %v6240_v44  ;;  %vm7883_vm14 = vcmask 1043456  }
 0x1f3   : > { %v2194_v46 = vsel %vm7883_vm14, %v6221_v14, 0.0  ;;  %v6251_v20 = vadd.f32 %v2136_v48, %v2135_v13  ;;  %v2142_v21 = vadd.f32 %v2141_v52, %v2140_v33  ;;  %vm7885_vm15 = vmmov %vm7883_vm14  ;;  %v6254_v35 = vadd.f32 %v2093_v8, %v2027_v56 }
 0x1f4   : > { %7882 = vst [vmem:[#allocation19_spill] sm:$0xff] %v6245_v62  ;;  %v2195_v51 = vrot.slane %v2194_v46, 4  ;;  %v2201_v10 = vsel %vm7885_vm15, %v2190_v41, 0.0  ;;  %v6256_v18 = vadd.f32 %v2094_v40, %v2028_v0  ;;  %v2108_v6 = vsub.f32 %v6064_v55, %v2104_v43  ;;  %vm7886_vm2 = vmmov %vm7885_vm15 }
 0x1f5   : > { %7884 = vst [vmem:[#allocation20_spill] sm:$0xff] %v6251_v20  ;;  %v2112_v17 = vadd.f32 %v6064_v55, %v2104_v43  ;;  %v2105_v19 = vcombine.low %v2088_v42, %v2089_v30  ;;  %v2149_v4 = vadd.f32 %v2148_v23, %v2147_v15  ;;  %v2202_v50 = vrot.slane %v2201_v10, 4  ;;  %vm7887_vm15 = vmmov %vm7886_vm2  ;;  %v6275_v30 = vld [vmem:[%s4222_s30 + $0xd0] sm:$0xff] }
 0x1f6   : > { %v2196_v24 = vadd.f32 %v2195_v51, %v2194_v46  ;;  %v6260_v45 = vadd.f32 %v2095_v27, %v2029_v3  ;;  %vm7674_vm14 = vcmp.ne.f32.partialorder %v6245_v62, 0.0  ;;  %v2208_v13 = vsel %vm7886_vm2, %v6240_v44, 0.0 }
 0x1f7   : > { %v2215_v56 = vsel %vm7887_vm15, %v2191_v29, 0.0  ;;  %v2143_v0 = vrot.slane %v2142_v21, 1  ;;  %vm7661_vm11 = vcmp.ne.f32.partialorder %v6251_v20, 0.0  ;;  %v2203_v48 = vadd.f32 %v2202_v50, %v2201_v10  ;;  %vm7889_vm15 = vmmov %vm7886_vm2 }
 0x1f8   : > { %v2197_v33 = vrot.slane %v2196_v24, 2  ;;  %v2156_v55 = vsel %vm7674_vm14, 0.0, %v7866_v28  ;;  %v2157_v3 = vsel %vm7661_vm11, 0.0, %v7866_v28  ;;  %v2209_v15 = vrot.slane %v2208_v13, 4 }
 0x1f9   : > { %v2216_v52 = vrot.slane %v2215_v56, 4  ;;  %v2109_v8 = vsub.f32 %v6086_v53, %v2105_v19  ;;  %v2110_v43 = vmax.f32 %v2040_v31, %v2108_v6  ;;  %v2150_v41 = vrot.slane %v2149_v4, 1 }
 0x1fa   : > { %v2204_v42 = vrot.slane %v2203_v48, 2  ;;  %v2198_v40 = vadd.f32 %v2197_v33, %v2196_v24  ;;  %v2210_v50 = vadd.f32 %v2209_v15, %v2208_v13  ;;  %v2260_v27 = vcombine.high %v6275_v30, %v6275_v30 }
 0x1fb   : > { %v2217_v23 = vadd.f32 %v2216_v52, %v2215_v56  ;;  %v6279_v29 = vmin.f32 %v2044_v49, %v2112_v17  ;;  %v6281_v46 = vadd.f32 %v2143_v0, %v2142_v21  ;;  %v2174_v51 = vcombine.low %v2156_v55, %v2157_v3  ;;  %v6294_v21 = vld [vmem:[%s4222_s30 + $0xd8] sm:$0xff] }
 0x1fc   : > { %v2205_v10 = vadd.f32 %v2204_v42, %v2203_v48  ;;  %v2211_v9 = vrot.slane %v2210_v50, 2  ;;  %v2264_v31 = vsel %vm7886_vm2, %v6275_v30, 0.0  ;;  %v2271_v6 = vsel %vm7889_vm15, %v2260_v27, 0.0 }
 0x1fd   : > { %7888 = vst [vmem:[#allocation21_spill] sm:$0xff] %v6281_v46  ;;  %v2218_v58 = vrot.slane %v2217_v23, 2  ;;  %v2113_v24 = vadd.f32 %v6086_v53, %v2105_v19  ;;  %v6287_v13 = vadd.f32 %v2150_v41, %v2149_v4  ;;  %v2160_v56 = vadd.f32 %v6125_v5, %v6199_v57 }
 0x1fe   : > { %v2161_v49 = vadd.f32 %v6145_v37, %v6215_v32  ;;  %v2111_v17 = vmax.f32 %v6210_v59, %v2109_v8  ;;  %v2199_v0 = vrot.slane %v2198_v40, 1  ;;  %v2261_v33 = vcombine.high %v6294_v21, %v6294_v21 }
 0x1ff   : > { %7890 = vst [vmem:[#allocation22_spill] sm:$0xff] %v6287_v13  ;;  %v2265_v48 = vrot.slane %v2264_v31, 4  ;;  %v2206_v55 = vrot.slane %v2205_v10, 1  ;;  %v2212_v3 = vadd.f32 %v2211_v9, %v2210_v50  ;;  %v2219_v53 = vadd.f32 %v2218_v58, %v2217_v23 }
 0x200   : > { %v2272_v4 = vrot.slane %v2271_v6, 4  ;;  %vm7666_vm2 = vcmp.ne.f32.partialorder %v6281_v46, 0.0  ;;  %v2162_v57 = vsel %vm7674_vm14, 1.0, %v7871_v63  ;;  %v2163_v32 = vsel %vm7661_vm11, 1.0, %v7871_v63 }
 0x201   : > { %v2178_v59 = vsub.f32 %v6125_v5, %v2174_v51  ;;  %vm7665_vm15 = vcmp.ne.f32.partialorder %v6287_v13, 0.0  ;;  %v2158_v9 = vsel %vm7666_vm2, 0.0, %v7866_v28  ;;  %v6312_v58 = vadd.f32 %v6125_v5, %v2174_v51 }
 0x202   : > { %vm7891_vm8 = vcmask 1043456   ;;  %v2159_v15 = vsel %vm7665_vm15, 0.0, %v7866_v28  ;;  %v6319_v52 = vadd.f32 %v2199_v0, %v2198_v40  ;;  %v2266_v8 = vadd.f32 %v2265_v48, %v2264_v31 }
 0x203   : > { %v2278_v19 = vsel %vm7891_vm8, %v6294_v21, 0.0  ;;  %vm7893_vm11 = vmmov %vm7891_vm8  ;;  %v6322_v42 = vadd.f32 %v2206_v55, %v2205_v10  ;;  %v2213_v50 = vrot.slane %v2212_v3, 1  ;;  %v2220_v23 = vrot.slane %v2219_v53, 1 }
 0x204   : > { %7892 = vst [vmem:[#allocation23_spill] sm:$0xff] %v6319_v52  ;;  %v2285_v41 = vsel %vm7893_vm11, %v2261_v33, 0.0  ;;  %v2273_v27 = vadd.f32 %v2272_v4, %v2271_v6  ;;  %v7895_v5 = vmin.f32 %v6172_v2, %v6189_v12  ;;  %v2166_v20 = vadd.f32 %v2162_v57, %v6226_v60 }
 0x205   : > { %7894 = vst [vmem:[#allocation25_spill] sm:$0xff] %v6322_v42  ;;  %v2167_v62 = vadd.f32 %v2163_v32, %v6254_v35  ;;  %v2279_v34 = vrot.slane %v2278_v19, 4  ;;  %v2164_v40 = vsel %vm7666_vm2, 1.0, %v7871_v63  ;;  %v2165_v10 = vsel %vm7665_vm15, 1.0, %v7871_v63 }
 0x206   : > { %v6327_v51 = vmin.f32 %v7895_v5, %v2113_v24  ;;  %v2175_v31 = vcombine.low %v2158_v9, %v2159_v15  ;;  %v2180_v6 = vmax.f32 %v2110_v43, %v2178_v59  ;;  %vm7673_vm8 = vcmp.ne.f32.partialorder %v6319_v52, 0.0 }
 0x207   : > { %v2267_v12 = vrot.slane %v2266_v8, 2  ;;  %v2286_v60 = vrot.slane %v2285_v41, 4  ;;  %v6340_v24 = vadd.f32 %v2213_v50, %v2212_v3  ;;  %v6342_v35 = vadd.f32 %v2220_v23, %v2219_v53  ;;  %v6384_v23 = vld [vmem:[%s4222_s30 + $0xf0] sm:$0xff] }
 0x208   : > { %vm7667_vm11 = vcmp.ne.f32.partialorder %v6322_v42, 0.0  ;;  %v2274_v0 = vrot.slane %v2273_v27, 2  ;;  %v2168_v33 = vadd.f32 %v2164_v40, %v6256_v18  ;;  %v2169_v48 = vadd.f32 %v2165_v10, %v6260_v45 }
 0x209   : > { %7896 = vst [vmem:[#allocation24_spill] sm:$0xff] %v6340_v24  ;;  %7897 = vst [vmem:[#allocation26_spill] sm:$0xff] %v6342_v35  ;;  %v6348_v43 = vadd.f32 %v6221_v14, %v2160_v56  ;;  %v2280_v55 = vadd.f32 %v2279_v34, %v2278_v19  ;;  %v2179_v4 = vsub.f32 %v6145_v37, %v2175_v31  ;;  %v2226_v3 = vsel %vm7673_vm8, 0.0, %v7866_v28 }
 0x20a   : > { %v6352_v57 = vadd.f32 %v6145_v37, %v2175_v31  ;;  %v2227_v53 = vsel %vm7667_vm11, 0.0, %v7866_v28  ;;  %v2232_v45 = vsel %vm7673_vm8, 1.0, %v7871_v63  ;;  %v2233_v34 = vsel %vm7667_vm11, 1.0, %v7871_v63 }
 0x20b   : > { %v2268_v18 = vadd.f32 %v2267_v12, %v2266_v8  ;;  %v2287_v37 = vadd.f32 %v2286_v60, %v2285_v41  ;;  %vm7668_vm15 = vcmp.ne.f32.partialorder %v6340_v24, 0.0  ;;  %vm7669_vm2 = vcmp.ne.f32.partialorder %v6342_v35, 0.0  ;;  %v6398_v60 = vld [vmem:[%s4222_s30 + $0xf8] sm:$0xff] }
 0x20c   : > { %v6369_v56 = vadd.f32 %v6240_v44, %v2161_v49  ;;  %v2275_v32 = vadd.f32 %v2274_v0, %v2273_v27  ;;  %v2228_v59 = vsel %vm7668_vm15, 0.0, %v7866_v28  ;;  %v2229_v9 = vsel %vm7669_vm2, 0.0, %v7866_v28 }
 0x20d   : > { %v2244_v19 = vcombine.low %v2226_v3, %v2227_v53  ;;  %v2281_v15 = vrot.slane %v2280_v55, 2  ;;  %v2181_v8 = vmax.f32 %v2111_v17, %v2179_v4  ;;  %v2185_v41 = vmin.f32 %v6327_v51, %v6352_v57 }
 0x20e   : > { %v6379_v50 = vadd.f32 %v2232_v45, %v2166_v20  ;;  %v6381_v49 = vadd.f32 %v2233_v34, %v2167_v62  ;;  %v2234_v27 = vsel %vm7668_vm15, 1.0, %v7871_v63  ;;  %v2269_v5 = vrot.slane %v2268_v18, 1 }
 0x20f   : > { %v2288_v40 = vrot.slane %v2287_v37, 2  ;;  %v2330_v10 = vcombine.high %v6384_v23, %v6384_v23  ;;  %v2235_v17 = vsel %vm7669_vm2, 1.0, %v7871_v63  ;;  %v2245_v51 = vcombine.low %v2228_v59, %v2229_v9 }
 0x210   : > { %v2276_v20 = vrot.slane %v2275_v32, 1  ;;  %vm7898_vm11 = vcmask 1043456   ;;  %v2248_v31 = vsub.f32 %v6221_v14, %v2244_v19  ;;  %v2282_v12 = vadd.f32 %v2281_v15, %v2280_v55 }
 0x211   : > { %v2334_v62 = vsel %vm7898_vm11, %v6384_v23, 0.0  ;;  %vm7899_vm15 = vmmov %vm7898_vm11  ;;  %v2252_v57 = vadd.f32 %v6221_v14, %v2244_v19  ;;  %v2331_v3 = vcombine.high %v6398_v60, %v6398_v60  ;;  %v6406_v34 = vadd.f32 %v2234_v27, %v2168_v33 }
 0x212   : > { %v2335_v0 = vrot.slane %v2334_v62, 4  ;;  %v2341_v4 = vsel %vm7899_vm15, %v2330_v10, 0.0  ;;  %vm7900_vm2 = vmmov %vm7898_vm11  ;;  %v6408_v59 = vadd.f32 %v2269_v5, %v2268_v18  ;;  %v2289_v9 = vadd.f32 %v2288_v40, %v2287_v37  ;;  %v6426_v40 = vld [vmem:[%s4222_s30 + $0x110] sm:$0xff] }
 0x213   : > { %v2342_v53 = vrot.slane %v2341_v4, 4  ;;  %v2348_v45 = vsel %vm7900_vm2, %v6398_v60, 0.0  ;;  %v6410_v15 = vadd.f32 %v2235_v17, %v2169_v48  ;;  %v2249_v10 = vsub.f32 %v6240_v44, %v2245_v51  ;;  %vm7905_vm8 = vmmov %vm7900_vm2 }
 0x214   : > { %7901 = vst [vmem:[#allocation27_spill] sm:$0xff] %v6408_v59  ;;  %v2336_v55 = vadd.f32 %v2335_v0, %v2334_v62  ;;  %v6413_v2 = vadd.f32 %v2276_v20, %v2275_v32  ;;  %v6415_v19 = vmax.f32 %v2180_v6, %v2248_v31  ;;  %v2283_v35 = vrot.slane %v2282_v12, 1  ;;  %v6440_v20 = vld [vmem:[%s4222_s30 + $0x118] sm:$0xff] }
 0x215   : > { %v2343_v14 = vadd.f32 %v2342_v53, %v2341_v4  ;;  %v2349_v42 = vrot.slane %v2348_v45, 4  ;;  %v2253_v33 = vadd.f32 %v6240_v44, %v2245_v51  ;;  %v7903_v18 = vmin.f32 %v6279_v29, %v6312_v58 }
 0x216   : > { %7902 = vst [vmem:[#allocation28_spill] sm:$0xff] %v6413_v2  ;;  %v2337_v24 = vrot.slane %v2336_v55, 2  ;;  %v2355_v27 = vsel %vm7900_vm2, %v2331_v3, 0.0  ;;  %v2290_v5 = vrot.slane %v2289_v9, 1  ;;  %vm7711_vm15 = vcmp.ne.f32.partialorder %v6408_v59, 0.0 }
 0x217   : > { %v6421_v37 = vmin.f32 %v7903_v18, %v2252_v57  ;;  %v2344_v48 = vrot.slane %v2343_v14, 2  ;;  %v2350_v6 = vadd.f32 %v2349_v42, %v2348_v45  ;;  %vm7683_vm11 = vcmp.ne.f32.partialorder %v6413_v2, 0.0 }
 0x218   : > { %v2338_v32 = vadd.f32 %v2337_v24, %v2336_v55  ;;  %v2356_v44 = vrot.slane %v2355_v27, 4  ;;  %v2400_v29 = vcombine.high %v6426_v40, %v6426_v40  ;;  %v6431_v58 = vadd.f32 %v2283_v35, %v2282_v12 }
 0x219   : > { %v2345_v17 = vadd.f32 %v2344_v48, %v2343_v14  ;;  %v2296_v51 = vsel %vm7711_vm15, 0.0, %v7866_v28  ;;  %v2297_v24 = vsel %vm7683_vm11, 0.0, %v7866_v28  ;;  %v2351_v42 = vrot.slane %v2350_v6, 2 }
 0x21a   : > { %7904 = vst [vmem:[#allocation29_spill] sm:$0xff] %v6431_v58  ;;  %v2357_v62 = vadd.f32 %v2356_v44, %v2355_v27  ;;  %v2401_v31 = vcombine.high %v6440_v20, %v6440_v20  ;;  %v2404_v0 = vsel %vm7900_vm2, %v6426_v40, 0.0  ;;  %v2411_v35 = vsel %vm7905_vm8, %v2400_v29, 0.0  ;;  %vm7907_vm8 = vmmov %vm7900_vm2 }
 0x21b   : > { %v6447_v12 = vadd.f32 %v2290_v5, %v2289_v9  ;;  %v2339_v4 = vrot.slane %v2338_v32, 1  ;;  %v2405_v57 = vrot.slane %v2404_v0, 4  ;;  %v2412_v3 = vrot.slane %v2411_v35, 4 }
 0x21c   : > { %v2251_v53 = vmax.f32 %v2181_v8, %v2249_v10  ;;  %v6449_v45 = vmin.f32 %v2185_v41, %v2253_v33  ;;  %v2346_v55 = vrot.slane %v2345_v17, 1  ;;  %v2358_v14 = vrot.slane %v2357_v62, 2 }
 0x21d   : > { %7906 = vst [vmem:[#allocation30_spill] sm:$0xff] %v6447_v12  ;;  %v2300_v18 = vadd.f32 %v6275_v30, %v6348_v43  ;;  %v2302_v48 = vsel %vm7711_vm15, 1.0, %v7871_v63  ;;  %v2303_v9 = vsel %vm7683_vm11, 1.0, %v7871_v63  ;;  %v2352_v27 = vadd.f32 %v2351_v42, %v2350_v6 }
 0x21e   : > { %v2314_v5 = vcombine.low %v2296_v51, %v2297_v24  ;;  %v2406_v44 = vadd.f32 %v2405_v57, %v2404_v0  ;;  %v2418_v8 = vsel %vm7907_vm8, %v6440_v20, 0.0  ;;  %v2425_v41 = vsel %vm7900_vm2, %v2401_v31, 0.0 }
 0x21f   : > { %vm7681_vm14 = vcmp.ne.f32.partialorder %v6431_v58, 0.0  ;;  %vm7678_vm6 = vcmp.ne.f32.partialorder %v6447_v12, 0.0  ;;  %v6464_v43 = vadd.f32 %v2339_v4, %v2338_v32  ;;  %v2413_v10 = vadd.f32 %v2412_v3, %v2411_v35 }
 0x220   : > { %v2298_v33 = vsel %vm7681_vm14, 0.0, %v7866_v28  ;;  %v2299_v6 = vsel %vm7678_vm6, 0.0, %v7866_v28  ;;  %v6472_v29 = vadd.f32 %v2346_v55, %v2345_v17  ;;  %v2359_v51 = vadd.f32 %v2358_v14, %v2357_v62 }
 0x221   : > { %7908 = vst [vmem:[#allocation31_spill] sm:$0xff] %v6464_v43  ;;  %v2301_v24 = vadd.f32 %v6294_v21, %v6369_v56  ;;  %v2353_v42 = vrot.slane %v2352_v27, 1  ;;  %v2419_v31 = vrot.slane %v2418_v8, 4  ;;  %v2426_v0 = vrot.slane %v2425_v41, 4 }
 0x222   : > { %7909 = vst [vmem:[#allocation32_spill] sm:$0xff] %v6472_v29  ;;  %v2306_v32 = vadd.f32 %v2302_v48, %v6379_v50  ;;  %v2318_v35 = vsub.f32 %v6275_v30, %v2314_v5  ;;  %v6479_v4 = vadd.f32 %v6275_v30, %v2314_v5  ;;  %v2407_v57 = vrot.slane %v2406_v44, 2 }
 0x223   : > { %v2307_v3 = vadd.f32 %v2303_v9, %v6381_v49  ;;  %v2315_v2 = vcombine.low %v2298_v33, %v2299_v6  ;;  %vm7680_vm8 = vcmp.ne.f32.partialorder %v6464_v43, 0.0  ;;  %v2414_v17 = vrot.slane %v2413_v10, 2 }
 0x224   : > { %v2304_v56 = vsel %vm7681_vm14, 1.0, %v7871_v63  ;;  %v2360_v62 = vrot.slane %v2359_v51, 1  ;;  %vm7679_vm2 = vcmp.ne.f32.partialorder %v6472_v29, 0.0  ;;  %v2366_v50 = vsel %vm7680_vm8, 0.0, %v7866_v28 }
 0x225   : > { %v6490_v30 = vadd.f32 %v2353_v42, %v2352_v27  ;;  %v2367_v49 = vsel %vm7679_vm2, 0.0, %v7866_v28  ;;  %v2420_v55 = vadd.f32 %v2419_v31, %v2418_v8  ;;  %v2427_v14 = vadd.f32 %v2426_v0, %v2425_v41 }
 0x226   : > { %v2305_v48 = vsel %vm7678_vm6, 1.0, %v7871_v63  ;;  %v2320_v9 = vmax.f32 %v6415_v19, %v2318_v35  ;;  %v2408_v33 = vadd.f32 %v2407_v57, %v2406_v44  ;;  %v2308_v27 = vadd.f32 %v2304_v56, %v6406_v34  ;;  %v6515_v44 = vld [vmem:[%s4222_s30 + $0x130] sm:$0xff] }
 0x227   : > { %7910 = vst [vmem:[#allocation33_spill] sm:$0xff] %v6490_v30  ;;  %v2319_v6 = vsub.f32 %v6294_v21, %v2315_v2  ;;  %v6504_v42 = vadd.f32 %v6294_v21, %v2315_v2  ;;  %v2415_v58 = vadd.f32 %v2414_v17, %v2413_v10  ;;  %v6506_v8 = vadd.f32 %v2360_v62, %v2359_v51 }
 0x228   : > { %v2372_v41 = vsel %vm7680_vm8, 1.0, %v7871_v63  ;;  %v2373_v19 = vsel %vm7679_vm2, 1.0, %v7871_v63  ;;  %v2384_v31 = vcombine.low %v2366_v50, %v2367_v49  ;;  %vm7682_vm6 = vcmp.ne.f32.partialorder %v6490_v30, 0.0 }
 0x229   : > { %7911 = vst [vmem:[#allocation34_spill] sm:$0xff] %v6506_v8  ;;  %v2421_v34 = vrot.slane %v2420_v55, 2  ;;  %v2428_v0 = vrot.slane %v2427_v14, 2  ;;  %v2470_v21 = vcombine.high %v6515_v44, %v6515_v44  ;;  %v2309_v2 = vadd.f32 %v2305_v48, %v6410_v15 }
 0x22a   : > { %v2370_v10 = vadd.f32 %v6384_v23, %v2300_v18  ;;  %v2371_v51 = vadd.f32 %v6398_v60, %v2301_v24  ;;  %v2409_v35 = vrot.slane %v2408_v33, 1  ;;  %v6523_v57 = vmax.f32 %v2251_v53, %v2319_v6  ;;  %v6537_v53 = vld [vmem:[%s4222_s30 + $0x138] sm:$0xff] }
 0x22b   : > { %v6527_v56 = vadd.f32 %v2372_v41, %v2306_v32  ;;  %v2416_v62 = vrot.slane %v2415_v58, 1  ;;  %vm7710_vm2 = vcmp.ne.f32.partialorder %v6506_v8, 0.0  ;;  %v2374_v50 = vsel %vm7682_vm6, 1.0, %v7871_v63 }
 0x22c   : > { %v6533_v15 = vadd.f32 %v2373_v19, %v2307_v3  ;;  %v2388_v18 = vsub.f32 %v6384_v23, %v2384_v31  ;;  %v2422_v24 = vadd.f32 %v2421_v34, %v2420_v55  ;;  %v2429_v49 = vadd.f32 %v2428_v0, %v2427_v14 }
 0x22d   : > { %vm7912_vm8 = vcmask 1043456   ;;  %v2368_v6 = vsel %vm7682_vm6, 0.0, %v7866_v28  ;;  %v6545_v41 = vadd.f32 %v2409_v35, %v2408_v33  ;;  %v2471_v3 = vcombine.high %v6537_v53, %v6537_v53 }
 0x22e   : > { %v2474_v48 = vsel %vm7912_vm8, %v6515_v44, 0.0  ;;  %vm7913_vm14 = vmmov %vm7912_vm8  ;;  %v6549_v17 = vadd.f32 %v2374_v50, %v2308_v27  ;;  %v2392_v55 = vadd.f32 %v6384_v23, %v2384_v31  ;;  %v6552_v14 = vadd.f32 %v2416_v62, %v2415_v58 }
 0x22f   : > { %v2481_v32 = vsel %vm7913_vm14, %v2470_v21, 0.0  ;;  %7914 = vst [vmem:[#allocation35_spill] sm:$0xff] %v6545_v41  ;;  %v2475_v19 = vrot.slane %v2474_v48, 4  ;;  %v2369_v0 = vsel %vm7710_vm2, 0.0, %v7866_v28  ;;  %v2375_v33 = vsel %vm7710_vm2, 1.0, %v7871_v63  ;;  %vm7916_vm6 = vmmov %vm7912_vm8 }
 0x230   : > { %7915 = vst [vmem:[#allocation36_spill] sm:$0xff] %v6552_v14  ;;  %v2482_v34 = vrot.slane %v2481_v32, 4  ;;  %v6560_v21 = vmax.f32 %v2320_v9, %v2388_v18  ;;  %v2440_v35 = vadd.f32 %v6426_v40, %v2370_v10  ;;  %v2423_v5 = vrot.slane %v2422_v24, 1 }
 0x231   : > { %v2430_v27 = vrot.slane %v2429_v49, 1  ;;  %v2441_v50 = vadd.f32 %v6440_v20, %v2371_v51  ;;  %v2476_v23 = vadd.f32 %v2475_v19, %v2474_v48  ;;  %vm7709_vm14 = vcmp.ne.f32.partialorder %v6545_v41, 0.0 }
 0x232   : > { %v2483_v58 = vadd.f32 %v2482_v34, %v2481_v32  ;;  %v2488_v31 = vsel %vm7912_vm8, %v6537_v53, 0.0  ;;  %v2495_v62 = vsel %vm7916_vm6, %v2471_v3, 0.0  ;;  %vm7695_vm11 = vcmp.ne.f32.partialorder %v6552_v14, 0.0 }
 0x233   : > { %v2436_v9 = vsel %vm7709_vm14, 0.0, %v7866_v28  ;;  %v2477_v10 = vrot.slane %v2476_v23, 2  ;;  %v2489_v18 = vrot.slane %v2488_v31, 4  ;;  %v2437_v51 = vsel %vm7695_vm11, 0.0, %v7866_v28 }
 0x234   : > { %v2484_v48 = vrot.slane %v2483_v58, 2  ;;  %v2496_v19 = vrot.slane %v2495_v62, 4  ;;  %v7917_v32 = vsub.s32 0, %v7843_v54  ;;  %v6580_v3 = vadd.f32 %v2423_v5, %v2422_v24 }
 0x235   : > { %v6582_v8 = vadd.f32 %v2430_v27, %v2429_v49  ;;  %v2478_v30 = vadd.f32 %v2477_v10, %v2476_v23  ;;  %v2490_v29 = vadd.f32 %v2489_v18, %v2488_v31  ;;  %v2510_v12 = vadd.f32 %v6515_v44, %v2440_v35 }
 0x236   : > { %v6578_v34 = vrot.slane %v6070_v38, %v7917_v32  ;;  %7919 = vst [vmem:[#allocation46_spill] sm:$0xff] %v6580_v3  ;;  %v2497_v43 = vadd.f32 %v2496_v19, %v2495_v62  ;;  %v7921_v59 = vsub.s32 1, %v7843_v54  ;;  %v7923_v13 = vsub.s32 2, %v7843_v54 }
 0x237   : > { %7920 = vst [vmem:[#allocation13_spill] sm:$0xff] %v6582_v8  ;;  %v2485_v32 = vadd.f32 %v2484_v48, %v2483_v58  ;;  %v2491_v5 = vrot.slane %v2490_v29, 2  ;;  %v2511_v24 = vadd.f32 %v6537_v53, %v2441_v50  ;;  %v7925_v49 = vsub.s32 3, %v7843_v54 }
 0x238   : > { %7918 = vst [vmem:[#allocation37_spill] sm:$0xff] %v6578_v34  ;;  %v6588_v52 = vrot.slane %v6070_v38, %v7921_v59  ;;  %v6593_v46 = vrot.slane %v6070_v38, %v7923_v13  ;;  %v2379_v35 = vadd.f32 %v2375_v33, %v2309_v2  ;;  %v2385_v23 = vcombine.low %v2368_v6, %v2369_v0 }
 0x239   : > { %v6599_v27 = vrot.slane %v6070_v38, %v7925_v49  ;;  %v7927_v59 = vmin.f32 %v6421_v37, %v6479_v4  ;;  %vm7694_vm6 = vcmp.ne.f32.partialorder %v6580_v3, 0.0  ;;  %v2454_v58 = vcombine.low %v2436_v9, %v2437_v51  ;;  %v3903_v49 = vld [vmem:[%s4222_s30 + $0x10] sm:$0xff] }
 0x23a   : > { %7922 = vst [vmem:[#allocation38_spill] sm:$0xff] %v6588_v52  ;;  %7924 = vst [vmem:[#allocation42_spill] sm:$0xff] %v6593_v46  ;;  %v2553_v13 = vcombine.low %v6578_v34, %v6588_v52  ;;  %v2479_v50 = vrot.slane %v2478_v30, 1  ;;  %vm7693_vm8 = vcmp.ne.f32.partialorder %v6582_v8, 0.0  ;;  %v2492_v38 = vadd.f32 %v2491_v5, %v2490_v29 }
 0x23b   : > { %7926 = vst [vmem:[#allocation39_spill] sm:$0xff] %v6599_v27  ;;  %v6604_v31 = vmin.f32 %v7927_v59, %v2392_v55  ;;  %v2554_v54 = vcombine.low %v6593_v46, %v6599_v27  ;;  %v2498_v2 = vrot.slane %v2497_v43, 2  ;;  %v2438_v37 = vsel %vm7694_vm6, 0.0, %v7866_v28  ;;  %v3904_v59 = vld [vmem:[%s4222_s30 + $0x18] sm:$0xff] }
 0x23c   : > { %v6612_v6 = vmul.f32 %v2553_v13, %v2510_v12  ;;  %v2439_v4 = vsel %vm7693_vm8, 0.0, %v7866_v28  ;;  %v2486_v55 = vrot.slane %v2485_v32, 1  ;;  %v2389_v33 = vsub.f32 %v6398_v60, %v2385_v23 }
 0x23d   : > { %v6620_v0 = vmul.f32 %v2554_v54, %v2511_v24  ;;  %v2393_v29 = vadd.f32 %v6398_v60, %v2385_v23  ;;  %v2442_v12 = vsel %vm7709_vm14, 1.0, %v7871_v63  ;;  %v2443_v62 = vsel %vm7695_vm11, 1.0, %v7871_v63 }
 0x23e   : > { %3317 = vst [vmem:[%s5061_s17 + $0x20] sm:$0x7] %v6612_v6  ;;  %v2444_v9 = vsel %vm7694_vm6, 1.0, %v7871_v63  ;;  %v2458_v10 = vsub.f32 %v6426_v40, %v2454_v58  ;;  %v6637_v18 = vadd.f32 %v6426_v40, %v2454_v58  ;;  %v6639_v60 = vadd.f32 %v2479_v50, %v2478_v30 }
 0x23f   : > { %3319 = vst [vmem:[%s5061_s17 + $0x30] sm:$0x7] %v6620_v0  ;;  %v2445_v51 = vsel %vm7693_vm8, 1.0, %v7871_v63  ;;  %v6646_v48 = vcombine.low %v2438_v37, %v2439_v4  ;;  %v2493_v19 = vrot.slane %v2492_v38, 1  ;;  %v2499_v5 = vadd.f32 %v2498_v2, %v2497_v43 }
 0x240   : > { %7928 = vst [vmem:[#allocation40_spill] sm:$0xff] %v6639_v60  ;;  %v6648_v24 = vadd.f32 %v2486_v55, %v2485_v32  ;;  %v2563_v23 = vsub.f32 %v3903_v49, %v6612_v6  ;;  %v2564_v40 = vsub.f32 %v3904_v59, %v6620_v0  ;;  %v6655_v30 = vmax.f32 %v6523_v57, %v2389_v33  ;;  %v3906_v55 = vld [vmem:[%s4222_s30 + $0x38] sm:$0xff] }
 0x241   : > { %v7929_v13 = vmin.f32 %v6449_v45, %v6504_v42  ;;  %v6663_v50 = vadd.f32 %v2442_v12, %v6527_v56  ;;  %v6666_v43 = vadd.f32 %v2443_v62, %v6533_v15  ;;  %v6669_v32 = vadd.f32 %v2444_v9, %v6549_v17 }
 0x242   : > { %v6671_v54 = vadd.f32 %v2445_v51, %v2379_v35  ;;  %v6674_v57 = vmax.f32 %v6560_v21, %v2458_v10  ;;  %vm7705_vm8 = vcmp.ne.f32.partialorder %v6639_v60, 0.0  ;;  %v6681_v56 = vadd.f32 %v2493_v19, %v2492_v38  ;;  %v3905_v35 = vld [vmem:[%s4222_s30 + $0x30] sm:$0xff] }
 0x243   : > { %v6660_v58 = vmin.f32 %v7929_v13, %v2393_v29  ;;  %v2500_v15 = vrot.slane %v2499_v5, 1  ;;  %vm7708_vm6 = vcmp.ne.f32.partialorder %v6648_v24, 0.0  ;;  %v2565_v17 = vmul.f32 %v2563_v23, %v2563_v23 }
 0x244   : > { %v2566_v2 = vmul.f32 %v2564_v40, %v2564_v40  ;;  %v2637_v37 = vsub.f32 %v3905_v35, %v6612_v6  ;;  %v2506_v21 = vsel %vm7705_vm8, 0.0, %v7866_v28  ;;  %v2507_v4 = vsel %vm7708_vm6, 0.0, %v7866_v28 }
 0x245   : > { %v6695_v38 = vsel %vm7705_vm8, 1.0, %v7871_v63  ;;  %v2638_v33 = vsub.f32 %v3906_v55, %v6620_v0  ;;  %v2569_v29 = vcombine.high %v2565_v17, %v2565_v17  ;;  %v2573_v62 = vsel %vm953_vm0, %v2565_v17, 0.0 }
 0x246   : > { %v2570_v12 = vcombine.high %v2566_v2, %v2566_v2  ;;  %v2587_v9 = vsel %vm953_vm0, %v2566_v2, 0.0  ;;  %v6701_v10 = vadd.f32 %v2500_v15, %v2499_v5  ;;  %vm7707_vm11 = vcmp.ne.f32.partialorder %v6681_v56, 0.0 }
 0x247   : > { %v2574_v51 = vrot.slane %v2573_v62, 4  ;;  %v2588_v19 = vrot.slane %v2587_v9, 4  ;;  %v2580_v49 = vsel %vm953_vm0, %v2569_v29, 0.0  ;;  %v2639_v59 = vmul.f32 %v2637_v37, %v2637_v37 }
 0x248   : > { %v2594_v23 = vsel %vm953_vm0, %v2570_v12, 0.0  ;;  %v2640_v40 = vmul.f32 %v2638_v33, %v2638_v33  ;;  %v2581_v35 = vrot.slane %v2580_v49, 4  ;;  %vm7706_vm8 = vcmp.ne.f32.partialorder %v6701_v10, 0.0 }
 0x249   : > { %v2575_v13 = vadd.f32 %v2574_v51, %v2573_v62  ;;  %v2589_v55 = vadd.f32 %v2588_v19, %v2587_v9  ;;  %v2595_v42 = vrot.slane %v2594_v23, 4  ;;  %v2643_v45 = vcombine.high %v2639_v59, %v2639_v59 }
 0x24a   : > { %v2644_v17 = vcombine.high %v2640_v40, %v2640_v40  ;;  %v2647_v2 = vsel %vm953_vm0, %v2639_v59, 0.0  ;;  %v2661_v5 = vsel %vm953_vm0, %v2640_v40, 0.0  ;;  %v2582_v27 = vadd.f32 %v2581_v35, %v2580_v49 }
 0x24b   : > { %v2576_v15 = vrot.slane %v2575_v13, 2  ;;  %v2590_v46 = vrot.slane %v2589_v55, 2  ;;  %v2596_v52 = vadd.f32 %v2595_v42, %v2594_v23  ;;  %v2648_v34 = vrot.slane %v2647_v2, 4 }
 0x24c   : > { %v2654_v29 = vsel %vm953_vm0, %v2643_v45, 0.0  ;;  %v2662_v12 = vrot.slane %v2661_v5, 4  ;;  %v2668_v37 = vsel %vm953_vm0, %v2644_v17, 0.0  ;;  %v2583_v62 = vrot.slane %v2582_v27, 2 }
 0x24d   : > { %v2577_v33 = vadd.f32 %v2576_v15, %v2575_v13  ;;  %v2591_v9 = vadd.f32 %v2590_v46, %v2589_v55  ;;  %v2597_v51 = vrot.slane %v2596_v52, 2  ;;  %v2649_v19 = vadd.f32 %v2648_v34, %v2647_v2 }
 0x24e   : > { %v2655_v60 = vrot.slane %v2654_v29, 4  ;;  %v2663_v8 = vadd.f32 %v2662_v12, %v2661_v5  ;;  %v2669_v59 = vrot.slane %v2668_v37, 4  ;;  %v2584_v40 = vadd.f32 %v2583_v62, %v2582_v27 }
 0x24f   : > { %v2578_v3 = vrot.slane %v2577_v33, 1  ;;  %v2592_v14 = vrot.slane %v2591_v9, 1  ;;  %v2598_v49 = vadd.f32 %v2597_v51, %v2596_v52  ;;  %v2650_v35 = vrot.slane %v2649_v19, 2 }
 0x250   : > { %v2656_v42 = vadd.f32 %v2655_v60, %v2654_v29  ;;  %v2664_v23 = vrot.slane %v2663_v8, 2  ;;  %v2670_v41 = vadd.f32 %v2669_v59, %v2668_v37  ;;  %v2513_v45 = vsel %vm7708_vm6, 1.0, %v7871_v63 }
 0x251   : > { %v2524_v13 = vcombine.low %v2506_v21, %v2507_v4  ;;  %v6713_v17 = vadd.f32 %v2578_v3, %v2577_v33  ;;  %v2585_v46 = vrot.slane %v2584_v40, 1  ;;  %v2508_v34 = vsel %vm7707_vm11, 0.0, %v7866_v28 }
 0x252   : > { %v2514_v52 = vsel %vm7707_vm11, 1.0, %v7871_v63  ;;  %v6722_v27 = vadd.f32 %v2592_v14, %v2591_v9  ;;  %v2509_v60 = vsel %vm7706_vm8, 0.0, %v7866_v28  ;;  %v2599_v21 = vrot.slane %v2598_v49, 1 }
 0x253   : > { %v2651_v3 = vadd.f32 %v2650_v35, %v2649_v19  ;;  %v2657_v4 = vrot.slane %v2656_v42, 2  ;;  %v6727_v55 = vadd.f32 %v2585_v46, %v2584_v40  ;;  %3805 = vrsqrt.f32 %v6713_v17 }
 0x254   : > { %v2665_v2 = vadd.f32 %v2664_v23, %v2663_v8  ;;  %v2671_v5 = vrot.slane %v2670_v41, 2  ;;  %v6732_v15 = vadd.f32 %v6440_v20, %v6646_v48  ;;  %v2516_v14 = vadd.f32 %v6695_v38, %v6663_v50  ;;  %v3907_v38 = vld [vmem:[%s4222_s30 + $0x50] sm:$0xff] }
 0x255   : > { %v2517_v29 = vadd.f32 %v2513_v45, %v6666_v43  ;;  %v2528_v28 = vsub.f32 %v6515_v44, %v2524_v13  ;;  %v2515_v12 = vsel %vm7706_vm8, 1.0, %v7871_v63  ;;  %v2518_v37 = vadd.f32 %v2514_v52, %v6669_v32 }
 0x256   : > { %v2525_v8 = vcombine.low %v2508_v34, %v2509_v60  ;;  %3807 = vrsqrt.f32 %v6722_v27  ;;  %v2532_v33 = vadd.f32 %v6515_v44, %v2524_v13  ;;  %v6744_v62 = vadd.f32 %v2599_v21, %v2598_v49 }
 0x257   : > { %v2652_v9 = vrot.slane %v2651_v3, 1  ;;  %v2658_v51 = vadd.f32 %v2657_v4, %v2656_v42  ;;  %3809 = vrsqrt.f32 %v6727_v55  ;;  %v2666_v50 = vrot.slane %v2665_v2, 1 }
 0x258   : > { %v2672_v43 = vadd.f32 %v2671_v5, %v2670_v41  ;;  %v2711_v19 = vsub.f32 %v3907_v38, %v6612_v6  ;;  %v7930_v63 = vsub.f32 %v6440_v20, %v6646_v48  ;;  %v2519_v59 = vadd.f32 %v2515_v12, %v6671_v54  ;;  %v3908_v48 = vld [vmem:[%s4222_s30 + $0x58] sm:$0xff] }
 0x259   : > { %v6754_v44 = vadd.f32 %v2652_v9, %v2651_v3  ;;  %v2659_v40 = vrot.slane %v2658_v51, 1  ;;  %v2529_v35 = vsub.f32 %v6537_v53, %v2525_v8  ;;  %v6759_v42 = vadd.f32 %v2666_v50, %v2665_v2  ;;  %v3909_v50 = vld [vmem:[%s4222_s30 + $0x70] sm:$0xff] }
 0x25a   : > { %v2461_v32 = vmax.f32 %v6655_v30, %v7930_v63  ;;  %v2673_v41 = vrot.slane %v2672_v43, 1  ;;  %v6762_v23 = vmax.f32 %v6674_v57, %v2528_v28  ;;  %v6764_v45 = vmul.f32 0.1, %v2516_v14  ;;  %v3910_v63 = vld [vmem:[%s4222_s30 + $0x78] sm:$0xff] }
 0x25b   : > { %v6766_v20 = vmul.f32 0.1, %v2517_v29  ;;  %v2712_v30 = vsub.f32 %v3908_v48, %v6620_v0  ;;  %v7931_v54 = vmin.f32 %v6604_v31, %v6637_v18  ;;  %v6775_v46 = vmul.f32 0.1, %v2518_v37 }
 0x25c   : > { %3811 = vrsqrt.f32 %v6744_v62  ;;  %v2713_v34 = vmul.f32 %v2711_v19, %v2711_v19  ;;  %v6779_v57 = vadd.f32 %v6537_v53, %v2525_v8  ;;  %v6781_v52 = vmul.f32 0.1, %v2519_v59 }
 0x25d   : > { %v6773_v13 = vmin.f32 %v7931_v54, %v2532_v33  ;;  %v6783_v60 = vadd.f32 %v2659_v40, %v2658_v51  ;;  %3813 = vrsqrt.f32 %v6754_v44  ;;  %v3806_v21 = vpop.eup %3805  ;;  %v6786_v3 = vmax.f32 %v2461_v32, %v2529_v35 }
 0x25e   : > { %vm2603_vm8 = vcmp.eq.f32.partialorder %v6713_v17, inf  ;;  %v6789_v31 = vadd.f32 %v2673_v41, %v2672_v43  ;;  %3815 = vrsqrt.f32 %v6759_v42  ;;  %vm2605_vm11 = vcmp.eq.f32.partialorder %v6713_v17, 0.0 }
 0x25f   : > { %v2606_v53 = vand.u32 2147483648, %v6713_v17  ;;  %vm2617_vm6 = vcmp.eq.f32.partialorder %v6722_v27, inf  ;;  %v2714_v18 = vmul.f32 %v2712_v30, %v2712_v30  ;;  %vm2610_vm14 = vcmp.eq.f32.partialorder %v6727_v55, inf }
 0x260   : > { %v3808_v4 = vpop.eup %3807  ;;  %v2613_v2 = vand.u32 2147483648, %v6727_v55  ;;  %vm2619_vm2 = vcmp.eq.f32.partialorder %v6722_v27, 0.0  ;;  %v2717_v5 = vcombine.high %v2713_v34, %v2713_v34  ;;  %v2602_v14 = vmul.f32 %v3806_v21, %v6713_v17 }
 0x261   : > { %vm2612_vm15 = vcmp.eq.f32.partialorder %v6727_v55, 0.0  ;;  %v2620_v29 = vand.u32 2147483648, %v6722_v27  ;;  %3817 = vrsqrt.f32 %v6783_v60  ;;  %v2721_v28 = vsel %vm953_vm0, %v2713_v34, 0.0  ;;  %v3810_v12 = vpop.eup %3809 }
 0x262   : > { %vm2624_vm10 = vcmp.eq.f32.partialorder %v6744_v62, inf  ;;  %v2627_v37 = vand.u32 2147483648, %v6744_v62  ;;  %3819 = vrsqrt.f32 %v6789_v31  ;;  %v2722_v8 = vrot.slane %v2721_v28, 4 }
 0x263   : > { %v2616_v33 = vmul.f32 %v3808_v4, %v6722_v27  ;;  %v2718_v9 = vcombine.high %v2714_v18, %v2714_v18  ;;  %v2728_v51 = vsel %vm953_vm0, %v2717_v5, 0.0  ;;  %v2785_v43 = vsub.f32 %v3909_v50, %v6612_v6 }
 0x264   : > { %vm2677_vm13 = vcmp.eq.f32.partialorder %v6754_v44, inf  ;;  %v2723_v38 = vadd.f32 %v2722_v8, %v2721_v28  ;;  %v2729_v19 = vrot.slane %v2728_v51, 4  ;;  %v2786_v32 = vsub.f32 %v3910_v63, %v6620_v0 }
 0x265   : > { %v2604_v59 = vsel %vm2603_vm8, %v6713_v17, %v2602_v14  ;;  %v2609_v40 = vmul.f32 %v3810_v12, %v6727_v55  ;;  %v2680_v35 = vand.u32 2147483648, %v6754_v44  ;;  %v2735_v41 = vsel %vm953_vm0, %v2714_v18, 0.0 }
 0x266   : > { %v3812_v48 = vpop.eup %3811  ;;  %vm2691_vm4 = vcmp.eq.f32.partialorder %v6759_v42, inf  ;;  %v2724_v30 = vrot.slane %v2723_v38, 2  ;;  %v2730_v54 = vadd.f32 %v2729_v19, %v2728_v51  ;;  %v2736_v34 = vrot.slane %v2735_v41, 4 }
 0x267   : > { %v3814_v21 = vpop.eup %3813  ;;  %v2618_v4 = vsel %vm2617_vm6, %v6722_v27, %v2616_v33  ;;  %vm2626_vm9 = vcmp.eq.f32.partialorder %v6744_v62, 0.0  ;;  %vm2679_vm8 = vcmp.eq.f32.partialorder %v6754_v44, 0.0  ;;  %vm2684_vm7 = vcmp.eq.f32.partialorder %v6783_v60, inf }
 0x268   : > { %v2687_v5 = vand.u32 2147483648, %v6783_v60  ;;  %v2742_v18 = vsel %vm953_vm0, %v2718_v9, 0.0  ;;  %v3816_v14 = vpop.eup %3815  ;;  %v2607_v28 = vsel %vm2605_vm11, %v2606_v53, %v2604_v59  ;;  %vm2693_vm5 = vcmp.eq.f32.partialorder %v6759_v42, 0.0 }
 0x269   : > { %v2694_v12 = vand.u32 2147483648, %v6759_v42  ;;  %v2725_v8 = vadd.f32 %v2724_v30, %v2723_v38  ;;  %v2787_v33 = vmul.f32 %v2785_v43, %v2785_v43  ;;  %v2611_v51 = vsel %vm2610_vm14, %v6727_v55, %v2609_v40 }
 0x26a   : > { %v2623_v50 = vmul.f32 %v3812_v48, %v6744_v62  ;;  %v2731_v19 = vrot.slane %v2730_v54, 2  ;;  %v2737_v63 = vadd.f32 %v2736_v34, %v2735_v41  ;;  %v2621_v9 = vsel %vm2619_vm2, %v2620_v29, %v2618_v4 }
 0x26b   : > { %v2676_v17 = vmul.f32 %v3814_v21, %v6754_v44  ;;  %vm2686_vm11 = vcmp.eq.f32.partialorder %v6783_v60, 0.0  ;;  %v2726_v53 = vrot.slane %v2725_v8, 1  ;;  %v2743_v59 = vrot.slane %v2742_v18, 4  ;;  %v3818_v49 = vpop.eup %3817 }
 0x26c   : > { %v6842_v43 = vsel %vm1872_vm3, %v2607_v28, 0.0  ;;  %v2690_v38 = vmul.f32 %v3816_v14, %v6759_v42  ;;  %vm2698_vm14 = vcmp.eq.f32.partialorder %v6789_v31, inf  ;;  %v2701_v40 = vand.u32 2147483648, %v6789_v31  ;;  %v3820_v41 = vpop.eup %3819 }
 0x26d   : > { %v2614_v27 = vsel %vm2612_vm15, %v2613_v2, %v2611_v51  ;;  %v6849_v29 = vadd.f32 %v2726_v53, %v2725_v8  ;;  %v2788_v48 = vmul.f32 %v2786_v32, %v2786_v32  ;;  %v2791_v30 = vcombine.high %v2787_v33, %v2787_v33 }
 0x26e   : > { %v2625_v22 = vsel %vm2624_vm10, %v6744_v62, %v2623_v50  ;;  %v6856_v34 = vsel %vm1874_vm12, %v2621_v9, 0.0  ;;  %vm2700_vm3 = vcmp.eq.f32.partialorder %v6789_v31, 0.0  ;;  %v2732_v21 = vadd.f32 %v2731_v19, %v2730_v54 }
 0x26f   : > { %v2738_v4 = vrot.slane %v2737_v63, 2  ;;  %v2678_v55 = vsel %vm2677_vm13, %v6754_v44, %v2676_v17  ;;  %v2683_v2 = vmul.f32 %v3818_v49, %v6783_v60  ;;  %v2744_v32 = vadd.f32 %v2743_v59, %v2742_v18 }
 0x270   : > { %3821 = vrsqrt.f32 %v6849_v29  ;;  %v2692_v14 = vsel %vm2691_vm4, %v6759_v42, %v2690_v38  ;;  %v2697_v39 = vmul.f32 %v3820_v41, %v6789_v31  ;;  %v2733_v28 = vrot.slane %v2732_v21, 1  ;;  %v3911_v42 = vld [vmem:[%s4222_s30 + $0x90] sm:$0xff] }
 0x271   : > { %v2739_v8 = vadd.f32 %v2738_v4, %v2737_v63  ;;  %v2745_v51 = vrot.slane %v2744_v32, 2  ;;  %v2792_v54 = vcombine.high %v2788_v48, %v2788_v48  ;;  %v2795_v50 = vsel %vm953_vm0, %v2787_v33, 0.0 }
 0x272   : > { %v2802_v19 = vsel %vm953_vm0, %v2791_v30, 0.0  ;;  %v6870_v9 = vadd.f32 %v2733_v28, %v2732_v21  ;;  %v2796_v18 = vrot.slane %v2795_v50, 4  ;;  %v2628_v53 = vsel %vm2626_vm9, %v2627_v37, %v2625_v22 }
 0x273   : > { %v2740_v49 = vrot.slane %v2739_v8, 1  ;;  %v2803_v17 = vrot.slane %v2802_v19, 4  ;;  %v2681_v63 = vsel %vm2679_vm8, %v2680_v35, %v2678_v55  ;;  %v2685_v33 = vsel %vm2684_vm7, %v6783_v60, %v2683_v2 }
 0x274   : > { %v2746_v59 = vadd.f32 %v2745_v51, %v2744_v32  ;;  %v2695_v38 = vsel %vm2693_vm5, %v2694_v12, %v2692_v14  ;;  %3823 = vrsqrt.f32 %v6870_v9  ;;  %v2809_v30 = vsel %vm953_vm0, %v2788_v48, 0.0 }
 0x275   : > { %v6883_v41 = vadd.f32 %v2740_v49, %v2739_v8  ;;  %v2797_v21 = vadd.f32 %v2796_v18, %v2795_v50  ;;  %v2804_v37 = vadd.f32 %v2803_v17, %v2802_v19  ;;  %v2816_v44 = vsel %vm953_vm0, %v2792_v54, 0.0  ;;  %v3912_v17 = vld [vmem:[%s4222_s30 + $0x98] sm:$0xff] }
 0x276   : > { %v2747_v62 = vrot.slane %v2746_v59, 1  ;;  %v2688_v35 = vsel %vm2686_vm11, %v2687_v5, %v2685_v33  ;;  %v2699_v22 = vsel %vm2698_vm14, %v6789_v31, %v2697_v39  ;;  %v2859_v12 = vsub.f32 %v3911_v42, %v6612_v6 }
 0x277   : > { %3825 = vrsqrt.f32 %v6883_v41  ;;  %v2798_v48 = vrot.slane %v2797_v21, 2  ;;  %v2805_v55 = vrot.slane %v2804_v37, 2  ;;  %v2810_v2 = vrot.slane %v2809_v30, 4 }
 0x278   : > { %v6896_v4 = vadd.f32 %v2747_v62, %v2746_v59  ;;  %vm7932_vm5 = vcmp.ne.f32.partialorder %v5968_v47, 0.0  ;;  %vm7933_vm12 = vcmp.ne.f32.partialorder %v6014_v26, 0.0  ;;  %vm7934_vm13 = vcmp.ne.f32.partialorder %v6031_v16, 0.0 }
 0x279   : > { %v2630_v32 = vsel %vm7932_vm5, %v2614_v27, 0.0  ;;  %v2703_v60 = vsel %vm7933_vm12, %v2681_v63, 0.0  ;;  %v2705_v5 = vsel %vm7934_vm13, %v2695_v38, 0.0  ;;  %v2817_v14 = vrot.slane %v2816_v44, 4 }
 0x27a   : > { %v3822_v39 = vpop.eup %3821  ;;  %v2702_v28 = vsel %vm2700_vm3, %v2701_v40, %v2699_v22  ;;  %vm7935_vm7 = vcmp.ne.f32.partialorder %v6016_v7, 0.0  ;;  %vm2751_vm4 = vcmp.eq.f32.partialorder %v6849_v29, inf  ;;  %vm2753_vm9 = vcmp.eq.f32.partialorder %v6849_v29, 0.0 }
 0x27b   : > { %v2704_v8 = vsel %vm7935_vm7, %v2688_v35, 0.0  ;;  %v2750_v47 = vmul.f32 %v3822_v39, %v6849_v29  ;;  %v2799_v26 = vadd.f32 %v2798_v48, %v2797_v21  ;;  %v2806_v27 = vadd.f32 %v2805_v55, %v2804_v37 }
 0x27c   : > { %v2811_v51 = vadd.f32 %v2810_v2, %v2809_v30  ;;  %v2754_v16 = vand.u32 2147483648, %v6849_v29  ;;  %3827 = vrsqrt.f32 %v6896_v4  ;;  %v2818_v54 = vadd.f32 %v2817_v14, %v2816_v44 }
 0x27d   : > { %v2861_v31 = vmul.f32 %v2859_v12, %v2859_v12  ;;  %v2752_v40 = vsel %vm2751_vm4, %v6849_v29, %v2750_v47  ;;  %v2800_v7 = vrot.slane %v2799_v26, 1  ;;  %v2807_v50 = vrot.slane %v2806_v27, 1  ;;  %v3913_v47 = vld [vmem:[%s4222_s30 + $0xb0] sm:$0xff] }
 0x27e   : > { %v2812_v19 = vrot.slane %v2811_v51, 2  ;;  %vm7936_vm10 = vcmp.ne.f32.partialorder %v5979_v25, 0.0  ;;  %v2819_v18 = vrot.slane %v2818_v54, 2  ;;  %v2860_v63 = vsub.f32 %v3912_v17, %v6620_v0  ;;  %v3824_v59 = vpop.eup %3823 }
 0x27f   : > { %v2632_v49 = vsel %vm7936_vm10, %v2628_v53, 0.0  ;;  %v2869_v33 = vsel %vm953_vm0, %v2861_v31, 0.0  ;;  %v2707_v38 = vadd.f32 %v2703_v60, %v6842_v43  ;;  %v6921_v30 = vadd.f32 %v2705_v5, %v6856_v34 }
 0x280   : > { %v6923_v62 = vadd.f32 %v2800_v7, %v2799_v26  ;;  %v2813_v21 = vadd.f32 %v2812_v19, %v2811_v51  ;;  %vm7937_vm15 = vcmp.ne.f32.partialorder %v6033_v11, 0.0  ;;  %v2708_v25 = vadd.f32 %v2704_v8, %v2630_v32 }
 0x281   : > { %v2706_v37 = vsel %vm7937_vm15, %v2702_v28, 0.0  ;;  %v2755_v53 = vsel %vm2753_vm9, %v2754_v16, %v2752_v40  ;;  %v2820_v44 = vadd.f32 %v2819_v18, %v2818_v54  ;;  %v3826_v35 = vpop.eup %3825  ;;  %v2757_v22 = vmul.f32 %v3824_v59, %v6870_v9 }
 0x282   : > { %v6930_v42 = vadd.f32 %v2807_v50, %v2806_v27  ;;  %v2814_v43 = vrot.slane %v2813_v21, 1  ;;  %v2870_v12 = vrot.slane %v2869_v33, 4  ;;  %vm2758_vm2 = vcmp.eq.f32.partialorder %v6870_v9, inf }
 0x283   : > { %v2821_v34 = vrot.slane %v2820_v44, 1  ;;  %3829 = vrsqrt.f32 %v6923_v62  ;;  %v2862_v48 = vmul.f32 %v2860_v63, %v2860_v63  ;;  %v6934_v11 = vadd.f32 %v2706_v37, %v2632_v49 }
 0x284   : > { %vm2760_vm6 = vcmp.eq.f32.partialorder %v6870_v9, 0.0  ;;  %v2761_v29 = vand.u32 2147483648, %v6870_v9  ;;  %v6938_v55 = vadd.f32 %v2814_v43, %v2813_v21  ;;  %vm2765_vm8 = vcmp.eq.f32.partialorder %v6883_v41, inf }
 0x285   : > { %vm7938_vm11 = vcmp.ne.f32.partialorder %v6104_v36, 0.0  ;;  %v6943_v32 = vadd.f32 %v2821_v34, %v2820_v44  ;;  %v2865_v60 = vcombine.high %v2861_v31, %v2861_v31  ;;  %v2759_v5 = vsel %vm2758_vm2, %v6870_v9, %v2757_v22 }
 0x286   : > { %v2777_v2 = vsel %vm7938_vm11, %v2755_v53, 0.0  ;;  %v2764_v14 = vmul.f32 %v3826_v35, %v6883_v41  ;;  %3831 = vrsqrt.f32 %v6930_v42  ;;  %v2871_v39 = vadd.f32 %v2870_v12, %v2869_v33  ;;  %v3828_v28 = vpop.eup %3827  ;;  %v3914_v35 = vld [vmem:[%s4222_s30 + $0xb8] sm:$0xff] }
 0x287   : > { %vm2767_vm14 = vcmp.eq.f32.partialorder %v6883_v41, 0.0  ;;  %v2768_v8 = vand.u32 2147483648, %v6883_v41  ;;  %3833 = vrsqrt.f32 %v6938_v55  ;;  %v2866_v36 = vcombine.high %v2862_v48, %v2862_v48 }
 0x288   : > { %vm2772_vm3 = vcmp.eq.f32.partialorder %v6896_v4, inf  ;;  %vm2774_vm5 = vcmp.eq.f32.partialorder %v6896_v4, 0.0  ;;  %3835 = vrsqrt.f32 %v6943_v32  ;;  %v2933_v26 = vsub.f32 %v3913_v47, %v6612_v6 }
 0x289   : > { %v2762_v27 = vsel %vm2760_vm6, %v2761_v29, %v2759_v5  ;;  %v2775_v51 = vand.u32 2147483648, %v6896_v4  ;;  %v6959_v16 = vadd.f32 %v2777_v2, %v2707_v38  ;;  %vm2825_vm12 = vcmp.eq.f32.partialorder %v6923_v62, inf }
 0x28a   : > { %v2766_v54 = vsel %vm2765_vm8, %v6883_v41, %v2764_v14  ;;  %v2872_v31 = vrot.slane %v2871_v39, 2  ;;  %v2876_v40 = vsel %vm953_vm0, %v2865_v60, 0.0  ;;  %v2883_v7 = vsel %vm953_vm0, %v2862_v48, 0.0 }
 0x28b   : > { %v2771_v50 = vmul.f32 %v3828_v28, %v6896_v4  ;;  %v2877_v9 = vrot.slane %v2876_v40, 4  ;;  %v2884_v19 = vrot.slane %v2883_v7, 4  ;;  %v2890_v49 = vsel %vm953_vm0, %v2866_v36, 0.0 }
 0x28c   : > { %vm7939_vm13 = vcmp.ne.f32.partialorder %v6110_v61, 0.0  ;;  %vm2827_vm7 = vcmp.eq.f32.partialorder %v6923_v62, 0.0  ;;  %v2873_v17 = vadd.f32 %v2872_v31, %v2871_v39  ;;  %v2891_v63 = vrot.slane %v2890_v49, 4 }
 0x28d   : > { %v2778_v18 = vsel %vm7939_vm13, %v2762_v27, 0.0  ;;  %v3830_v33 = vpop.eup %3829  ;;  %v2828_v59 = vand.u32 2147483648, %v6923_v62  ;;  %vm2832_vm4 = vcmp.eq.f32.partialorder %v6930_v42, inf  ;;  %v2878_v38 = vadd.f32 %v2877_v9, %v2876_v40 }
 0x28e   : > { %v2885_v21 = vadd.f32 %v2884_v19, %v2883_v7  ;;  %v2769_v37 = vsel %vm2767_vm14, %v2768_v8, %v2766_v54  ;;  %v2874_v53 = vrot.slane %v2873_v17, 1  ;;  %v2892_v44 = vadd.f32 %v2891_v63, %v2890_v49 }
 0x28f   : > { %v2934_v61 = vsub.f32 %v3914_v35, %v6620_v0  ;;  %v2773_v22 = vsel %vm2772_vm3, %v6896_v4, %v2771_v50  ;;  %v6981_v43 = vadd.f32 %v2778_v18, %v2708_v25  ;;  %vm2834_vm9 = vcmp.eq.f32.partialorder %v6930_v42, 0.0 }
 0x290   : > { %v2879_v12 = vrot.slane %v2878_v38, 2  ;;  %v2886_v34 = vrot.slane %v2885_v21, 2  ;;  %v3832_v48 = vpop.eup %3831  ;;  %v2824_v29 = vmul.f32 %v3830_v33, %v6923_v62  ;;  %v2835_v41 = vand.u32 2147483648, %v6930_v42 }
 0x291   : > { %v6986_v2 = vadd.f32 %v2874_v53, %v2873_v17  ;;  %v2893_v60 = vrot.slane %v2892_v44, 2  ;;  %v3834_v5 = vpop.eup %3833  ;;  %vm7940_vm10 = vcmp.ne.f32.partialorder %v6112_v1, 0.0  ;;  %vm2839_vm15 = vcmp.eq.f32.partialorder %v6938_v55, inf }
 0x292   : > { %v2779_v14 = vsel %vm7940_vm10, %v2769_v37, 0.0  ;;  %v2880_v25 = vadd.f32 %v2879_v12, %v2878_v38  ;;  %v2887_v39 = vadd.f32 %v2886_v34, %v2885_v21  ;;  %v3836_v28 = vpop.eup %3835  ;;  %v2776_v8 = vsel %vm2774_vm5, %v2775_v51, %v2773_v22  ;;  %v7941_v51 = vld [vmem:[#allocation14_spill] sm:$0xff]  ;;  %v7943_v22 = vld [vmem:[#allocation15_spill] sm:$0xff] }
 0x293   : > { %v2894_v36 = vadd.f32 %v2893_v60, %v2892_v44  ;;  %v2935_v47 = vmul.f32 %v2933_v26, %v2933_v26  ;;  %v2936_v27 = vmul.f32 %v2934_v61, %v2934_v61  ;;  %v2831_v54 = vmul.f32 %v3832_v48, %v6930_v42  ;;  %v7945_v60 = vld [vmem:[#allocation16_spill] sm:$0xff] }
 0x294   : > { %v2838_v31 = vmul.f32 %v3834_v5, %v6938_v55  ;;  %v2881_v40 = vrot.slane %v2880_v25, 1  ;;  %v2888_v7 = vrot.slane %v2887_v39, 1  ;;  %v2826_v1 = vsel %vm2825_vm12, %v6923_v62, %v2824_v29 }
 0x295   : > { %v2845_v50 = vmul.f32 %v3836_v28, %v6943_v32  ;;  %v2895_v9 = vrot.slane %v2894_v36, 1  ;;  %3837 = vrsqrt.f32 %v6986_v2  ;;  %vm2841_vm2 = vcmp.eq.f32.partialorder %v6938_v55, 0.0 }
 0x296   : > { %vm2846_vm6 = vcmp.eq.f32.partialorder %v6943_v32, inf  ;;  %v7002_v4 = vadd.f32 %v2881_v40, %v2880_v25  ;;  %v7004_v26 = vadd.f32 %v2888_v7, %v2887_v39  ;;  %vm7942_vm8 = vcmp.ne.f32.partialorder %v7941_v51, 0.0  ;;  %v3916_v40 = vld [vmem:[%s4222_s30 + $0xd8] sm:$0xff] }
 0x297   : > { %v2780_v19 = vsel %vm7942_vm8, %v2776_v8, 0.0  ;;  %v2842_v49 = vand.u32 2147483648, %v6938_v55  ;;  %v2849_v18 = vand.u32 2147483648, %v6943_v32  ;;  %v7010_v17 = vadd.f32 %v2895_v9, %v2894_v36  ;;  %v7949_v8 = vld [vmem:[#allocation18_spill] sm:$0xff] }
 0x298   : > { %v2829_v63 = vsel %vm2827_vm7, %v2828_v59, %v2826_v1  ;;  %v2833_v33 = vsel %vm2832_vm4, %v6930_v42, %v2831_v54  ;;  %v2840_v38 = vsel %vm2839_vm15, %v6938_v55, %v2838_v31  ;;  %v2939_v21 = vcombine.high %v2935_v47, %v2935_v47  ;;  %v3915_v59 = vld [vmem:[%s4222_s30 + $0xd0] sm:$0xff] }
 0x299   : > { %v2847_v37 = vsel %vm2846_vm6, %v6943_v32, %v2845_v50  ;;  %vm2848_vm11 = vcmp.eq.f32.partialorder %v6943_v32, 0.0  ;;  %3839 = vrsqrt.f32 %v7002_v4  ;;  %v2940_v53 = vcombine.high %v2936_v27, %v2936_v27 }
 0x29a   : > { %v7024_v44 = vadd.f32 %v2779_v14, %v6921_v30  ;;  %v7027_v62 = vadd.f32 %v2780_v19, %v6934_v11  ;;  %3841 = vrsqrt.f32 %v7004_v26  ;;  %v3007_v35 = vsub.f32 %v3915_v59, %v6612_v6  ;;  %v7947_v14 = vld [vmem:[#allocation17_spill] sm:$0xff] }
 0x29b   : > { %v2836_v61 = vsel %vm2834_vm9, %v2835_v41, %v2833_v33  ;;  %v2843_v32 = vsel %vm2841_vm2, %v2842_v49, %v2840_v38  ;;  %vm7944_vm14 = vcmp.ne.f32.partialorder %v7943_v22, 0.0  ;;  %3843 = vrsqrt.f32 %v7010_v17 }
 0x29c   : > { %v7038_v12 = vsel %vm7944_vm14, %v2829_v63, 0.0  ;;  %v2850_v30 = vsel %vm2848_vm11, %v2849_v18, %v2847_v37  ;;  %v2943_v11 = vsel %vm953_vm0, %v2935_v47, 0.0  ;;  %v2950_v34 = vsel %vm953_vm0, %v2939_v21, 0.0 }
 0x29d   : > { %v2957_v48 = vsel %vm953_vm0, %v2936_v27, 0.0  ;;  %v2944_v29 = vrot.slane %v2943_v11, 4  ;;  %v2951_v42 = vrot.slane %v2950_v34, 4  ;;  %v2964_v55 = vsel %vm953_vm0, %v2940_v53, 0.0 }
 0x29e   : > { %v2958_v41 = vrot.slane %v2957_v48, 4  ;;  %vm7946_vm3 = vcmp.ne.f32.partialorder %v7945_v60, 0.0  ;;  %vm7948_vm5 = vcmp.ne.f32.partialorder %v7947_v14, 0.0  ;;  %vm2899_vm12 = vcmp.eq.f32.partialorder %v6986_v2, inf }
 0x29f   : > { %v7047_v5 = vsel %vm7946_vm3, %v2836_v61, 0.0  ;;  %v7051_v25 = vsel %vm7948_vm5, %v2843_v32, 0.0  ;;  %v2965_v39 = vrot.slane %v2964_v55, 4  ;;  %v3838_v28 = vpop.eup %3837  ;;  %vm7950_vm13 = vcmp.ne.f32.partialorder %v7949_v8, 0.0 }
 0x2a0   : > { %v2854_v36 = vsel %vm7950_vm13, %v2850_v30, 0.0  ;;  %v2945_v47 = vadd.f32 %v2944_v29, %v2943_v11  ;;  %v2952_v27 = vadd.f32 %v2951_v42, %v2950_v34  ;;  %v2959_v54 = vadd.f32 %v2958_v41, %v2957_v48 }
 0x2a1   : > { %vm2901_vm7 = vcmp.eq.f32.partialorder %v6986_v2, 0.0  ;;  %v2966_v31 = vadd.f32 %v2965_v39, %v2964_v55  ;;  %v3008_v7 = vsub.f32 %v3916_v40, %v6620_v0  ;;  %v7059_v1 = vmul.f32 %v3007_v35, %v3007_v35 }
 0x2a2   : > { %v2898_v50 = vmul.f32 %v3838_v28, %v6986_v2  ;;  %v2946_v9 = vrot.slane %v2945_v47, 2  ;;  %v2953_v51 = vrot.slane %v2952_v27, 2  ;;  %v2960_v19 = vrot.slane %v2959_v54, 2 }
 0x2a3   : > { %v2902_v49 = vand.u32 2147483648, %v6986_v2  ;;  %vm2906_vm4 = vcmp.eq.f32.partialorder %v7002_v4, inf  ;;  %vm2908_vm9 = vcmp.eq.f32.partialorder %v7002_v4, 0.0  ;;  %v2967_v18 = vrot.slane %v2966_v31, 2  ;;  %v3840_v63 = vpop.eup %3839 }
 0x2a4   : > { %v2947_v33 = vadd.f32 %v2946_v9, %v2945_v47  ;;  %v2954_v38 = vadd.f32 %v2953_v51, %v2952_v27  ;;  %v2961_v21 = vadd.f32 %v2960_v19, %v2959_v54  ;;  %v3017_v37 = vsel %vm953_vm0, %v7059_v1, 0.0  ;;  %v3842_v53 = vpop.eup %3841 }
 0x2a5   : > { %v2905_v59 = vmul.f32 %v3840_v63, %v7002_v4  ;;  %v2909_v35 = vand.u32 2147483648, %v7002_v4  ;;  %vm2913_vm10 = vcmp.eq.f32.partialorder %v7004_v26, inf  ;;  %v2968_v61 = vadd.f32 %v2967_v18, %v2966_v31  ;;  %v3844_v32 = vpop.eup %3843  ;;  %v7952_v63 = vld [vmem:[#allocation19_spill] sm:$0xff] }
 0x2a6   : > { %v2900_v22 = vsel %vm2899_vm12, %v6986_v2, %v2898_v50  ;;  %v2948_v30 = vrot.slane %v2947_v33, 1  ;;  %v2955_v11 = vrot.slane %v2954_v38, 1  ;;  %v3010_v34 = vmul.f32 %v3008_v7, %v3008_v7 }
 0x2a7   : > { %v2907_v48 = vsel %vm2906_vm4, %v7002_v4, %v2905_v59  ;;  %v2912_v29 = vmul.f32 %v3842_v53, %v7004_v26  ;;  %v2962_v42 = vrot.slane %v2961_v21, 1  ;;  %v3018_v41 = vrot.slane %v3017_v37, 4  ;;  %v3918_v59 = vld [vmem:[%s4222_s30 + $0xf8] sm:$0xff] }
 0x2a8   : > { %v2919_v55 = vmul.f32 %v3844_v32, %v7010_v17  ;;  %v7078_v60 = vadd.f32 %v2948_v30, %v2947_v33  ;;  %v7080_v14 = vadd.f32 %v2955_v11, %v2954_v38  ;;  %v2969_v39 = vrot.slane %v2968_v61, 1 }
 0x2a9   : > { %vm2915_vm15 = vcmp.eq.f32.partialorder %v7004_v26, 0.0  ;;  %v2916_v28 = vand.u32 2147483648, %v7004_v26  ;;  %vm2920_vm2 = vcmp.eq.f32.partialorder %v7010_v17, inf  ;;  %v7085_v8 = vadd.f32 %v2962_v42, %v2961_v21 }
 0x2aa   : > { %vm2922_vm6 = vcmp.eq.f32.partialorder %v7010_v17, 0.0  ;;  %v2923_v47 = vand.u32 2147483648, %v7010_v17  ;;  %v3013_v27 = vcombine.high %v7059_v1, %v7059_v1  ;;  %v3014_v54 = vcombine.high %v3010_v34, %v3010_v34 }
 0x2ab   : > { %v2903_v31 = vsel %vm2901_vm7, %v2902_v49, %v2900_v22  ;;  %v2910_v40 = vsel %vm2908_vm9, %v2909_v35, %v2907_v48  ;;  %3845 = vrsqrt.f32 %v7078_v60  ;;  %v3019_v7 = vadd.f32 %v3018_v41, %v3017_v37  ;;  %v7956_v37 = vld [vmem:[#allocation21_spill] sm:$0xff] }
 0x2ac   : > { %v2914_v50 = vsel %vm2913_vm10, %v7004_v26, %v2912_v29  ;;  %v2921_v9 = vsel %vm2920_vm2, %v7010_v17, %v2919_v55  ;;  %v7100_v51 = vadd.f32 %v2969_v39, %v2968_v61  ;;  %3847 = vrsqrt.f32 %v7080_v14 }
 0x2ad   : > { %v7951_v2 = vmin.f32 %v6660_v58, %v6732_v15  ;;  %v2855_v4 = vadd.f32 %v7038_v12, %v6959_v16  ;;  %v2856_v19 = vadd.f32 %v7047_v5, %v6981_v43  ;;  %3849 = vrsqrt.f32 %v7085_v8  ;;  %v3917_v15 = vld [vmem:[%s4222_s30 + $0xf0] sm:$0xff]  ;;  %v7954_v12 = vld [vmem:[#allocation20_spill] sm:$0xff] }
 0x2ae   : > { %v7116_v49 = vadd.f32 %v7051_v25, %v7024_v44  ;;  %v7119_v18 = vadd.f32 %v2854_v36, %v7027_v62  ;;  %vm7953_vm8 = vcmp.ne.f32.partialorder %v7952_v63, 0.0  ;;  %v2917_v16 = vsel %vm2915_vm15, %v2916_v28, %v2914_v50 }
 0x2af   : > { %v7107_v1 = vmin.f32 %v7951_v2, %v6779_v57  ;;  %v2925_v58 = vsel %vm7953_vm8, %v2903_v31, 0.0  ;;  %v3081_v57 = vsub.f32 %v3917_v15, %v6612_v6  ;;  %v2924_v43 = vsel %vm2922_vm6, %v2923_v47, %v2921_v9 }
 0x2b0   : > { %vm7955_vm11 = vcmp.ne.f32.partialorder %v7954_v12, 0.0  ;;  %v3020_v5 = vrot.slane %v3019_v7, 2  ;;  %3851 = vrsqrt.f32 %v7100_v51  ;;  %v3024_v62 = vsel %vm953_vm0, %v3013_v27, 0.0 }
 0x2b1   : > { %v2926_v44 = vsel %vm7955_vm11, %v2910_v40, 0.0  ;;  %v3031_v25 = vsel %vm953_vm0, %v3010_v34, 0.0  ;;  %v3038_v36 = vsel %vm953_vm0, %v3014_v54, 0.0  ;;  %v3025_v38 = vrot.slane %v3024_v62, 4  ;;  %v7958_v34 = vld [vmem:[#allocation22_spill] sm:$0xff] }
 0x2b2   : > { %v3021_v33 = vadd.f32 %v3020_v5, %v3019_v7  ;;  %v3032_v21 = vrot.slane %v3031_v25, 4  ;;  %v3039_v26 = vrot.slane %v3038_v36, 4  ;;  %vm7957_vm14 = vcmp.ne.f32.partialorder %v7956_v37, 0.0 }
 0x2b3   : > { %v2927_v17 = vsel %vm7957_vm14, %v2917_v16, 0.0  ;;  %v7137_v53 = vadd.f32 %v2925_v58, %v2855_v4  ;;  %v3082_v35 = vsub.f32 %v3918_v59, %v6620_v0  ;;  %v3083_v61 = vmul.f32 %v3081_v57, %v3081_v57 }
 0x2b4   : > { %v3022_v32 = vrot.slane %v3021_v33, 1  ;;  %v3026_v22 = vadd.f32 %v3025_v38, %v3024_v62  ;;  %v3033_v30 = vadd.f32 %v3032_v21, %v3031_v25  ;;  %v3040_v11 = vadd.f32 %v3039_v26, %v3038_v36 }
 0x2b5   : > { %vm7959_vm3 = vcmp.ne.f32.partialorder %v7958_v34, 0.0  ;;  %v7143_v29 = vadd.f32 %v2926_v44, %v2856_v19  ;;  %vm2973_vm5 = vcmp.eq.f32.partialorder %v7078_v60, inf  ;;  %v3091_v42 = vsel %vm953_vm0, %v3083_v61, 0.0  ;;  %v3846_v41 = vpop.eup %3845  ;;  %v7960_v34 = vld [vmem:[#allocation23_spill] sm:$0xff] }
 0x2b6   : > { %v2928_v48 = vsel %vm7959_vm3, %v2924_v43, 0.0  ;;  %v7147_v55 = vadd.f32 %v3022_v32, %v3021_v33  ;;  %v3027_v39 = vrot.slane %v3026_v22, 2  ;;  %v3034_v28 = vrot.slane %v3033_v30, 2  ;;  %v3848_v27 = vpop.eup %3847 }
 0x2b7   : > { %v3041_v47 = vrot.slane %v3040_v11, 2  ;;  %v2972_v54 = vmul.f32 %v3846_v41, %v7078_v60  ;;  %vm2975_vm12 = vcmp.eq.f32.partialorder %v7078_v60, 0.0  ;;  %v2976_v31 = vand.u32 2147483648, %v7078_v60  ;;  %v3850_v40 = vpop.eup %3849  ;;  %v3919_v41 = vld [vmem:[%s4222_s30 + $0x110] sm:$0xff] }
 0x2b8   : > { %vm2980_vm13 = vcmp.eq.f32.partialorder %v7080_v14, inf  ;;  %vm2982_vm7 = vcmp.eq.f32.partialorder %v7080_v14, 0.0  ;;  %v3028_v7 = vadd.f32 %v3027_v39, %v3026_v22  ;;  %v3035_v50 = vadd.f32 %v3034_v28, %v3033_v30 }
 0x2b9   : > { %v3087_v9 = vcombine.high %v3083_v61, %v3083_v61  ;;  %v2983_v2 = vand.u32 2147483648, %v7080_v14  ;;  %3853 = vrsqrt.f32 %v7147_v55  ;;  %v3084_v4 = vmul.f32 %v3082_v35, %v3082_v35 }
 0x2ba   : > { %v3092_v19 = vrot.slane %v3091_v42, 4  ;;  %v2974_v63 = vsel %vm2973_vm5, %v7078_v60, %v2972_v54  ;;  %v2979_v58 = vmul.f32 %v3848_v27, %v7080_v14  ;;  %v3029_v15 = vrot.slane %v3028_v7, 1  ;;  %v3852_v16 = vpop.eup %3851  ;;  %v7962_v54 = vld [vmem:[#allocation25_spill] sm:$0xff] }
 0x2bb   : > { %v3042_v57 = vadd.f32 %v3041_v47, %v3040_v11  ;;  %v2986_v43 = vmul.f32 %v3850_v40, %v7085_v8  ;;  %vm2987_vm4 = vcmp.eq.f32.partialorder %v7085_v8, inf  ;;  %vm2989_vm9 = vcmp.eq.f32.partialorder %v7085_v8, 0.0 }
 0x2bc   : > { %v3036_v12 = vrot.slane %v3035_v50, 1  ;;  %v2990_v44 = vand.u32 2147483648, %v7085_v8  ;;  %vm2994_vm10 = vcmp.eq.f32.partialorder %v7100_v51, inf  ;;  %v3098_v5 = vsel %vm953_vm0, %v3087_v9, 0.0 }
 0x2bd   : > { %v3105_v62 = vsel %vm953_vm0, %v3084_v4, 0.0  ;;  %v2977_v25 = vsel %vm2975_vm12, %v2976_v31, %v2974_v63  ;;  %v7169_v36 = vadd.f32 %v3029_v15, %v3028_v7  ;;  %v3088_v33 = vcombine.high %v3084_v4, %v3084_v4 }
 0x2be   : > { %v3093_v38 = vadd.f32 %v3092_v19, %v3091_v42  ;;  %v2981_v21 = vsel %vm2980_vm13, %v7080_v14, %v2979_v58  ;;  %v2993_v26 = vmul.f32 %v3852_v16, %v7100_v51  ;;  %v7175_v37 = vadd.f32 %v3036_v12, %v3035_v50  ;;  %v7964_v19 = vld [vmem:[#allocation24_spill] sm:$0xff] }
 0x2bf   : > { %v3043_v59 = vrot.slane %v3042_v57, 1  ;;  %v2988_v35 = vsel %vm2987_vm4, %v7085_v8, %v2986_v43  ;;  %3855 = vrsqrt.f32 %v7169_v36  ;;  %v3099_v60 = vrot.slane %v3098_v5, 4  ;;  %v3920_v12 = vld [vmem:[%s4222_s30 + $0x118] sm:$0xff] }
 0x2c0   : > { %v3106_v61 = vrot.slane %v3105_v62, 4  ;;  %v2931_v32 = vadd.f32 %v2927_v17, %v7116_v49  ;;  %v2932_v22 = vadd.f32 %v2928_v48, %v7119_v18  ;;  %vm2996_vm15 = vcmp.eq.f32.partialorder %v7100_v51, 0.0 }
 0x2c1   : > { %v2997_v30 = vand.u32 2147483648, %v7100_v51  ;;  %v2984_v11 = vsel %vm2982_vm7, %v2983_v2, %v2981_v21  ;;  %vm7961_vm2 = vcmp.ne.f32.partialorder %v7960_v34, 0.0  ;;  %vm3047_vm6 = vcmp.eq.f32.partialorder %v7147_v55, inf }
 0x2c2   : > { %v2999_v42 = vsel %vm7961_vm2, %v2977_v25, 0.0  ;;  %v3155_v39 = vsub.f32 %v3919_v41, %v6612_v6  ;;  %v2991_v49 = vsel %vm2989_vm9, %v2990_v44, %v2988_v35  ;;  %v2995_v18 = vsel %vm2994_vm10, %v7100_v51, %v2993_v26  ;;  %v7966_v25 = vld [vmem:[#allocation26_spill] sm:$0xff] }
 0x2c3   : > { %v7195_v17 = vadd.f32 %v3043_v59, %v3042_v57  ;;  %3857 = vrsqrt.f32 %v7175_v37  ;;  %v3854_v14 = vpop.eup %3853  ;;  %v3094_v48 = vrot.slane %v3093_v38, 2  ;;  %v3100_v28 = vadd.f32 %v3099_v60, %v3098_v5 }
 0x2c4   : > { %v3107_v47 = vadd.f32 %v3106_v61, %v3105_v62  ;;  %v3112_v27 = vsel %vm953_vm0, %v3088_v33, 0.0  ;;  %vm7963_vm8 = vcmp.ne.f32.partialorder %v7962_v54, 0.0  ;;  %v3003_v8 = vadd.f32 %v2999_v42, %v7137_v53 }
 0x2c5   : > { %v3000_v31 = vsel %vm7963_vm8, %v2984_v11, 0.0  ;;  %v3046_v40 = vmul.f32 %v3854_v14, %v7147_v55  ;;  %v3113_v7 = vrot.slane %v3112_v27, 4  ;;  %v2998_v50 = vsel %vm2996_vm15, %v2997_v30, %v2995_v18 }
 0x2c6   : > { %v3095_v9 = vadd.f32 %v3094_v48, %v3093_v38  ;;  %v3101_v2 = vrot.slane %v3100_v28, 2  ;;  %v3108_v4 = vrot.slane %v3107_v47, 2  ;;  %vm7965_vm11 = vcmp.ne.f32.partialorder %v7964_v19, 0.0 }
 0x2c7   : > { %v3001_v63 = vsel %vm7965_vm11, %v2991_v49, 0.0  ;;  %vm3049_vm14 = vcmp.eq.f32.partialorder %v7147_v55, 0.0  ;;  %3859 = vrsqrt.f32 %v7195_v17  ;;  %v3114_v58 = vadd.f32 %v3113_v7, %v3112_v27  ;;  %v7968_v49 = vld [vmem:[#allocation27_spill] sm:$0xff] }
 0x2c8   : > { %v3050_v53 = vand.u32 2147483648, %v7147_v55  ;;  %v3096_v15 = vrot.slane %v3095_v9, 1  ;;  %v3102_v57 = vadd.f32 %v3101_v2, %v3100_v28  ;;  %v3109_v16 = vadd.f32 %v3108_v4, %v3107_v47 }
 0x2c9   : > { %v3048_v51 = vsel %vm3047_vm6, %v7147_v55, %v3046_v40  ;;  %v3115_v43 = vrot.slane %v3114_v58, 2  ;;  %v3156_v44 = vsub.f32 %v3920_v12, %v6620_v0  ;;  %v3157_v5 = vmul.f32 %v3155_v39, %v3155_v39  ;;  %v3856_v62 = vpop.eup %3855 }
 0x2ca   : > { %vm7967_vm3 = vcmp.ne.f32.partialorder %v7966_v25, 0.0  ;;  %v7218_v38 = vadd.f32 %v3000_v31, %v7143_v29  ;;  %v7220_v21 = vadd.f32 %v3096_v15, %v3095_v9  ;;  %v3103_v26 = vrot.slane %v3102_v57, 1  ;;  %v3921_v9 = vld [vmem:[%s4222_s30 + $0x130] sm:$0xff] }
 0x2cb   : > { %v3002_v33 = vsel %vm7967_vm3, %v2998_v50, 0.0  ;;  %v7222_v59 = vadd.f32 %v3001_v63, %v2931_v32  ;;  %v3053_v35 = vmul.f32 %v3856_v62, %v7169_v36  ;;  %v3110_v60 = vrot.slane %v3109_v16, 1 }
 0x2cc   : > { %v3116_v61 = vadd.f32 %v3115_v43, %v3114_v58  ;;  %v3051_v30 = vsel %vm3049_vm14, %v3050_v53, %v3048_v51  ;;  %vm3054_vm5 = vcmp.eq.f32.partialorder %v7169_v36, inf  ;;  %v7228_v11 = vadd.f32 %v3103_v26, %v3102_v57  ;;  %v7970_v53 = vld [vmem:[#allocation28_spill] sm:$0xff] }
 0x2cd   : > { %3861 = vrsqrt.f32 %v7220_v21  ;;  %v3858_v29 = vpop.eup %3857  ;;  %v7231_v34 = vadd.f32 %v3002_v33, %v2932_v22  ;;  %v3158_v42 = vmul.f32 %v3156_v44, %v3156_v44  ;;  %v3161_v41 = vcombine.high %v3157_v5, %v3157_v5 }
 0x2ce   : > { %v3165_v32 = vsel %vm953_vm0, %v3157_v5, 0.0  ;;  %vm3056_vm12 = vcmp.eq.f32.partialorder %v7169_v36, 0.0  ;;  %v3057_v39 = vand.u32 2147483648, %v7169_v36  ;;  %vm3061_vm13 = vcmp.eq.f32.partialorder %v7175_v37, inf }
 0x2cf   : > { %3863 = vrsqrt.f32 %v7228_v11  ;;  %v3055_v55 = vsel %vm3054_vm5, %v7169_v36, %v3053_v35  ;;  %vm7969_vm7 = vcmp.ne.f32.partialorder %v7968_v49, 0.0  ;;  %v7241_v22 = vadd.f32 %v3110_v60, %v3109_v16 }
 0x2d0   : > { %v3073_v18 = vsel %vm7969_vm7, %v3051_v30, 0.0  ;;  %v3117_v14 = vrot.slane %v3116_v61, 1  ;;  %vm3063_vm4 = vcmp.eq.f32.partialorder %v7175_v37, 0.0  ;;  %v3064_v48 = vand.u32 2147483648, %v7175_v37 }
 0x2d1   : > { %vm3068_vm9 = vcmp.eq.f32.partialorder %v7195_v17, inf  ;;  %v3166_v28 = vrot.slane %v3165_v32, 4  ;;  %v3860_v47 = vpop.eup %3859  ;;  %v3060_v27 = vmul.f32 %v3858_v29, %v7175_v37  ;;  %vm3070_vm10 = vcmp.eq.f32.partialorder %v7195_v17, 0.0 }
 0x2d2   : > { %v3162_v54 = vcombine.high %v3158_v42, %v3158_v42  ;;  %v3172_v31 = vsel %vm953_vm0, %v3161_v41, 0.0  ;;  %v3058_v40 = vsel %vm3056_vm12, %v3057_v39, %v3055_v55  ;;  %v3071_v7 = vand.u32 2147483648, %v7195_v17  ;;  %v3922_v41 = vld [vmem:[%s4222_s30 + $0x138] sm:$0xff] }
 0x2d3   : > { %v7252_v50 = vadd.f32 %v3073_v18, %v3003_v8  ;;  %v3229_v2 = vsub.f32 %v3921_v9, %v6612_v6  ;;  %v7256_v4 = vadd.f32 %v3117_v14, %v3116_v61  ;;  %vm3121_vm15 = vcmp.eq.f32.partialorder %v7220_v21, inf }
 0x2d4   : > { %vm3123_vm2 = vcmp.eq.f32.partialorder %v7220_v21, 0.0  ;;  %3865 = vrsqrt.f32 %v7241_v22  ;;  %v3067_v19 = vmul.f32 %v3860_v47, %v7195_v17  ;;  %v3124_v36 = vand.u32 2147483648, %v7220_v21  ;;  %v7972_v47 = vld [vmem:[#allocation29_spill] sm:$0xff] }
 0x2d5   : > { %v3167_v63 = vadd.f32 %v3166_v28, %v3165_v32  ;;  %v3173_v58 = vrot.slane %v3172_v31, 4  ;;  %v3062_v8 = vsel %vm3061_vm13, %v7175_v37, %v3060_v27  ;;  %vm7971_vm6 = vcmp.ne.f32.partialorder %v7970_v53, 0.0 }
 0x2d6   : > { %v3074_v15 = vsel %vm7971_vm6, %v3058_v40, 0.0  ;;  %v3179_v57 = vsel %vm953_vm0, %v3158_v42, 0.0  ;;  %v3186_v16 = vsel %vm953_vm0, %v3162_v54, 0.0  ;;  %vm3128_vm8 = vcmp.eq.f32.partialorder %v7228_v11, inf }
 0x2d7   : > { %v3862_v51 = vpop.eup %3861  ;;  %v3168_v43 = vrot.slane %v3167_v63, 2  ;;  %v3174_v12 = vadd.f32 %v3173_v58, %v3172_v31  ;;  %v3180_v44 = vrot.slane %v3179_v57, 4  ;;  %v3187_v5 = vrot.slane %v3186_v16, 4 }
 0x2d8   : > { %v3120_v62 = vmul.f32 %v3862_v51, %v7220_v21  ;;  %3867 = vrsqrt.f32 %v7256_v4  ;;  %v7273_v25 = vmul.f32 %v3229_v2, %v3229_v2  ;;  %v3065_v30 = vsel %vm3063_vm4, %v3064_v48, %v3062_v8  ;;  %v7974_v51 = vld [vmem:[#allocation30_spill] sm:$0xff] }
 0x2d9   : > { %v3864_v33 = vpop.eup %3863  ;;  %v3169_v26 = vadd.f32 %v3168_v43, %v3167_v63  ;;  %v3175_v35 = vrot.slane %v3174_v12, 2  ;;  %v3181_v60 = vadd.f32 %v3180_v44, %v3179_v57  ;;  %v3188_v61 = vadd.f32 %v3187_v5, %v3186_v16 }
 0x2da   : > { %v3069_v29 = vsel %vm3068_vm9, %v7195_v17, %v3067_v19  ;;  %v3127_v42 = vmul.f32 %v3864_v33, %v7228_v11  ;;  %v3230_v32 = vsub.f32 %v3922_v41, %v6620_v0  ;;  %v3239_v18 = vsel %vm953_vm0, %v7273_v25, 0.0 }
 0x2db   : > { %v3170_v39 = vrot.slane %v3169_v26, 1  ;;  %v3176_v55 = vadd.f32 %v3175_v35, %v3174_v12  ;;  %v3182_v49 = vrot.slane %v3181_v60, 2  ;;  %v3122_v37 = vsel %vm3121_vm15, %v7220_v21, %v3120_v62  ;;  %v7978_v62 = vld [vmem:[#allocation32_spill] sm:$0xff] }
 0x2dc   : > { %vm3130_vm11 = vcmp.eq.f32.partialorder %v7228_v11, 0.0  ;;  %v3131_v14 = vand.u32 2147483648, %v7228_v11  ;;  %v3189_v48 = vrot.slane %v3188_v61, 2  ;;  %v3072_v28 = vsel %vm3070_vm10, %v3071_v7, %v3069_v29 }
 0x2dd   : > { %vm7973_vm14 = vcmp.ne.f32.partialorder %v7972_v47, 0.0  ;;  %v3129_v54 = vsel %vm3128_vm8, %v7228_v11, %v3127_v42  ;;  %v7297_v31 = vadd.f32 %v3170_v39, %v3169_v26  ;;  %v3177_v9 = vrot.slane %v3176_v55, 1 }
 0x2de   : > { %v3075_v27 = vsel %vm7973_vm14, %v3065_v30, 0.0  ;;  %v3866_v40 = vpop.eup %3865  ;;  %v3183_v2 = vadd.f32 %v3182_v49, %v3181_v60  ;;  %v3190_v19 = vadd.f32 %v3189_v48, %v3188_v61  ;;  %v3240_v63 = vrot.slane %v3239_v18, 4 }
 0x2df   : > { %v3078_v58 = vadd.f32 %v3074_v15, %v7218_v38  ;;  %v3125_v17 = vsel %vm3123_vm2, %v3124_v36, %v3122_v37  ;;  %3869 = vrsqrt.f32 %v7297_v31  ;;  %v3232_v7 = vmul.f32 %v3230_v32, %v3230_v32  ;;  %v7976_v36 = vld [vmem:[#allocation31_spill] sm:$0xff] }
 0x2e0   : > { %v3132_v8 = vsel %vm3130_vm11, %v3131_v14, %v3129_v54  ;;  %v7305_v53 = vadd.f32 %v3177_v9, %v3176_v55  ;;  %v3184_v57 = vrot.slane %v3183_v2, 1  ;;  %v3191_v16 = vrot.slane %v3190_v19, 1 }
 0x2e1   : > { %vm7975_vm3 = vcmp.ne.f32.partialorder %v7974_v51, 0.0  ;;  %v7310_v12 = vadd.f32 %v3075_v27, %v7222_v59  ;;  %v3134_v38 = vmul.f32 %v3866_v40, %v7241_v22  ;;  %vm3135_vm5 = vcmp.eq.f32.partialorder %v7241_v22, inf  ;;  %v7980_v51 = vld [vmem:[#allocation33_spill] sm:$0xff] }
 0x2e2   : > { %v3076_v43 = vsel %vm7975_vm3, %v3072_v28, 0.0  ;;  %v3868_v21 = vpop.eup %3867  ;;  %vm7977_vm12 = vcmp.ne.f32.partialorder %v7976_v36, 0.0  ;;  %v7316_v11 = vadd.f32 %v3184_v57, %v3183_v2  ;;  %v7318_v44 = vadd.f32 %v3191_v16, %v3190_v19 }
 0x2e3   : > { %v3147_v15 = vsel %vm7977_vm12, %v3125_v17, 0.0  ;;  %v3241_v5 = vadd.f32 %v3240_v63, %v3239_v18  ;;  %vm7979_vm13 = vcmp.ne.f32.partialorder %v7978_v62, 0.0  ;;  %3871 = vrsqrt.f32 %v7305_v53 }
 0x2e4   : > { %v3148_v33 = vsel %vm7979_vm13, %v3132_v8, 0.0  ;;  %v3235_v59 = vcombine.high %v7273_v25, %v7273_v25  ;;  %v3236_v26 = vcombine.high %v3232_v7, %v3232_v7  ;;  %v7326_v35 = vadd.f32 %v3076_v43, %v7231_v34 }
 0x2e5   : > { %vm3137_vm7 = vcmp.eq.f32.partialorder %v7241_v22, 0.0  ;;  %v3138_v60 = vand.u32 2147483648, %v7241_v22  ;;  %3873 = vrsqrt.f32 %v7316_v11  ;;  %v3136_v61 = vsel %vm3135_vm5, %v7241_v22, %v3134_v38 }
 0x2e6   : > { %vm3142_vm4 = vcmp.eq.f32.partialorder %v7256_v4, inf  ;;  %v3145_v30 = vand.u32 2147483648, %v7256_v4  ;;  %v7335_v29 = vadd.f32 %v3147_v15, %v7252_v50  ;;  %v3141_v25 = vmul.f32 %v3868_v21, %v7256_v4 }
 0x2e7   : > { %vm3144_vm9 = vcmp.eq.f32.partialorder %v7256_v4, 0.0  ;;  %v7339_v34 = vadd.f32 %v3148_v33, %v3078_v58  ;;  %3875 = vrsqrt.f32 %v7318_v44  ;;  %v3242_v42 = vrot.slane %v3241_v5, 2 }
 0x2e8   : > { %v3246_v41 = vsel %vm953_vm0, %v3235_v59, 0.0  ;;  %v3253_v32 = vsel %vm953_vm0, %v3232_v7, 0.0  ;;  %v3260_v39 = vsel %vm953_vm0, %v3236_v26, 0.0  ;;  %v3313_v50 = vcombine.high %v6612_v6, %v6612_v6 }
 0x2e9   : > { %v3243_v55 = vadd.f32 %v3242_v42, %v3241_v5  ;;  %v3247_v49 = vrot.slane %v3246_v41, 4  ;;  %v3254_v18 = vrot.slane %v3253_v32, 4  ;;  %v3261_v37 = vrot.slane %v3260_v39, 4  ;;  %v3870_v14 = vpop.eup %3869 }
 0x2ea   : > { %v3314_v48 = vcombine.high %v6620_v0, %v6620_v0  ;;  %3318 = vst [vmem:[%s5061_s17 + $0x28] sm:$0x7] %v3313_v50  ;;  %v3323_v28 = vcombine.high %v6762_v23, %v6762_v23  ;;  %v3324_v47 = vcombine.high %v6786_v3, %v6786_v3  ;;  %v3325_v27 = vrot.slane %v6762_v23, 5 }
 0x2eb   : > { %v3139_v54 = vsel %vm3137_vm7, %v3138_v60, %v3136_v61  ;;  %v3244_v40 = vrot.slane %v3243_v55, 1  ;;  %v3248_v9 = vadd.f32 %v3247_v49, %v3246_v41  ;;  %v3255_v2 = vadd.f32 %v3254_v18, %v3253_v32 }
 0x2ec   : > { %v3262_v19 = vadd.f32 %v3261_v37, %v3260_v39  ;;  %3320 = vst [vmem:[%s5061_s17 + $0x38] sm:$0x7] %v3314_v48  ;;  %v3326_v63 = vrot.slane %v3323_v28, 5  ;;  %v3327_v58 = vrot.slane %v6786_v3, 5  ;;  %v3328_v17 = vrot.slane %v3324_v47, 5  ;;  %v7982_v37 = vld [vmem:[#allocation34_spill] sm:$0xff] }
 0x2ed   : > { %3333 = vst [vmem:[%s5061_s17 + $0x20] sm:$0x38] %v3325_v27  ;;  %v3194_v7 = vmul.f32 %v3870_v14, %v7297_v31  ;;  %v7361_v8 = vadd.f32 %v3244_v40, %v3243_v55  ;;  %v3249_v23 = vrot.slane %v3248_v9, 2  ;;  %v3256_v22 = vrot.slane %v3255_v2, 2  ;;  %v3872_v57 = vpop.eup %3871  ;;  %v7984_v47 = vld [vmem:[#allocation35_spill] sm:$0xff] }
 0x2ee   : > { %v3143_v16 = vsel %vm3142_vm4, %v7256_v4, %v3141_v25  ;;  %vm7981_vm0 = vcmp.ne.f32.partialorder %v7980_v51, 0.0  ;;  %vm3195_vm10 = vcmp.eq.f32.partialorder %v7297_v31, inf  ;;  %v3263_v3 = vrot.slane %v3262_v19, 2  ;;  %3334 = vst [vmem:[%s5061_s17 + $0x28] sm:$0x38] %v3326_v63 }
 0x2ef   : > { %v7368_v43 = vsel %vm7981_vm0, %v3139_v54, 0.0  ;;  %3335 = vst [vmem:[%s5061_s17 + $0x30] sm:$0x38] %v3327_v58  ;;  %3336 = vst [vmem:[%s5061_s17 + $0x38] sm:$0x38] %v3328_v17  ;;  %v3874_v38 = vpop.eup %3873  ;;  %vm3197_vm15 = vcmp.eq.f32.partialorder %v7297_v31, 0.0  ;;  %v3201_v21 = vmul.f32 %v3872_v57, %v7305_v53  ;;  %v3250_v36 = vadd.f32 %v3249_v23, %v3248_v9 }
 0x2f0   : > { %v3257_v15 = vadd.f32 %v3256_v22, %v3255_v2  ;;  %v3198_v5 = vand.u32 2147483648, %v7297_v31  ;;  %vm3202_vm2 = vcmp.eq.f32.partialorder %v7305_v53, inf  ;;  %v3264_v62 = vadd.f32 %v3263_v3, %v3262_v19  ;;  %v7986_v9 = vld [vmem:[#allocation36_spill] sm:$0xff] }
 0x2f1   : > { %3877 = vrsqrt.f32 %v7361_v8  ;;  %v3876_v33 = vpop.eup %3875  ;;  %v3196_v59 = vsel %vm3195_vm10, %v7297_v31, %v3194_v7  ;;  %v3208_v26 = vmul.f32 %v3874_v38, %v7316_v11  ;;  %v3251_v60 = vrot.slane %v3250_v36, 1  ;;  %v7988_v23 = vld [vmem:[#allocation12_spill] sm:$0xff] }
 0x2f2   : > { %v3258_v61 = vrot.slane %v3257_v15, 1  ;;  %v3146_v25 = vsel %vm3144_vm9, %v3145_v30, %v3143_v16  ;;  %v3205_v42 = vand.u32 2147483648, %v7305_v53  ;;  %vm3209_vm6 = vcmp.eq.f32.partialorder %v7316_v11, inf }
 0x2f3   : > { %v3265_v41 = vrot.slane %v3264_v62, 1  ;;  %v3203_v32 = vsel %vm3202_vm2, %v7305_v53, %v3201_v21  ;;  %vm3204_vm8 = vcmp.eq.f32.partialorder %v7305_v53, 0.0  ;;  %vm3211_vm11 = vcmp.eq.f32.partialorder %v7316_v11, 0.0  ;;  %v7991_v21 = vld [vmem:[#allocation13_spill] sm:$0xff] }
 0x2f4   : > { %v7388_v39 = vadd.f32 %v3251_v60, %v3250_v36  ;;  %v3199_v50 = vsel %vm3197_vm15, %v3198_v5, %v3196_v59  ;;  %v3212_v55 = vand.u32 2147483648, %v7316_v11  ;;  %v3215_v4 = vmul.f32 %v3876_v33, %v7318_v44  ;;  %v7993_v36 = vld [vmem:[#allocation40_spill] sm:$0xff] }
 0x2f5   : > { %v7394_v30 = vadd.f32 %v3258_v61, %v3257_v15  ;;  %v3210_v49 = vsel %vm3209_vm6, %v7316_v11, %v3208_v26  ;;  %vm3216_vm14 = vcmp.eq.f32.partialorder %v7318_v44, inf  ;;  %v7398_v18 = vadd.f32 %v3265_v41, %v3264_v62 }
 0x2f6   : > { %v3339_v53 = vcombine.high %v6773_v13, %v6773_v13  ;;  %vm7983_vm3 = vcmp.ne.f32.partialorder %v7982_v37, 0.0  ;;  %v3206_v31 = vsel %vm3204_vm8, %v3205_v42, %v3203_v32  ;;  %3879 = vrsqrt.f32 %v7388_v39 }
 0x2f7   : > { %v3150_v14 = vsel %vm7983_vm3, %v3146_v25, 0.0  ;;  %v3340_v48 = vcombine.high %v7107_v1, %v7107_v1  ;;  %vm3218_vm5 = vcmp.eq.f32.partialorder %v7318_v44, 0.0  ;;  %v3219_v28 = vand.u32 2147483648, %v7318_v44 }
 0x2f8   : > { %vm7985_vm12 = vcmp.ne.f32.partialorder %v7984_v47, 0.0  ;;  %3881 = vrsqrt.f32 %v7394_v30  ;;  %v3213_v54 = vsel %vm3211_vm11, %v3212_v55, %v3210_v49  ;;  %v3217_v40 = vsel %vm3216_vm14, %v7318_v44, %v3215_v4 }
 0x2f9   : > { %v3221_v27 = vsel %vm7985_vm12, %v3199_v50, 0.0  ;;  %vm3269_vm13 = vcmp.eq.f32.partialorder %v7361_v8, inf  ;;  %3883 = vrsqrt.f32 %v7398_v18  ;;  %vm7987_vm7 = vcmp.ne.f32.partialorder %v7986_v9, 0.0 }
 0x2fa   : > { %v3222_v2 = vsel %vm7987_vm7, %v3206_v31, 0.0  ;;  %v3272_v19 = vand.u32 2147483648, %v7361_v8  ;;  %v3341_v63 = vrot.slane %v6773_v13, 2  ;;  %v3342_v58 = vrot.slane %v3339_v53, 2 }
 0x2fb   : > { %v3878_v11 = vpop.eup %3877  ;;  %v3343_v17 = vrot.slane %v7107_v1, 2  ;;  %v3344_v7 = vrot.slane %v3340_v48, 2  ;;  %v3363_v22 = vrot.slane %v6612_v6, %v7988_v23  ;;  %v3370_v57 = vrot.slane %v6620_v0, %v7988_v23 }
 0x2fc   : > { %v3268_v16 = vmul.f32 %v3878_v11, %v7361_v8  ;;  %vm3271_vm4 = vcmp.eq.f32.partialorder %v7361_v8, 0.0  ;;  %3349 = vst [vmem:[%s5061_s17 + $0x60] ss:$-60 sps:$4 sm:$0xc1] %v3341_v63   ;;  %v3388_v13 = vcombine.low %v6764_v45, %v6766_v20  ;;  %v3389_v51 = vcombine.low %v6775_v46, %v6781_v52  ;;  %v7989_v52 = vld [vmem:[#allocation46_spill] sm:$0xff]  ;;  %v8002_v63 = vld [vmem:[#allocation39_spill] sm:$0xff] }
 0x2fd   : > { %3350 = vst [vmem:[%s5061_s17 + $0x68] ss:$-60 sps:$4 sm:$0xc1] %v3342_v58   ;;  %v3153_v1 = vadd.f32 %v7368_v43, %v7310_v12  ;;  %v3154_v6 = vadd.f32 %v3150_v14, %v7326_v35  ;;  %v3220_v0 = vsel %vm3218_vm5, %v3219_v28, %v3217_v40  ;;  %3351 = vst [vmem:[%s5061_s17 + $0x70] ss:$-60 sps:$4 sm:$0xc1] %v3343_v17  }
 0x2fe   : > { %3352 = vst [vmem:[%s5061_s17 + $0x78] ss:$-60 sps:$4 sm:$0xc1] %v3344_v7   ;;  %v3371_v3 = vcombine.high %v3363_v22, %v3370_v57  ;;  %v3225_v38 = vadd.f32 %v3221_v27, %v7335_v29  ;;  %v3270_v45 = vsel %vm3269_vm13, %v7361_v8, %v3268_v16  ;;  %v3396_v20 = vrot.slane %v3388_v13, %v7988_v23  ;;  %v7998_v27 = vld [vmem:[#allocation37_spill] sm:$0xff] }
 0x2ff   : > { %v3403_v46 = vrot.slane %v3389_v51, %v7988_v23  ;;  %vm7990_vm9 = vcmp.ne.f32.partialorder %v7989_v52, 0.0  ;;  %v3226_v35 = vadd.f32 %v3222_v2, %v7339_v34  ;;  %v3273_v44 = vsel %vm3271_vm4, %v3272_v19, %v3270_v45  ;;  %v8000_v2 = vld [vmem:[#allocation38_spill] sm:$0xff] }
 0x300   : > { %v3223_v12 = vsel %vm7990_vm9, %v3213_v54, 0.0  ;;  %v3378_v43 = vrot.slane %v3371_v3, %v7988_v23  ;;  %vm7992_vm0 = vcmp.ne.f32.partialorder %v7991_v21, 0.0  ;;  %vm3276_vm10 = vcmp.eq.f32.partialorder %v7388_v39, inf  ;;  %v3880_v62 = vpop.eup %3879  ;;  %v8001_v19 = vld [vmem:[#allocation42_spill] sm:$0xff] }
 0x301   : > { %v3224_v29 = vsel %vm7992_vm0, %v3220_v0, 0.0  ;;  %vm7994_vm15 = vcmp.ne.f32.partialorder %v7993_v36, 0.0  ;;  %v3404_v5 = vcombine.low %v3396_v20, %v3403_v46  ;;  %vm3278_vm2 = vcmp.eq.f32.partialorder %v7388_v39, 0.0 }
 0x302   : > { %v3295_v15 = vsel %vm7994_vm15, %v3273_v44, 0.0  ;;  %v3279_v34 = vand.u32 2147483648, %v7388_v39  ;;  %vm3283_vm6 = vcmp.eq.f32.partialorder %v7394_v30, inf  ;;  %v3379_v8 = vcombine.high %v3378_v43, %v3378_v43  ;;  %v3882_v33 = vpop.eup %3881 }
 0x303   : > { %v3275_v59 = vmul.f32 %v3880_v62, %v7388_v39  ;;  %vm3285_vm8 = vcmp.eq.f32.partialorder %v7394_v30, 0.0  ;;  %v3286_v26 = vand.u32 2147483648, %v7394_v30  ;;  %v3411_v60 = vrot.slane %v3404_v5, %v7988_v23  ;;  %v3884_v61 = vpop.eup %3883 }
 0x304   : > { %v3282_v25 = vmul.f32 %v3882_v33, %v7394_v30  ;;  %vm3290_vm11 = vcmp.eq.f32.partialorder %v7398_v18, inf  ;;  %v3293_v42 = vand.u32 2147483648, %v7398_v18  ;;  %v3299_v41 = vadd.f32 %v3295_v15, %v3225_v38  ;;  %3608 = vst.msk [vmem:[%s5061_s17 + $0x61] ss:$8 sm:$0xf] %vm5901_vm1, %v3379_v8 }
 0x305   : > { %v3227_v50 = vadd.f32 %v3223_v12, %v3153_v1  ;;  %v3277_v55 = vsel %vm3276_vm10, %v7388_v39, %v3275_v59  ;;  %v3289_v4 = vmul.f32 %v3884_v61, %v7398_v18  ;;  %vm3292_vm14 = vcmp.eq.f32.partialorder %v7398_v18, 0.0  ;;  %3609 = vst.msk [vmem:[%s5061_s17 + $0x62] ss:$8 sm:$0xf] %vm5901_vm1, %v3411_v60 }
 0x306   : > { %v3228_v49 = vadd.f32 %v3224_v29, %v3154_v6  ;;  %v3280_v53 = vsel %vm3278_vm2, %v3279_v34, %v3277_v55  ;;  %v3284_v37 = vsel %vm3283_vm6, %v7394_v30, %v3282_v25  ;;  %vm7996_vm3 = vcmp.ne.f32.partialorder %v6648_v24, 0.0 }
 0x307   : > { %v3287_v14 = vsel %vm3285_vm8, %v3286_v26, %v3284_v37  ;;  %v3291_v31 = vsel %vm3290_vm11, %v7398_v18, %v3289_v4  ;;  %v3296_v48 = vsel %vm7996_vm3, %v3280_v53, 0.0  ;;  %vm7997_vm5 = vcmp.ne.f32.partialorder %v6681_v56, 0.0 }
 0x308   : > { %v3294_v28 = vsel %vm3292_vm14, %v3293_v42, %v3291_v31  ;;  %v3297_v47 = vsel %vm7997_vm5, %v3287_v14, 0.0  ;;  %v3300_v39 = vadd.f32 %v3296_v48, %v3226_v35  ;;  %v3307_v54 = vmul.f32 %v3299_v41, %v7998_v27 }
 0x309   : > { %vm7999_vm12 = vcmp.ne.f32.partialorder %v6701_v10, 0.0  ;;  %v3301_v30 = vadd.f32 %v3297_v47, %v3227_v50 }
 0x30a   : > { %v3298_v40 = vsel %vm7999_vm12, %v3294_v28, 0.0  ;;  %v3308_v18 = vmul.f32 %v3300_v39, %v8000_v2 }
 0x30b   : > { %v3302_v9 = vadd.f32 %v3298_v40, %v3228_v49  ;;  %v3309_v24 = vmul.f32 %v3301_v30, %v8001_v19 }
 0x30c   : > { %v3420_v11 = vcombine.low %v3307_v54, %v3308_v18 }
 0x30d   : > { %v3310_v58 = vmul.f32 %v3302_v9, %v8002_v63 }
 0x30e   : > { %v3428_v17 = vrot.slane %v3420_v11, %v7988_v23 }
 0x30f   : > { %v3421_v56 = vcombine.low %v3309_v24, %v3310_v58 }
 0x311   : > { %v3435_v7 = vrot.slane %v3421_v56, %v7988_v23 }
 0x313   : > { %v3436_v10 = vcombine.low %v3428_v17, %v3435_v7 }
 0x315   : > { %v3443_v22 = vrot.slane %v3436_v10, %v7988_v23 }
 0x317   : > { %3610 = vst.msk [vmem:[%s5061_s17 + $0x63] ss:$8 sm:$0xf] %vm5901_vm1, %v3443_v22 }
 0x318   : > { %3996 = shalt.err (!%p3993_p11)
}
 0x319   : > { %s3997_s5 = scalar_lea.hbm %s7504_s25, 2048  ;;  %s4001_s30 = scalar_lea.hbm %s7556_s2, 4096 }
 0x31a   : > { %p3998_p0 = scmp.ne.s32.totalorder %s7504_s25, %s3997_s5  ;;  %p4002_p3 = scmp.lt.u32.totalorder %s7504_s25, %s7556_s2 }
 0x31b   : > { %p4003_p10 = scmp.lt.u32.totalorder %s4001_s30, %s3997_s5  ;;  %p4005_p13 = scmp.lt.u32.totalorder %s3997_s5, %s7504_s25 }
 0x31c   : > { %p3999_p4 = pnand %p3998_p0, %p8003_p2 }
 0x31d   : > { %p4004_p6 = por %p4003_p10, %p4002_p3 }
 0x31e   : > { %p4000_p1 = pneg %p3999_p4 }
 0x31f   : > { %p4006_p12 = por %p4005_p13, %p4004_p6 }
 0x321   : > { %p4007_p5 = pnand %p4006_p12, %p4000_p1 }
 0x323   : > { %4010 = shalt.err (!%p4007_p5)
}
 0x324   : > { %s4064_s14 = smov 1024   ;;  %s4065_s19 = smov 2048  }
 0x325   : > { %s4066_s17 = smov 64  }
 0x326   : > { %3625 = dma.vmem_to_hbm [thread:$0]  (%p8003_p2), %s7506_s3, 2048, %s7504_s25, %s3449_s13, %s4064_s14, %s4065_s19, %s4066_s17  }
 0x327 PF: > { %s3477_s27 = sand.u32 1, %s4041_s9   ;;  %p8004_p7 = scmp.ne.s32.totalorder %s7720_s21, 0 }
 0x328   : > { %p8005_p8 = scmp.ge.s32.totalorder %s4053_s12, 2  ;;  %s3478_s23 = scalar_lea.sflag [#allocation4], %s3477_s27 }
 0x32a   : > { %p3635_p9 = pnand %p8005_p8, %p8004_p7 }
 0x32c   : > { %4036 = dma.done.wait (!%p3635_p9), %s3478_s23, 2048  }
 0x32d   : > { %4038 = vsyncadd (!%p3635_p9), %s3478_s23, 4294965248  ;;  %p18_p11 = scmp.ge.s32.totalorder %s4107_s15, 4   ;;  %s8006_s9 = smov %s4045_s10 }
 0x32e   : > { %s8007_s10 = smov %s4049_s11  ;;  %s8008_s11 = smov %s4119_s18 }
 0x32f   : > { %s8009_s12 = smov %s4107_s15  ;;  %20 = sbr.rel (!%p18_p11) target bundleno = 7 (0x7), region = 101 }
 0x336   :  { %3483 = vsyncpa [#allocation3], 1 }
 0x337   :  { %3485 = vsyncpa [#allocation3 + $0x1], 1 }
 0x338   :  { %3486 = vsyncpa [#allocation6], 1 }
 0x339   :  { %3488 = vsyncpa [#allocation6 + $0x1], 1 }
 0x33a   :  { %3489 = vsyncpa [#allocation4], 1 }
 0x33b   :  { %3491 = vsyncpa [#allocation4 + $0x1], 1 }

</bundles_post_ra>
